<compile_context>
chip_gen: v7x
topology: tpu7x:2x2x1
jax: 0.10.0
libtpu: 0.0.40
codegen_flags: <defaults>
</compile_context>

<pallas_src>
import functools

import jax
import jax.numpy as jnp
from jax.experimental import pallas as pl
from jax.experimental.pallas import tpu as pltpu


def _round_up(x, m):
    return (x + m - 1) // m * m


def _pad2(a, rows, cols):
    r, c = a.shape
    if rows == r and cols == c:
        return a
    return jnp.pad(a, ((0, rows - r), (0, cols - c)))


# ---------------------------------------------------------------------------
# Pallas kernel: fused  out = act(x @ w + b)   (lane-dense padded N, M grid)
# ---------------------------------------------------------------------------
def _dense_kernel(x_ref, w_ref, b_ref, o_ref, *, act):
    y = jnp.dot(x_ref[...], w_ref[...], preferred_element_type=jnp.float32)
    y = y + b_ref[...]                       # (1, Np) broadcasts over rows
    if act == "relu":
        y = jnp.maximum(y, 0.0)
    elif act == "sigmoid":
        # exp -> EUP, approx reciprocal -> EUP: activation epilogue off the VPU
        y = pl.reciprocal(1.0 + jnp.exp(-y), approx=True)
    o_ref[...] = y.astype(o_ref.dtype)


def dense(x, w, b, *, act=None, out_dtype=jnp.float32, tile_m=1024):
    """act(x @ w + b) on the MXU.  x:(M,K), w:(K,N), b:(N,)."""
    M, K = x.shape
    N = w.shape[1]
    Kp = _round_up(K, 8)            # sublane-aligned K
    Np = _round_up(N, 128)          # lane-dense output -> unmasked vst
    tm = min(tile_m, _round_up(M, 8))
    Mp = _round_up(M, tm)

    xp = _pad2(x.astype(jnp.bfloat16), Mp, Kp)
    wp = _pad2(w.astype(jnp.bfloat16), Kp, Np)
    bp = jnp.pad(b.astype(jnp.float32), (0, Np - N)).reshape(1, Np)

    out = pl.pallas_call(
        functools.partial(_dense_kernel, act=act),
        out_shape=jax.ShapeDtypeStruct((Mp, Np), out_dtype),
        grid=(Mp // tm,),
        in_specs=[
            pl.BlockSpec((tm, Kp), lambda i: (i, 0)),
            pl.BlockSpec((Kp, Np), lambda i: (0, 0)),   # fetched once, stays VMEM-resident
            pl.BlockSpec((1, Np), lambda i: (0, 0)),
        ],
        out_specs=pl.BlockSpec((tm, Np), lambda i: (i, 0)),
        compiler_params=pltpu.CompilerParams(dimension_semantics=("parallel",)),
        cost_estimate=pl.CostEstimate(
            flops=2 * Mp * Kp * Np,
            transcendentals=Mp * Np if act == "sigmoid" else 0,
            bytes_accessed=2 * (Mp * Kp + Kp * Np) + 4 * Np
                           + Mp * Np * jnp.dtype(out_dtype).itemsize,
        ),
    )(xp, wp, bp)
    return out[:M, :N]


# ---------------------------------------------------------------------------
# Pallas kernel: fused 4-layer bottleneck MLP  (el1 -> el2 -> dl1 -> dl2)
# ---------------------------------------------------------------------------
def _mlp_kernel(x_ref, w1_ref, b1_ref, w2_ref, b2_ref, w3_ref, b3_ref,
                w4_ref, b4_ref, o_ref):
    f32, bf16 = jnp.float32, jnp.bfloat16
    h = x_ref[...]                                                         # (tb, 288)
    a = jnp.dot(h, w1_ref[...], preferred_element_type=f32) + b1_ref[...]
    a = jnp.maximum(a, 0.0)                                                # ReLU
    a = jnp.dot(a.astype(bf16), w2_ref[...], preferred_element_type=f32) + b2_ref[...]
    #                                                   bottleneck z (no activation)
    a = jnp.dot(a.astype(bf16), w3_ref[...], preferred_element_type=f32) + b3_ref[...]
    a = jnp.maximum(a, 0.0)                                                # ReLU
    a = jnp.dot(a.astype(bf16), w4_ref[...], preferred_element_type=f32) + b4_ref[...]
    a = jnp.maximum(a, 0.0)                                                # ReLU
    o_ref[...] = a.astype(o_ref.dtype)


def mlp_fused(h, params, *, tile_b=512):
    """Fused encoder_lin + decoder_lin.  h: (N, 288) NHWC-flattened (3,3,32)."""
    M, K = h.shape                      # K = 288
    esd = params["el2_w"].shape[1]

    # Permute the Linear weights that touch the flattened conv activation so the
    # kernel consumes / produces the NHWC flatten order (h*96 + w*32 + c) instead
    # of torch's NCHW flatten (c*9 + h*3 + w).
    w1 = params["el1_w"].reshape(32, 3, 3, 64).transpose(1, 2, 0, 3).reshape(288, 64)
    b1 = params["el1_b"]
    w2, b2 = params["el2_w"], params["el2_b"]
    w3, b3 = params["dl1_w"], params["dl1_b"]
    w4 = params["dl2_w"].reshape(64, 32, 3, 3).transpose(0, 2, 3, 1).reshape(64, 288)
    b4 = params["dl2_b"].reshape(32, 3, 3).transpose(1, 2, 0).reshape(288)

    n1 = _round_up(64, 128)             # 128
    n2 = _round_up(esd, 128)            # 128
    n3 = _round_up(64, 128)             # 128
    n4 = _round_up(288, 128)            # 384

    w1p = _pad2(w1.astype(jnp.bfloat16), K, n1)
    w2p = _pad2(w2.astype(jnp.bfloat16), n1, n2)
    w3p = _pad2(w3.astype(jnp.bfloat16), n2, n3)
    w4p = _pad2(w4.astype(jnp.bfloat16), n3, n4)
    b1p = jnp.pad(b1.astype(jnp.float32), (0, n1 - 64)).reshape(1, n1)
    b2p = jnp.pad(b2.astype(jnp.float32), (0, n2 - esd)).reshape(1, n2)
    b3p = jnp.pad(b3.astype(jnp.float32), (0, n3 - 64)).reshape(1, n3)
    b4p = jnp.pad(b4.astype(jnp.float32), (0, n4 - 288)).reshape(1, n4)

    tb = min(tile_b, _round_up(M, 8))
    Mp = _round_up(M, tb)
    hp = _pad2(h.astype(jnp.bfloat16), Mp, K)

    out = pl.pallas_call(
        _mlp_kernel,
        out_shape=jax.ShapeDtypeStruct((Mp, n4), jnp.bfloat16),
        grid=(Mp // tb,),
        in_specs=[
            pl.BlockSpec((tb, K), lambda i: (i, 0)),
            pl.BlockSpec((K, n1), lambda i: (0, 0)),
            pl.BlockSpec((1, n1), lambda i: (0, 0)),
            pl.BlockSpec((n1, n2), lambda i: (0, 0)),
            pl.BlockSpec((1, n2), lambda i: (0, 0)),
            pl.BlockSpec((n2, n3), lambda i: (0, 0)),
            pl.BlockSpec((1, n3), lambda i: (0, 0)),
            pl.BlockSpec((n3, n4), lambda i: (0, 0)),
            pl.BlockSpec((1, n4), lambda i: (0, 0)),
        ],
        out_specs=pl.BlockSpec((tb, n4), lambda i: (i, 0)),
        compiler_params=pltpu.CompilerParams(dimension_semantics=("parallel",)),
        cost_estimate=pl.CostEstimate(
            flops=2 * Mp * (K * n1 + n1 * n2 + n2 * n3 + n3 * n4),
            transcendentals=0,
            bytes_accessed=2 * (Mp * K + K * n1 + n1 * n2 + n2 * n3 + n3 * n4 + Mp * n4)
                           + 4 * (n1 + n2 + n3 + n4),
        ),
    )(hp, w1p, b1p, w2p, b2p, w3p, b3p, w4p, b4p)
    return out[:M, :288]


# ---------------------------------------------------------------------------
# Conv2d / ConvTranspose2d  =  identity-kernel patch extraction + Pallas matmul
# ---------------------------------------------------------------------------
def _extract_patches_nhwc(x, k, stride, padding, lhs_dilation=(1, 1)):
    """x: (N,H,W,C) -> (N,Ho,Wo,C*k*k) with feature order (c, ki, kj)."""
    c = x.shape[-1]
    # identity kernel: output feature o = c*k*k + ki*k + kj picks x[..., c] at (ki, kj)
    eye = jnp.eye(c * k * k, dtype=x.dtype).reshape(c, k, k, c * k * k)
    rhs = eye.transpose(1, 2, 0, 3)                       # HWIO
    return jax.lax.conv_general_dilated(
        x, rhs, window_strides=(stride, stride), padding=padding,
        lhs_dilation=lhs_dilation,
        dimension_numbers=("NHWC", "HWIO", "NHWC"))


def conv2d_nhwc(x, w, b, *, stride, pad, act, out_dtype=jnp.bfloat16,
                lhs_dilation=(1, 1)):
    """x: (N,H,W,Cin) NHWC; w: (Cout,Cin,k,k) [PyTorch Conv2d layout]."""
    n = x.shape[0]
    cout, cin, k, _ = w.shape
    padding = [(pad, pad), (pad, pad)] if isinstance(pad, int) else pad
    patches = _extract_patches_nhwc(x.astype(jnp.bfloat16), k, stride, padding,
                                    lhs_dilation)
    _, ho, wo, kk = patches.shape                         # kk = cin*k*k, order (c,ki,kj)
    w2 = w.reshape(cout, cin * k * k).T                   # (K, Cout), same order
    y = dense(patches.reshape(n * ho * wo, kk), w2, b, act=act, out_dtype=out_dtype)
    return y.reshape(n, ho, wo, cout)


def conv_transpose2d_nhwc(x, w, b, *, stride, pad, output_padding, act,
                          out_dtype=jnp.bfloat16):
    """x: (N,H,W,Cin) NHWC; w: (Cin,Cout,k,k) [PyTorch ConvTranspose2d layout]."""
    cin, cout, k, _ = w.shape
    p0 = k - 1 - pad
    w_eq = jnp.flip(w, axis=(2, 3)).transpose(1, 0, 2, 3)   # (Cout, Cin, k, k)
    return conv2d_nhwc(
        x, w_eq, b, stride=1,
        pad=[(p0, p0 + output_padding), (p0, p0 + output_padding)],
        act=act, out_dtype=out_dtype, lhs_dilation=(stride, stride))


# ---------------------------------------------------------------------------
# Parameters (deterministic init, PyTorch-default-style uniform)
# ---------------------------------------------------------------------------
def _init_linear(key, fan_in, fan_out):
    kw, kb = jax.random.split(key)
    bound = 1.0 / jnp.sqrt(float(fan_in))
    w = jax.random.uniform(kw, (fan_in, fan_out), jnp.float32, -bound, bound)
    b = jax.random.uniform(kb, (fan_out,), jnp.float32, -bound, bound)
    return w, b


def _init_conv(key, cout, cin, k):
    kw, kb = jax.random.split(key)
    bound = 1.0 / jnp.sqrt(float(cin * k * k))
    w = jax.random.uniform(kw, (cout, cin, k, k), jnp.float32, -bound, bound)
    b = jax.random.uniform(kb, (cout,), jnp.float32, -bound, bound)
    return w, b


def _init_convT(key, cin, cout, k):
    kw, kb = jax.random.split(key)
    bound = 1.0 / jnp.sqrt(float(cin * k * k))
    w = jax.random.uniform(kw, (cin, cout, k, k), jnp.float32, -bound, bound)
    b = jax.random.uniform(kb, (cout,), jnp.float32, -bound, bound)
    return w, b


def init_params(key, encoded_space_dim):
    keys = jax.random.split(key, 10)
    p = {}
    p["ec1_w"], p["ec1_b"] = _init_conv(keys[0], 8, 1, 3)
    p["ec2_w"], p["ec2_b"] = _init_conv(keys[1], 16, 8, 3)
    p["ec3_w"], p["ec3_b"] = _init_conv(keys[2], 32, 16, 3)
    p["el1_w"], p["el1_b"] = _init_linear(keys[3], 3 * 3 * 32, 64)
    p["el2_w"], p["el2_b"] = _init_linear(keys[4], 64, encoded_space_dim)
    p["dl1_w"], p["dl1_b"] = _init_linear(keys[5], encoded_space_dim, 64)
    p["dl2_w"], p["dl2_b"] = _init_linear(keys[6], 64, 3 * 3 * 32)
    p["dc1_w"], p["dc1_b"] = _init_convT(keys[7], 32, 16, 3)
    p["dc2_w"], p["dc2_b"] = _init_convT(keys[8], 16, 8, 3)
    p["dc3_w"], p["dc3_b"] = _init_convT(keys[9], 8, 1, 3)
    return p


# ---------------------------------------------------------------------------
# Forward pass (matches Autoencoder.forward in eval mode); x is NCHW at boundary
# ---------------------------------------------------------------------------
def autoencoder_forward(x_nchw, params):
    n = x_nchw.shape[0]
    x = x_nchw.transpose(0, 2, 3, 1)                                       # NHWC
    # ---- encode ----
    h = conv2d_nhwc(x, params["ec1_w"], params["ec1_b"], stride=2, pad=1, act="relu")   # (N,14,14,8)
    h = conv2d_nhwc(h, params["ec2_w"], params["ec2_b"], stride=2, pad=1, act="relu")   # (N,7,7,16)
    h = conv2d_nhwc(h, params["ec3_w"], params["ec3_b"], stride=2, pad=0, act="relu")   # (N,3,3,32)
    h = h.reshape(n, -1)                    # NHWC flatten; MLP weights are permuted to match
    # ---- bottleneck MLP (el1 -> el2 -> dl1 -> dl2), single fused kernel ----
    h = mlp_fused(h, params)                                               # (N,288) NHWC-flat
    h = h.reshape(n, 3, 3, 32)
    # ---- decode ----
    h = conv_transpose2d_nhwc(h, params["dc1_w"], params["dc1_b"],
                              stride=2, pad=0, output_padding=0, act="relu")    # (N,7,7,16)
    h = conv_transpose2d_nhwc(h, params["dc2_w"], params["dc2_b"],
                              stride=2, pad=1, output_padding=1, act="relu")    # (N,14,14,8)
    h = conv_transpose2d_nhwc(h, params["dc3_w"], params["dc3_b"],
                              stride=2, pad=1, output_padding=1, act="sigmoid",
                              out_dtype=jnp.float32)                            # (N,28,28,1)
    return h.transpose(0, 3, 1, 2)                                         # back to NCHW


# ---------------------------------------------------------------------------
# Pure-XLA f32 reference (for a correctness check in __main__)
# ---------------------------------------------------------------------------
def reference_forward(x, params):
    def conv(x, w, b, stride, pad):
        y = jax.lax.conv_general_dilated(
            x, w, (stride, stride), [(pad, pad), (pad, pad)],
            dimension_numbers=("NCHW", "OIHW", "NCHW"))
        return y + b.reshape(1, -1, 1, 1)

    def convT(x, w, b, stride, pad, op):
        k = w.shape[2]
        p0 = k - 1 - pad
        w_eq = jnp.flip(w, (2, 3)).transpose(1, 0, 2, 3)
        y = jax.lax.conv_general_dilated(
            x, w_eq, (1, 1), [(p0, p0 + op), (p0, p0 + op)],
            lhs_dilation=(stride, stride),
            dimension_numbers=("NCHW", "OIHW", "NCHW"))
        return y + b.reshape(1, -1, 1, 1)

    relu = jax.nn.relu
    h = relu(conv(x, params["ec1_w"], params["ec1_b"], 2, 1))
    h = relu(conv(h, params["ec2_w"], params["ec2_b"], 2, 1))
    h = relu(conv(h, params["ec3_w"], params["ec3_b"], 2, 0))
    h = h.reshape(h.shape[0], -1)
    h = relu(h @ params["el1_w"] + params["el1_b"])
    z = h @ params["el2_w"] + params["el2_b"]
    h = relu(z @ params["dl1_w"] + params["dl1_b"])
    h = relu(h @ params["dl2_w"] + params["dl2_b"])
    h = h.reshape(-1, 32, 3, 3)
    h = relu(convT(h, params["dc1_w"], params["dc1_b"], 2, 0, 0))
    h = relu(convT(h, params["dc2_w"], params["dc2_b"], 2, 1, 1))
    h = convT(h, params["dc3_w"], params["dc3_b"], 2, 1, 1)
    return jax.nn.sigmoid(h)


# ---------------------------------------------------------------------------
if __name__ == "__main__":
    ENCODED_SPACE_DIM = 8
    BATCH = 2

    key = jax.random.PRNGKey(0)
    k_x, k_p = jax.random.split(key)
    # MNIST-sized input; spatial dims must be 28x28 to match the 3*3*32 bottleneck.
    x = jax.random.uniform(k_x, (BATCH, 1, 28, 28), jnp.float32)
    params = init_params(k_p, ENCODED_SPACE_DIM)

    fwd = jax.jit(autoencoder_forward)
    out = jax.block_until_ready(fwd(x, params))

    assert out.shape == (BATCH, 1, 28, 28), out.shape
    assert bool(jnp.all(jnp.isfinite(out)))
    # sigmoid range (small tolerance for the approx-reciprocal epilogue)
    assert bool(jnp.all((out >= -1e-2) & (out <= 1.0 + 1e-2)))

    ref = jax.block_until_ready(jax.jit(reference_forward)(x, params))
    max_err = float(jnp.max(jnp.abs(out.astype(jnp.float32) - ref)))
    assert max_err < 5e-2, f"max abs err vs XLA reference: {max_err}"

    print("KERNEL_OK")
</pallas_src>

<mosaic_0001>
module attributes {stable_mosaic.version = 11 : i64} {
  func.func @_dense_kernel(%arg0: i32, %arg1: memref<392x16xbf16, #tpu.memory_space<vmem>>, %arg2: memref<16x128xbf16, #tpu.memory_space<vmem>>, %arg3: memref<1x128xf32, #tpu.memory_space<vmem>>, %arg4: memref<392x128xbf16, #tpu.memory_space<vmem>>) attributes {dimension_semantics = [#tpu.dimension_semantics<parallel>], iteration_bounds = array<i64: 1>, scalar_prefetch = 0 : i64, scratch_operands = 0 : i64, tpu.core_type = #tpu.core_type<tc>, window_params = [{transform_indices = @transform_0, window_bounds = array<i64: 392, 16>}, {pipeline_mode = #tpu.pipeline_mode<synchronous>, transform_indices = @transform_1, window_bounds = array<i64: 16, 128>}, {pipeline_mode = #tpu.pipeline_mode<synchronous>, transform_indices = @transform_2, window_bounds = array<i64: 1, 128>}, {transform_indices = @transform_3, window_bounds = array<i64: 392, 128>}]} {
    %c0 = arith.constant 0 : index
    %c0_0 = arith.constant 0 : index
    %0 = vector.load %arg1[%c0, %c0_0] : memref<392x16xbf16, #tpu.memory_space<vmem>>, vector<392x16xbf16>
    %c0_1 = arith.constant 0 : index
    %c0_2 = arith.constant 0 : index
    %1 = vector.load %arg2[%c0_1, %c0_2] : memref<16x128xbf16, #tpu.memory_space<vmem>>, vector<16x128xbf16>
    %cst = arith.constant dense<0.000000e+00> : vector<392x128xf32>
    %2 = tpu.matmul %0, %1, %cst {dimension_numbers = #tpu.dot_dimension_numbers<[1], [0], [0], [1], [0, 0, 1, 1], [], []>} : vector<392x16xbf16>, vector<16x128xbf16>, vector<392x128xf32> -> vector<392x128xf32>
    %c0_3 = arith.constant 0 : index
    %c0_4 = arith.constant 0 : index
    %3 = vector.load %arg3[%c0_3, %c0_4] : memref<1x128xf32, #tpu.memory_space<vmem>>, vector<1x128xf32>
    %4 = vector.broadcast %3 : vector<1x128xf32> to vector<392x128xf32>
    %5 = arith.addf %2, %4 : vector<392x128xf32>
    %cst_5 = arith.constant 0.000000e+00 : f32
    %6 = vector.broadcast %cst_5 : f32 to vector<392x128xf32>
    %7 = arith.maximumf %5, %6 : vector<392x128xf32>
    %8 = arith.truncf %7 : vector<392x128xf32> to vector<392x128xbf16>
    %c0_6 = arith.constant 0 : index
    %c0_7 = arith.constant 0 : index
    %9 = vector.load %arg4[%c0_6, %c0_7] : memref<392x128xbf16, #tpu.memory_space<vmem>>, vector<392x128xbf16>
    tpu.vector_store %arg4[%c0_6, %c0_7], %8 {strides = array<i32>} : memref<392x128xbf16, #tpu.memory_space<vmem>>, vector<392x128xbf16>,
    return
  }
  func.func @transform_0(%arg0: i32) -> (i32, i32) {
    %c0_i32 = arith.constant 0 : i32
    %c0_i32_0 = arith.constant 0 : i32
    return %arg0, %c0_i32 : i32, i32
  }
  func.func @transform_1(%arg0: i32) -> (i32, i32) {
    %c0_i32 = arith.constant 0 : i32
    %c0_i32_0 = arith.constant 0 : i32
    %c0_i32_1 = arith.constant 0 : i32
    return %c0_i32, %c0_i32_0 : i32, i32
  }
  func.func @transform_2(%arg0: i32) -> (i32, i32) {
    %c0_i32 = arith.constant 0 : i32
    %c0_i32_0 = arith.constant 0 : i32
    %c0_i32_1 = arith.constant 0 : i32
    return %c0_i32, %c0_i32_0 : i32, i32
  }
  func.func @transform_3(%arg0: i32) -> (i32, i32) {
    %c0_i32 = arith.constant 0 : i32
    %c0_i32_0 = arith.constant 0 : i32
    return %arg0, %c0_i32 : i32, i32
  }
}

module attributes {stable_mosaic.version = 11 : i64} {
  func.func @_dense_kernel(%arg0: i32, %arg1: memref<104x72xbf16, #tpu.memory_space<vmem>>, %arg2: memref<72x128xbf16, #tpu.memory_space<vmem>>, %arg3: memref<1x128xf32, #tpu.memory_space<vmem>>, %arg4: memref<104x128xbf16, #tpu.memory_space<vmem>>) attributes {dimension_semantics = [#tpu.dimension_semantics<parallel>], iteration_bounds = array<i64: 1>, scalar_prefetch = 0 : i64, scratch_operands = 0 : i64, tpu.core_type = #tpu.core_type<tc>, window_params = [{transform_indices = @transform_0, window_bounds = array<i64: 104, 72>}, {pipeline_mode = #tpu.pipeline_mode<synchronous>, transform_indices = @transform_1, window_bounds = array<i64: 72, 128>}, {pipeline_mode = #tpu.pipeline_mode<synchronous>, transform_indices = @transform_2, window_bounds = array<i64: 1, 128>}, {transform_indices = @transform_3, window_bounds = array<i64: 104, 128>}]} {
    %c0 = arith.constant 0 : index
    %c0_0 = arith.constant 0 : index
    %0 = vector.load %arg1[%c0, %c0_0] : memref<104x72xbf16, #tpu.memory_space<vmem>>, vector<104x72xbf16>
    %c0_1 = arith.constant 0 : index
    %c0_2 = arith.constant 0 : index
    %1 = vector.load %arg2[%c0_1, %c0_2] : memref<72x128xbf16, #tpu.memory_space<vmem>>, vector<72x128xbf16>
    %cst = arith.constant dense<0.000000e+00> : vector<104x128xf32>
    %2 = tpu.matmul %0, %1, %cst {dimension_numbers = #tpu.dot_dimension_numbers<[1], [0], [0], [1], [0, 0, 1, 1], [], []>} : vector<104x72xbf16>, vector<72x128xbf16>, vector<104x128xf32> -> vector<104x128xf32>
    %c0_3 = arith.constant 0 : index
    %c0_4 = arith.constant 0 : index
    %3 = vector.load %arg3[%c0_3, %c0_4] : memref<1x128xf32, #tpu.memory_space<vmem>>, vector<1x128xf32>
    %4 = vector.broadcast %3 : vector<1x128xf32> to vector<104x128xf32>
    %5 = arith.addf %2, %4 : vector<104x128xf32>
    %cst_5 = arith.constant 0.000000e+00 : f32
    %6 = vector.broadcast %cst_5 : f32 to vector<104x128xf32>
    %7 = arith.maximumf %5, %6 : vector<104x128xf32>
    %8 = arith.truncf %7 : vector<104x128xf32> to vector<104x128xbf16>
    %c0_6 = arith.constant 0 : index
    %c0_7 = arith.constant 0 : index
    %9 = vector.load %arg4[%c0_6, %c0_7] : memref<104x128xbf16, #tpu.memory_space<vmem>>, vector<104x128xbf16>
    tpu.vector_store %arg4[%c0_6, %c0_7], %8 {strides = array<i32>} : memref<104x128xbf16, #tpu.memory_space<vmem>>, vector<104x128xbf16>,
    return
  }
  func.func @transform_0(%arg0: i32) -> (i32, i32) {
    %c0_i32 = arith.constant 0 : i32
    %c0_i32_0 = arith.constant 0 : i32
    return %arg0, %c0_i32 : i32, i32
  }
  func.func @transform_1(%arg0: i32) -> (i32, i32) {
    %c0_i32 = arith.constant 0 : i32
    %c0_i32_0 = arith.constant 0 : i32
    %c0_i32_1 = arith.constant 0 : i32
    return %c0_i32, %c0_i32_0 : i32, i32
  }
  func.func @transform_2(%arg0: i32) -> (i32, i32) {
    %c0_i32 = arith.constant 0 : i32
    %c0_i32_0 = arith.constant 0 : i32
    %c0_i32_1 = arith.constant 0 : i32
    return %c0_i32, %c0_i32_0 : i32, i32
  }
  func.func @transform_3(%arg0: i32) -> (i32, i32) {
    %c0_i32 = arith.constant 0 : i32
    %c0_i32_0 = arith.constant 0 : i32
    return %arg0, %c0_i32 : i32, i32
  }
}

module attributes {stable_mosaic.version = 11 : i64} {
  func.func @_dense_kernel(%arg0: i32, %arg1: memref<24x144xbf16, #tpu.memory_space<vmem>>, %arg2: memref<144x128xbf16, #tpu.memory_space<vmem>>, %arg3: memref<1x128xf32, #tpu.memory_space<vmem>>, %arg4: memref<24x128xbf16, #tpu.memory_space<vmem>>) attributes {dimension_semantics = [#tpu.dimension_semantics<parallel>], iteration_bounds = array<i64: 1>, scalar_prefetch = 0 : i64, scratch_operands = 0 : i64, tpu.core_type = #tpu.core_type<tc>, window_params = [{transform_indices = @transform_0, window_bounds = array<i64: 24, 144>}, {pipeline_mode = #tpu.pipeline_mode<synchronous>, transform_indices = @transform_1, window_bounds = array<i64: 144, 128>}, {pipeline_mode = #tpu.pipeline_mode<synchronous>, transform_indices = @transform_2, window_bounds = array<i64: 1, 128>}, {transform_indices = @transform_3, window_bounds = array<i64: 24, 128>}]} {
    %c0 = arith.constant 0 : index
    %c0_0 = arith.constant 0 : index
    %0 = vector.load %arg1[%c0, %c0_0] : memref<24x144xbf16, #tpu.memory_space<vmem>>, vector<24x144xbf16>
    %c0_1 = arith.constant 0 : index
    %c0_2 = arith.constant 0 : index
    %1 = vector.load %arg2[%c0_1, %c0_2] : memref<144x128xbf16, #tpu.memory_space<vmem>>, vector<144x128xbf16>
    %cst = arith.constant dense<0.000000e+00> : vector<24x128xf32>
    %2 = tpu.matmul %0, %1, %cst {dimension_numbers = #tpu.dot_dimension_numbers<[1], [0], [0], [1], [0, 0, 1, 1], [], []>} : vector<24x144xbf16>, vector<144x128xbf16>, vector<24x128xf32> -> vector<24x128xf32>
    %c0_3 = arith.constant 0 : index
    %c0_4 = arith.constant 0 : index
    %3 = vector.load %arg3[%c0_3, %c0_4] : memref<1x128xf32, #tpu.memory_space<vmem>>, vector<1x128xf32>
    %4 = vector.broadcast %3 : vector<1x128xf32> to vector<24x128xf32>
    %5 = arith.addf %2, %4 : vector<24x128xf32>
    %cst_5 = arith.constant 0.000000e+00 : f32
    %6 = vector.broadcast %cst_5 : f32 to vector<24x128xf32>
    %7 = arith.maximumf %5, %6 : vector<24x128xf32>
    %8 = arith.truncf %7 : vector<24x128xf32> to vector<24x128xbf16>
    %c0_6 = arith.constant 0 : index
    %c0_7 = arith.constant 0 : index
    %9 = vector.load %arg4[%c0_6, %c0_7] : memref<24x128xbf16, #tpu.memory_space<vmem>>, vector<24x128xbf16>
    tpu.vector_store %arg4[%c0_6, %c0_7], %8 {strides = array<i32>} : memref<24x128xbf16, #tpu.memory_space<vmem>>, vector<24x128xbf16>,
    return
  }
  func.func @transform_0(%arg0: i32) -> (i32, i32) {
    %c0_i32 = arith.constant 0 : i32
    %c0_i32_0 = arith.constant 0 : i32
    return %arg0, %c0_i32 : i32, i32
  }
  func.func @transform_1(%arg0: i32) -> (i32, i32) {
    %c0_i32 = arith.constant 0 : i32
    %c0_i32_0 = arith.constant 0 : i32
    %c0_i32_1 = arith.constant 0 : i32
    return %c0_i32, %c0_i32_0 : i32, i32
  }
  func.func @transform_2(%arg0: i32) -> (i32, i32) {
    %c0_i32 = arith.constant 0 : i32
    %c0_i32_0 = arith.constant 0 : i32
    %c0_i32_1 = arith.constant 0 : i32
    return %c0_i32, %c0_i32_0 : i32, i32
  }
  func.func @transform_3(%arg0: i32) -> (i32, i32) {
    %c0_i32 = arith.constant 0 : i32
    %c0_i32_0 = arith.constant 0 : i32
    return %arg0, %c0_i32 : i32, i32
  }
}

module attributes {stable_mosaic.version = 11 : i64} {
  func.func @_mlp_kernel(%arg0: i32, %arg1: memref<8x288xbf16, #tpu.memory_space<vmem>>, %arg2: memref<288x128xbf16, #tpu.memory_space<vmem>>, %arg3: memref<1x128xf32, #tpu.memory_space<vmem>>, %arg4: memref<128x128xbf16, #tpu.memory_space<vmem>>, %arg5: memref<1x128xf32, #tpu.memory_space<vmem>>, %arg6: memref<128x128xbf16, #tpu.memory_space<vmem>>, %arg7: memref<1x128xf32, #tpu.memory_space<vmem>>, %arg8: memref<128x384xbf16, #tpu.memory_space<vmem>>, %arg9: memref<1x384xf32, #tpu.memory_space<vmem>>, %arg10: memref<8x384xbf16, #tpu.memory_space<vmem>>) attributes {dimension_semantics = [#tpu.dimension_semantics<parallel>], iteration_bounds = array<i64: 1>, scalar_prefetch = 0 : i64, scratch_operands = 0 : i64, tpu.core_type = #tpu.core_type<tc>, window_params = [{transform_indices = @transform_0, window_bounds = array<i64: 8, 288>}, {pipeline_mode = #tpu.pipeline_mode<synchronous>, transform_indices = @transform_1, window_bounds = array<i64: 288, 128>}, {pipeline_mode = #tpu.pipeline_mode<synchronous>, transform_indices = @transform_2, window_bounds = array<i64: 1, 128>}, {pipeline_mode = #tpu.pipeline_mode<synchronous>, transform_indices = @transform_3, window_bounds = array<i64: 128, 128>}, {pipeline_mode = #tpu.pipeline_mode<synchronous>, transform_indices = @transform_4, window_bounds = array<i64: 1, 128>}, {pipeline_mode = #tpu.pipeline_mode<synchronous>, transform_indices = @transform_5, window_bounds = array<i64: 128, 128>}, {pipeline_mode = #tpu.pipeline_mode<synchronous>, transform_indices = @transform_6, window_bounds = array<i64: 1, 128>}, {pipeline_mode = #tpu.pipeline_mode<synchronous>, transform_indices = @transform_7, window_bounds = array<i64: 128, 384>}, {pipeline_mode = #tpu.pipeline_mode<synchronous>, transform_indices = @transform_8, window_bounds = array<i64: 1, 384>}, {transform_indices = @transform_9, window_bounds = array<i64: 8, 384>}]} {
    %c0 = arith.constant 0 : index
    %c0_0 = arith.constant 0 : index
    %0 = vector.load %arg1[%c0, %c0_0] : memref<8x288xbf16, #tpu.memory_space<vmem>>, vector<8x288xbf16>
    %c0_1 = arith.constant 0 : index
    %c0_2 = arith.constant 0 : index
    %1 = vector.load %arg2[%c0_1, %c0_2] : memref<288x128xbf16, #tpu.memory_space<vmem>>, vector<288x128xbf16>
    %cst = arith.constant dense<0.000000e+00> : vector<8x128xf32>
    %2 = tpu.matmul %0, %1, %cst {dimension_numbers = #tpu.dot_dimension_numbers<[1], [0], [0], [1], [0, 0, 1, 1], [], []>} : vector<8x288xbf16>, vector<288x128xbf16>, vector<8x128xf32> -> vector<8x128xf32>
    %c0_3 = arith.constant 0 : index
    %c0_4 = arith.constant 0 : index
    %3 = vector.load %arg3[%c0_3, %c0_4] : memref<1x128xf32, #tpu.memory_space<vmem>>, vector<1x128xf32>
    %4 = vector.broadcast %3 : vector<1x128xf32> to vector<8x128xf32>
    %5 = arith.addf %2, %4 : vector<8x128xf32>
    %cst_5 = arith.constant 0.000000e+00 : f32
    %6 = vector.broadcast %cst_5 : f32 to vector<8x128xf32>
    %7 = arith.maximumf %5, %6 : vector<8x128xf32>
    %8 = arith.truncf %7 : vector<8x128xf32> to vector<8x128xbf16>
    %c0_6 = arith.constant 0 : index
    %c0_7 = arith.constant 0 : index
    %9 = vector.load %arg4[%c0_6, %c0_7] : memref<128x128xbf16, #tpu.memory_space<vmem>>, vector<128x128xbf16>
    %cst_8 = arith.constant dense<0.000000e+00> : vector<8x128xf32>
    %10 = tpu.matmul %8, %9, %cst_8 {dimension_numbers = #tpu.dot_dimension_numbers<[1], [0], [0], [1], [0, 0, 1, 1], [], []>} : vector<8x128xbf16>, vector<128x128xbf16>, vector<8x128xf32> -> vector<8x128xf32>
    %c0_9 = arith.constant 0 : index
    %c0_10 = arith.constant 0 : index
    %11 = vector.load %arg5[%c0_9, %c0_10] : memref<1x128xf32, #tpu.memory_space<vmem>>, vector<1x128xf32>
    %12 = vector.broadcast %11 : vector<1x128xf32> to vector<8x128xf32>
    %13 = arith.addf %10, %12 : vector<8x128xf32>
    %14 = arith.truncf %13 : vector<8x128xf32> to vector<8x128xbf16>
    %c0_11 = arith.constant 0 : index
    %c0_12 = arith.constant 0 : index
    %15 = vector.load %arg6[%c0_11, %c0_12] : memref<128x128xbf16, #tpu.memory_space<vmem>>, vector<128x128xbf16>
    %cst_13 = arith.constant dense<0.000000e+00> : vector<8x128xf32>
    %16 = tpu.matmul %14, %15, %cst_13 {dimension_numbers = #tpu.dot_dimension_numbers<[1], [0], [0], [1], [0, 0, 1, 1], [], []>} : vector<8x128xbf16>, vector<128x128xbf16>, vector<8x128xf32> -> vector<8x128xf32>
    %c0_14 = arith.constant 0 : index
    %c0_15 = arith.constant 0 : index
    %17 = vector.load %arg7[%c0_14, %c0_15] : memref<1x128xf32, #tpu.memory_space<vmem>>, vector<1x128xf32>
    %18 = vector.broadcast %17 : vector<1x128xf32> to vector<8x128xf32>
    %19 = arith.addf %16, %18 : vector<8x128xf32>
    %cst_16 = arith.constant 0.000000e+00 : f32
    %20 = vector.broadcast %cst_16 : f32 to vector<8x128xf32>
    %21 = arith.maximumf %19, %20 : vector<8x128xf32>
    %22 = arith.truncf %21 : vector<8x128xf32> to vector<8x128xbf16>
    %c0_17 = arith.constant 0 : index
    %c0_18 = arith.constant 0 : index
    %23 = vector.load %arg8[%c0_17, %c0_18] : memref<128x384xbf16, #tpu.memory_space<vmem>>, vector<128x384xbf16>
    %cst_19 = arith.constant dense<0.000000e+00> : vector<8x384xf32>
    %24 = tpu.matmul %22, %23, %cst_19 {dimension_numbers = #tpu.dot_dimension_numbers<[1], [0], [0], [1], [0, 0, 1, 1], [], []>} : vector<8x128xbf16>, vector<128x384xbf16>, vector<8x384xf32> -> vector<8x384xf32>
    %c0_20 = arith.constant 0 : index
    %c0_21 = arith.constant 0 : index
    %25 = vector.load %arg9[%c0_20, %c0_21] : memref<1x384xf32, #tpu.memory_space<vmem>>, vector<1x384xf32>
    %26 = vector.broadcast %25 : vector<1x384xf32> to vector<8x384xf32>
    %27 = arith.addf %24, %26 : vector<8x384xf32>
    %cst_22 = arith.constant 0.000000e+00 : f32
    %28 = vector.broadcast %cst_22 : f32 to vector<8x384xf32>
    %29 = arith.maximumf %27, %28 : vector<8x384xf32>
    %30 = arith.truncf %29 : vector<8x384xf32> to vector<8x384xbf16>
    %c0_23 = arith.constant 0 : index
    %c0_24 = arith.constant 0 : index
    %31 = vector.load %arg10[%c0_23, %c0_24] : memref<8x384xbf16, #tpu.memory_space<vmem>>, vector<8x384xbf16>
    tpu.vector_store %arg10[%c0_23, %c0_24], %30 {strides = array<i32>} : memref<8x384xbf16, #tpu.memory_space<vmem>>, vector<8x384xbf16>,
    return
  }
  func.func @transform_0(%arg0: i32) -> (i32, i32) {
    %c0_i32 = arith.constant 0 : i32
    %c0_i32_0 = arith.constant 0 : i32
    return %arg0, %c0_i32 : i32, i32
  }
  func.func @transform_1(%arg0: i32) -> (i32, i32) {
    %c0_i32 = arith.constant 0 : i32
    %c0_i32_0 = arith.constant 0 : i32
    %c0_i32_1 = arith.constant 0 : i32
    return %c0_i32, %c0_i32_0 : i32, i32
  }
  func.func @transform_2(%arg0: i32) -> (i32, i32) {
    %c0_i32 = arith.constant 0 : i32
    %c0_i32_0 = arith.constant 0 : i32
    %c0_i32_1 = arith.constant 0 : i32
    return %c0_i32, %c0_i32_0 : i32, i32
  }
  func.func @transform_3(%arg0: i32) -> (i32, i32) {
    %c0_i32 = arith.constant 0 : i32
    %c0_i32_0 = arith.constant 0 : i32
    %c0_i32_1 = arith.constant 0 : i32
    return %c0_i32, %c0_i32_0 : i32, i32
  }
  func.func @transform_4(%arg0: i32) -> (i32, i32) {
    %c0_i32 = arith.constant 0 : i32
    %c0_i32_0 = arith.constant 0 : i32
    %c0_i32_1 = arith.constant 0 : i32
    return %c0_i32, %c0_i32_0 : i32, i32
  }
  func.func @transform_5(%arg0: i32) -> (i32, i32) {
    %c0_i32 = arith.constant 0 : i32
    %c0_i32_0 = arith.constant 0 : i32
    %c0_i32_1 = arith.constant 0 : i32
    return %c0_i32, %c0_i32_0 : i32, i32
  }
  func.func @transform_6(%arg0: i32) -> (i32, i32) {
    %c0_i32 = arith.constant 0 : i32
    %c0_i32_0 = arith.constant 0 : i32
    %c0_i32_1 = arith.constant 0 : i32
    return %c0_i32, %c0_i32_0 : i32, i32
  }
  func.func @transform_7(%arg0: i32) -> (i32, i32) {
    %c0_i32 = arith.constant 0 : i32
    %c0_i32_0 = arith.constant 0 : i32
    %c0_i32_1 = arith.constant 0 : i32
    return %c0_i32, %c0_i32_0 : i32, i32
  }
  func.func @transform_8(%arg0: i32) -> (i32, i32) {
    %c0_i32 = arith.constant 0 : i32
    %c0_i32_0 = arith.constant 0 : i32
    %c0_i32_1 = arith.constant 0 : i32
    return %c0_i32, %c0_i32_0 : i32, i32
  }
  func.func @transform_9(%arg0: i32) -> (i32, i32) {
    %c0_i32 = arith.constant 0 : i32
    %c0_i32_0 = arith.constant 0 : i32
    return %arg0, %c0_i32 : i32, i32
  }
}

module attributes {stable_mosaic.version = 11 : i64} {
  func.func @_dense_kernel(%arg0: i32, %arg1: memref<104x288xbf16, #tpu.memory_space<vmem>>, %arg2: memref<288x128xbf16, #tpu.memory_space<vmem>>, %arg3: memref<1x128xf32, #tpu.memory_space<vmem>>, %arg4: memref<104x128xbf16, #tpu.memory_space<vmem>>) attributes {dimension_semantics = [#tpu.dimension_semantics<parallel>], iteration_bounds = array<i64: 1>, scalar_prefetch = 0 : i64, scratch_operands = 0 : i64, tpu.core_type = #tpu.core_type<tc>, window_params = [{transform_indices = @transform_0, window_bounds = array<i64: 104, 288>}, {pipeline_mode = #tpu.pipeline_mode<synchronous>, transform_indices = @transform_1, window_bounds = array<i64: 288, 128>}, {pipeline_mode = #tpu.pipeline_mode<synchronous>, transform_indices = @transform_2, window_bounds = array<i64: 1, 128>}, {transform_indices = @transform_3, window_bounds = array<i64: 104, 128>}]} {
    %c0 = arith.constant 0 : index
    %c0_0 = arith.constant 0 : index
    %0 = vector.load %arg1[%c0, %c0_0] : memref<104x288xbf16, #tpu.memory_space<vmem>>, vector<104x288xbf16>
    %c0_1 = arith.constant 0 : index
    %c0_2 = arith.constant 0 : index
    %1 = vector.load %arg2[%c0_1, %c0_2] : memref<288x128xbf16, #tpu.memory_space<vmem>>, vector<288x128xbf16>
    %cst = arith.constant dense<0.000000e+00> : vector<104x128xf32>
    %2 = tpu.matmul %0, %1, %cst {dimension_numbers = #tpu.dot_dimension_numbers<[1], [0], [0], [1], [0, 0, 1, 1], [], []>} : vector<104x288xbf16>, vector<288x128xbf16>, vector<104x128xf32> -> vector<104x128xf32>
    %c0_3 = arith.constant 0 : index
    %c0_4 = arith.constant 0 : index
    %3 = vector.load %arg3[%c0_3, %c0_4] : memref<1x128xf32, #tpu.memory_space<vmem>>, vector<1x128xf32>
    %4 = vector.broadcast %3 : vector<1x128xf32> to vector<104x128xf32>
    %5 = arith.addf %2, %4 : vector<104x128xf32>
    %cst_5 = arith.constant 0.000000e+00 : f32
    %6 = vector.broadcast %cst_5 : f32 to vector<104x128xf32>
    %7 = arith.maximumf %5, %6 : vector<104x128xf32>
    %8 = arith.truncf %7 : vector<104x128xf32> to vector<104x128xbf16>
    %c0_6 = arith.constant 0 : index
    %c0_7 = arith.constant 0 : index
    %9 = vector.load %arg4[%c0_6, %c0_7] : memref<104x128xbf16, #tpu.memory_space<vmem>>, vector<104x128xbf16>
    tpu.vector_store %arg4[%c0_6, %c0_7], %8 {strides = array<i32>} : memref<104x128xbf16, #tpu.memory_space<vmem>>, vector<104x128xbf16>,
    return
  }
  func.func @transform_0(%arg0: i32) -> (i32, i32) {
    %c0_i32 = arith.constant 0 : i32
    %c0_i32_0 = arith.constant 0 : i32
    return %arg0, %c0_i32 : i32, i32
  }
  func.func @transform_1(%arg0: i32) -> (i32, i32) {
    %c0_i32 = arith.constant 0 : i32
    %c0_i32_0 = arith.constant 0 : i32
    %c0_i32_1 = arith.constant 0 : i32
    return %c0_i32, %c0_i32_0 : i32, i32
  }
  func.func @transform_2(%arg0: i32) -> (i32, i32) {
    %c0_i32 = arith.constant 0 : i32
    %c0_i32_0 = arith.constant 0 : i32
    %c0_i32_1 = arith.constant 0 : i32
    return %c0_i32, %c0_i32_0 : i32, i32
  }
  func.func @transform_3(%arg0: i32) -> (i32, i32) {
    %c0_i32 = arith.constant 0 : i32
    %c0_i32_0 = arith.constant 0 : i32
    return %arg0, %c0_i32 : i32, i32
  }
}

module attributes {stable_mosaic.version = 11 : i64} {
  func.func @_dense_kernel(%arg0: i32, %arg1: memref<392x144xbf16, #tpu.memory_space<vmem>>, %arg2: memref<144x128xbf16, #tpu.memory_space<vmem>>, %arg3: memref<1x128xf32, #tpu.memory_space<vmem>>, %arg4: memref<392x128xbf16, #tpu.memory_space<vmem>>) attributes {dimension_semantics = [#tpu.dimension_semantics<parallel>], iteration_bounds = array<i64: 1>, scalar_prefetch = 0 : i64, scratch_operands = 0 : i64, tpu.core_type = #tpu.core_type<tc>, window_params = [{transform_indices = @transform_0, window_bounds = array<i64: 392, 144>}, {pipeline_mode = #tpu.pipeline_mode<synchronous>, transform_indices = @transform_1, window_bounds = array<i64: 144, 128>}, {pipeline_mode = #tpu.pipeline_mode<synchronous>, transform_indices = @transform_2, window_bounds = array<i64: 1, 128>}, {transform_indices = @transform_3, window_bounds = array<i64: 392, 128>}]} {
    %c0 = arith.constant 0 : index
    %c0_0 = arith.constant 0 : index
    %0 = vector.load %arg1[%c0, %c0_0] : memref<392x144xbf16, #tpu.memory_space<vmem>>, vector<392x144xbf16>
    %c0_1 = arith.constant 0 : index
    %c0_2 = arith.constant 0 : index
    %1 = vector.load %arg2[%c0_1, %c0_2] : memref<144x128xbf16, #tpu.memory_space<vmem>>, vector<144x128xbf16>
    %cst = arith.constant dense<0.000000e+00> : vector<392x128xf32>
    %2 = tpu.matmul %0, %1, %cst {dimension_numbers = #tpu.dot_dimension_numbers<[1], [0], [0], [1], [0, 0, 1, 1], [], []>} : vector<392x144xbf16>, vector<144x128xbf16>, vector<392x128xf32> -> vector<392x128xf32>
    %c0_3 = arith.constant 0 : index
    %c0_4 = arith.constant 0 : index
    %3 = vector.load %arg3[%c0_3, %c0_4] : memref<1x128xf32, #tpu.memory_space<vmem>>, vector<1x128xf32>
    %4 = vector.broadcast %3 : vector<1x128xf32> to vector<392x128xf32>
    %5 = arith.addf %2, %4 : vector<392x128xf32>
    %cst_5 = arith.constant 0.000000e+00 : f32
    %6 = vector.broadcast %cst_5 : f32 to vector<392x128xf32>
    %7 = arith.maximumf %5, %6 : vector<392x128xf32>
    %8 = arith.truncf %7 : vector<392x128xf32> to vector<392x128xbf16>
    %c0_6 = arith.constant 0 : index
    %c0_7 = arith.constant 0 : index
    %9 = vector.load %arg4[%c0_6, %c0_7] : memref<392x128xbf16, #tpu.memory_space<vmem>>, vector<392x128xbf16>
    tpu.vector_store %arg4[%c0_6, %c0_7], %8 {strides = array<i32>} : memref<392x128xbf16, #tpu.memory_space<vmem>>, vector<392x128xbf16>,
    return
  }
  func.func @transform_0(%arg0: i32) -> (i32, i32) {
    %c0_i32 = arith.constant 0 : i32
    %c0_i32_0 = arith.constant 0 : i32
    return %arg0, %c0_i32 : i32, i32
  }
  func.func @transform_1(%arg0: i32) -> (i32, i32) {
    %c0_i32 = arith.constant 0 : i32
    %c0_i32_0 = arith.constant 0 : i32
    %c0_i32_1 = arith.constant 0 : i32
    return %c0_i32, %c0_i32_0 : i32, i32
  }
  func.func @transform_2(%arg0: i32) -> (i32, i32) {
    %c0_i32 = arith.constant 0 : i32
    %c0_i32_0 = arith.constant 0 : i32
    %c0_i32_1 = arith.constant 0 : i32
    return %c0_i32, %c0_i32_0 : i32, i32
  }
  func.func @transform_3(%arg0: i32) -> (i32, i32) {
    %c0_i32 = arith.constant 0 : i32
    %c0_i32_0 = arith.constant 0 : i32
    return %arg0, %c0_i32 : i32, i32
  }
}

module attributes {stable_mosaic.version = 11 : i64} {
  func.func @_dense_kernel(%arg0: i32, %arg1: memref<1024x72xbf16, #tpu.memory_space<vmem>>, %arg2: memref<72x128xbf16, #tpu.memory_space<vmem>>, %arg3: memref<1x128xf32, #tpu.memory_space<vmem>>, %arg4: memref<1024x128xf32, #tpu.memory_space<vmem>>) attributes {dimension_semantics = [#tpu.dimension_semantics<parallel>], iteration_bounds = array<i64: 2>, scalar_prefetch = 0 : i64, scratch_operands = 0 : i64, tpu.core_type = #tpu.core_type<tc>, window_params = [{transform_indices = @transform_0, window_bounds = array<i64: 1024, 72>}, {pipeline_mode = #tpu.pipeline_mode<synchronous>, transform_indices = @transform_1, window_bounds = array<i64: 72, 128>}, {pipeline_mode = #tpu.pipeline_mode<synchronous>, transform_indices = @transform_2, window_bounds = array<i64: 1, 128>}, {transform_indices = @transform_3, window_bounds = array<i64: 1024, 128>}]} {
    %c0 = arith.constant 0 : index
    %c0_0 = arith.constant 0 : index
    %0 = vector.load %arg1[%c0, %c0_0] : memref<1024x72xbf16, #tpu.memory_space<vmem>>, vector<1024x72xbf16>
    %c0_1 = arith.constant 0 : index
    %c0_2 = arith.constant 0 : index
    %1 = vector.load %arg2[%c0_1, %c0_2] : memref<72x128xbf16, #tpu.memory_space<vmem>>, vector<72x128xbf16>
    %cst = arith.constant dense<0.000000e+00> : vector<1024x128xf32>
    %2 = tpu.matmul %0, %1, %cst {dimension_numbers = #tpu.dot_dimension_numbers<[1], [0], [0], [1], [0, 0, 1, 1], [], []>} : vector<1024x72xbf16>, vector<72x128xbf16>, vector<1024x128xf32> -> vector<1024x128xf32>
    %c0_3 = arith.constant 0 : index
    %c0_4 = arith.constant 0 : index
    %3 = vector.load %arg3[%c0_3, %c0_4] : memref<1x128xf32, #tpu.memory_space<vmem>>, vector<1x128xf32>
    %4 = vector.broadcast %3 : vector<1x128xf32> to vector<1024x128xf32>
    %5 = arith.addf %2, %4 : vector<1024x128xf32>
    %cst_5 = arith.constant 0.000000e+00 : f32
    %6 = vector.broadcast %cst_5 : f32 to vector<1024x128xf32>
    %7 = arith.subf %6, %5 : vector<1024x128xf32>
    %8 = math.exp %7 : vector<1024x128xf32>
    %cst_6 = arith.constant 1.000000e+00 : f32
    %9 = vector.broadcast %cst_6 : f32 to vector<1024x128xf32>
    %10 = arith.addf %9, %8 : vector<1024x128xf32>
    %11 = tpu.reciprocal %10 {approx = true} : vector<1024x128xf32> -> vector<1024x128xf32>
    %c0_7 = arith.constant 0 : index
    %c0_8 = arith.constant 0 : index
    %12 = vector.load %arg4[%c0_7, %c0_8] : memref<1024x128xf32, #tpu.memory_space<vmem>>, vector<1024x128xf32>
    tpu.vector_store %arg4[%c0_7, %c0_8], %11 {strides = array<i32>} : memref<1024x128xf32, #tpu.memory_space<vmem>>, vector<1024x128xf32>,
    return
  }
  func.func @transform_0(%arg0: i32) -> (i32, i32) {
    %c0_i32 = arith.constant 0 : i32
    %c0_i32_0 = arith.constant 0 : i32
    return %arg0, %c0_i32 : i32, i32
  }
  func.func @transform_1(%arg0: i32) -> (i32, i32) {
    %c0_i32 = arith.constant 0 : i32
    %c0_i32_0 = arith.constant 0 : i32
    %c0_i32_1 = arith.constant 0 : i32
    return %c0_i32, %c0_i32_0 : i32, i32
  }
  func.func @transform_2(%arg0: i32) -> (i32, i32) {
    %c0_i32 = arith.constant 0 : i32
    %c0_i32_0 = arith.constant 0 : i32
    %c0_i32_1 = arith.constant 0 : i32
    return %c0_i32, %c0_i32_0 : i32, i32
  }
  func.func @transform_3(%arg0: i32) -> (i32, i32) {
    %c0_i32 = arith.constant 0 : i32
    %c0_i32_0 = arith.constant 0 : i32
    return %arg0, %c0_i32 : i32, i32
  }
}

</mosaic_0001>

<bundles_post_ra>
// kernel: autoencoder_forward.7
= control target key start
LH: loop header
LB: loop body
LE: loop exit
PB: predicated region body
PF: predicated region fallthrough
CT: control target
= control target key end

     0   :  { %v1260_v0 = vmov 0.0   ;;  %vm1261_vm0 = vmmov 0   ;;  %vm202_vm1 = vcmask 130048   ;;  %s1566_s1 = inlined_call_operand.vmem [shape: bf16[16,128], index: 1, kind: input, shape index: {}]   ;;  %s1567_s0 = inlined_call_operand.vmem [shape: bf16[392,16], index: 0, kind: input, shape index: {}]   ;;  %s1568_s2 = inlined_call_operand.vmem [shape: f32[1,128], index: 2, kind: input, shape index: {}]   ;;  %s1569_s3 = inlined_call_operand.vmem [shape: bf16[392,128], index: 3, kind: output, shape index: {}]  }
   0x1   :  { %1128 = vmatprep.subr.bf16.mxu0 %v1260_v0  ;;  %v1234_v1 = vld [vmem:[%s1566_s1] sm:$0xff]   ;;  %1130 = vmatprep.mubr.msk.bf16.mxu0 %vm1261_vm0, %v1260_v0  ;;  %v1236_v3 = vld [vmem:[%s1567_s0 + $0x68] sm:$0xff]   ;;  %v1238_v5 = vld [vmem:[%s1567_s0 + $0x70] sm:$0xff]  }
   0x2   :  { %v1235_v2 = vld [vmem:[%s1567_s0] sm:$0xff]   ;;  %1230 = vmatprep.subr.bf16.mxu1 %v1260_v0  ;;  %1182 = vmatprep.mubr.msk.bf16.mxu1 %vm1261_vm0, %v1260_v0  ;;  %v1237_v4 = vld [vmem:[%s1567_s0 + $0x8] sm:$0xff]   ;;  %v1239_v6 = vld [vmem:[%s1567_s0 + $0x10] sm:$0xff]  }
   0x3   :  { %1129 = vmatpush3.bf16.msra.mxu0 %v1234_v1  ;;  %1231 = vmatpush3.bf16.msra.mxu1 %v1234_v1  ;;  %v1240_v7 = vld [vmem:[%s1567_s0 + $0x78] sm:$0xff]   ;;  %v1242_v9 = vld [vmem:[%s1567_s0 + $0x80] sm:$0xff]   ;;  %v1244_v11 = vld [vmem:[%s1567_s0 + $0x88] sm:$0xff]  }
   0x4   :  { %v1241_v8 = vld [vmem:[%s1567_s0 + $0x18] sm:$0xff]   ;;  %v1243_v10 = vld [vmem:[%s1567_s0 + $0x20] sm:$0xff]   ;;  %v1245_v12 = vld [vmem:[%s1567_s0 + $0x28] sm:$0xff]  }
   0x5   :  { %v1246_v13 = vld [vmem:[%s1567_s0 + $0x90] sm:$0xff]   ;;  %v1248_v15 = vld [vmem:[%s1567_s0 + $0x98] sm:$0xff]   ;;  %v1250_v17 = vld [vmem:[%s1567_s0 + $0xa0] sm:$0xff]  }
   0x6   :  { %1131 = vmatmul.mubr.msk.bf16.vlgmr.msra.gmra.mrb[0].mxu0 %vm202_vm1, %v1235_v2  ;;  %1183 = vmatmul.mubr.msk.bf16.vlgmr.msra.gmra.mrb[0].mxu1 %vm202_vm1, %v1236_v3  ;;  %v1247_v14 = vld [vmem:[%s1567_s0 + $0x30] sm:$0xff]   ;;  %v1249_v16 = vld [vmem:[%s1567_s0 + $0x38] sm:$0xff]   ;;  %v1251_v18 = vld [vmem:[%s1567_s0 + $0x40] sm:$0xff]  }
   0x7   :  { %1134 = vmatprep.mubr.msk.bf16.mxu0 %vm1261_vm0, %v1260_v0  ;;  %1186 = vmatprep.mubr.msk.bf16.mxu1 %vm1261_vm0, %v1260_v0  ;;  %v1252_v19 = vld [vmem:[%s1567_s0 + $0xa8] sm:$0xff]   ;;  %v1254_v21 = vld [vmem:[%s1567_s0 + $0xb0] sm:$0xff]   ;;  %v1256_v23 = vld [vmem:[%s1567_s0 + $0xb8] sm:$0xff]  }
   0x8   :  { %v1253_v20 = vld [vmem:[%s1567_s0 + $0x48] sm:$0xff]   ;;  %v1255_v22 = vld [vmem:[%s1567_s0 + $0x50] sm:$0xff]   ;;  %v1257_v24 = vld [vmem:[%s1567_s0 + $0x58] sm:$0xff]  }
   0x9   :  { %v1258_v25 = vld [vmem:[%s1567_s0 + $0xc0] ss:$0 sps:$4 sm:$0xff]  }
   0xa   :  { %v1259_v26 = vld [vmem:[%s1567_s0 + $0x60] sm:$0xff]  }
   0xb   :  { %v1440_v27 = vld [vmem:[%s1568_s2] ss:$0 sm:$0xff] }
   0xe   :  { %1135 = vmatmul.mubr.msk.bf16.gmra.mrb[4].mxu0 %vm202_vm1, %v1237_v4  ;;  %1187 = vmatmul.mubr.msk.bf16.gmra.mrb[4].mxu1 %vm202_vm1, %v1238_v5 }
   0xf   :  { %1138 = vmatprep.mubr.msk.bf16.mxu0 %vm1261_vm0, %v1260_v0  ;;  %1190 = vmatprep.mubr.msk.bf16.mxu1 %vm1261_vm0, %v1260_v0 }
  0x16   :  { %1139 = vmatmul.mubr.msk.bf16.gmra.mrb[8].mxu0 %vm202_vm1, %v1239_v6  ;;  %1191 = vmatmul.mubr.msk.bf16.gmra.mrb[8].mxu1 %vm202_vm1, %v1240_v7 }
  0x17   :  { %1142 = vmatprep.mubr.msk.bf16.mxu0 %vm1261_vm0, %v1260_v0  ;;  %1194 = vmatprep.mubr.msk.bf16.mxu1 %vm1261_vm0, %v1260_v0 }
  0x1e   :  { %1143 = vmatmul.mubr.msk.bf16.gmra.mrb[12].mxu0 %vm202_vm1, %v1241_v8  ;;  %1195 = vmatmul.mubr.msk.bf16.gmra.mrb[12].mxu1 %vm202_vm1, %v1242_v9 }
  0x1f   :  { %1146 = vmatprep.mubr.msk.bf16.mxu0 %vm1261_vm0, %v1260_v0  ;;  %1198 = vmatprep.mubr.msk.bf16.mxu1 %vm1261_vm0, %v1260_v0 }
  0x26   :  { %1147 = vmatmul.mubr.msk.bf16.gmra.mrb[16].mxu0 %vm202_vm1, %v1243_v10  ;;  %1199 = vmatmul.mubr.msk.bf16.gmra.mrb[16].mxu1 %vm202_vm1, %v1244_v11 }
  0x27   :  { %1150 = vmatprep.mubr.msk.bf16.mxu0 %vm1261_vm0, %v1260_v0  ;;  %1202 = vmatprep.mubr.msk.bf16.mxu1 %vm1261_vm0, %v1260_v0 }
  0x2e   :  { %1151 = vmatmul.mubr.msk.bf16.gmra.mrb[20].mxu0 %vm202_vm1, %v1245_v12  ;;  %1203 = vmatmul.mubr.msk.bf16.gmra.mrb[20].mxu1 %vm202_vm1, %v1246_v13 }
  0x2f   :  { %1154 = vmatprep.mubr.msk.bf16.mxu0 %vm1261_vm0, %v1260_v0  ;;  %1206 = vmatprep.mubr.msk.bf16.mxu1 %vm1261_vm0, %v1260_v0 }
  0x36   :  { %1155 = vmatmul.mubr.msk.bf16.gmra.mrb[24].mxu0 %vm202_vm1, %v1247_v14  ;;  %1207 = vmatmul.mubr.msk.bf16.gmra.mrb[24].mxu1 %vm202_vm1, %v1248_v15 }
  0x37   :  { %1158 = vmatprep.mubr.msk.bf16.mxu0 %vm1261_vm0, %v1260_v0  ;;  %1210 = vmatprep.mubr.msk.bf16.mxu1 %vm1261_vm0, %v1260_v0 }
  0x3e   :  { %1159 = vmatmul.mubr.msk.bf16.gmra.mrb[28].mxu0 %vm202_vm1, %v1249_v16  ;;  %1211 = vmatmul.mubr.msk.bf16.gmra.mrb[28].mxu1 %vm202_vm1, %v1250_v17 }
  0x3f   :  { %1162 = vmatprep.mubr.msk.bf16.mxu0 %vm1261_vm0, %v1260_v0  ;;  %1214 = vmatprep.mubr.msk.bf16.mxu1 %vm1261_vm0, %v1260_v0 }
  0x46   :  { %1163 = vmatmul.mubr.msk.bf16.gmra.mrb[32].mxu0 %vm202_vm1, %v1251_v18  ;;  %1215 = vmatmul.mubr.msk.bf16.gmra.mrb[32].mxu1 %vm202_vm1, %v1252_v19 }
  0x47   :  { %1166 = vmatprep.mubr.msk.bf16.mxu0 %vm1261_vm0, %v1260_v0  ;;  %1218 = vmatprep.mubr.msk.bf16.mxu1 %vm1261_vm0, %v1260_v0 }
  0x4e   :  { %1167 = vmatmul.mubr.msk.bf16.gmra.mrb[36].mxu0 %vm202_vm1, %v1253_v20  ;;  %1219 = vmatmul.mubr.msk.bf16.gmra.mrb[36].mxu1 %vm202_vm1, %v1254_v21 }
  0x4f   :  { %1170 = vmatprep.mubr.msk.bf16.mxu0 %vm1261_vm0, %v1260_v0  ;;  %1222 = vmatprep.mubr.msk.bf16.mxu1 %vm1261_vm0, %v1260_v0 }
  0x56   :  { %1171 = vmatmul.mubr.msk.bf16.gmra.mrb[40].mxu0 %vm202_vm1, %v1255_v22  ;;  %1223 = vmatmul.mubr.msk.bf16.gmra.mrb[40].mxu1 %vm202_vm1, %v1256_v23 }
  0x57   :  { %1174 = vmatprep.mubr.msk.bf16.mxu0 %vm1261_vm0, %v1260_v0  ;;  %1226 = vmatprep.mubr.msk.bf16.mxu1 %vm1261_vm0, %v1260_v0 }
  0x5e   :  { %1175 = vmatmul.mubr.msk.bf16.gmra.mrb[44].mxu0 %vm202_vm1, %v1257_v24  ;;  %1227 = vmatmul.mubr.msk.bf16.gmra.mrb[44].mxu1 %vm202_vm1, %v1258_v25 }
  0x5f   :  { %1178 = vmatprep.mubr.msk.bf16.mxu0 %vm1261_vm0, %v1260_v0 }
  0x66   :  { %1179 = vmatmul.mubr.msk.bf16.gmra.mrb[48].mxu0 %vm202_vm1, %v1259_v26 }
  0xd9   :  { %v312_v28 = vpop.f32.mrb[0].mxu0  ;;  %v416_v29 = vpop.f32.mrb[0].mxu1 }
  0xda   :  { %v313_v30 = vadd.f32 %v1440_v27, %v312_v28  ;;  %v1132_v31 = vpop.f32.mrb[1].mxu0  ;;  %v417_v32 = vadd.f32 %v1440_v27, %v416_v29  ;;  %v1184_v33 = vpop.f32.mrb[1].mxu1 }
  0xdb   :  { %v315_v34 = vpop.f32.mrb[2].mxu0  ;;  %v419_v35 = vpop.f32.mrb[2].mxu1 }
  0xdc   :  { %v316_v36 = vadd.f32 %v1440_v27, %v315_v34  ;;  %v1133_v37 = vpop.f32.mrb[3].mxu0  ;;  %v536_v38 = vmax.f32 %v417_v32, 0.0  ;;  %v420_v39 = vadd.f32 %v1440_v27, %v419_v35  ;;  %v1185_v40 = vpop.f32.mrb[3].mxu1  ;;  %v510_v41 = vmax.f32 %v313_v30, 0.0 }
  0xde   :  { %v511_v42 = vmax.f32 %v316_v36, 0.0  ;;  %v537_v43 = vmax.f32 %v420_v39, 0.0 }
  0xe0   :  { %v962_v44 = vpack.c.bf16 %v511_v42, %v510_v41  ;;  %v1027_v45 = vpack.c.bf16 %v537_v43, %v536_v38 }
  0xe1   :  { %v320_v46 = vpop.f32.mrb[4].mxu0  ;;  %v424_v47 = vpop.f32.mrb[4].mxu1 }
  0xe2   :  { %963 = vst [vmem:[%s1569_s3] sm:$0xff] %v962_v44   ;;  %v321_v48 = vadd.f32 %v1440_v27, %v320_v46  ;;  %v1136_v49 = vpop.f32.mrb[5].mxu0  ;;  %1091 = vst [vmem:[%s1569_s3 + $0x68] sm:$0xff] %v1027_v45   ;;  %v425_v50 = vadd.f32 %v1440_v27, %v424_v47  ;;  %v1188_v51 = vpop.f32.mrb[5].mxu1 }
  0xe3   :  { %v323_v52 = vpop.f32.mrb[6].mxu0  ;;  %v427_v53 = vpop.f32.mrb[6].mxu1 }
  0xe4   :  { %v324_v54 = vadd.f32 %v1440_v27, %v323_v52  ;;  %v1137_v55 = vpop.f32.mrb[7].mxu0  ;;  %v538_v56 = vmax.f32 %v425_v50, 0.0  ;;  %v428_v57 = vadd.f32 %v1440_v27, %v427_v53  ;;  %v1189_v58 = vpop.f32.mrb[7].mxu1  ;;  %v512_v59 = vmax.f32 %v321_v48, 0.0 }
  0xe6   :  { %v513_v60 = vmax.f32 %v324_v54, 0.0  ;;  %v539_v61 = vmax.f32 %v428_v57, 0.0 }
  0xe8   :  { %v967_v62 = vpack.c.bf16 %v513_v60, %v512_v59  ;;  %v1032_v63 = vpack.c.bf16 %v539_v61, %v538_v56 }
  0xe9   :  { %v328_v0 = vpop.f32.mrb[8].mxu0  ;;  %v432_v1 = vpop.f32.mrb[8].mxu1 }
  0xea   :  { %1079 = vst [vmem:[%s1569_s3 + $0x8] sm:$0xff] %v967_v62   ;;  %v329_v2 = vadd.f32 %v1440_v27, %v328_v0  ;;  %v1140_v3 = vpop.f32.mrb[9].mxu0  ;;  %1092 = vst [vmem:[%s1569_s3 + $0x70] sm:$0xff] %v1032_v63   ;;  %v433_v4 = vadd.f32 %v1440_v27, %v432_v1  ;;  %v1192_v5 = vpop.f32.mrb[9].mxu1 }
  0xeb   :  { %v331_v6 = vpop.f32.mrb[10].mxu0  ;;  %v435_v7 = vpop.f32.mrb[10].mxu1 }
  0xec   :  { %v332_v8 = vadd.f32 %v1440_v27, %v331_v6  ;;  %v1141_v9 = vpop.f32.mrb[11].mxu0  ;;  %v540_v10 = vmax.f32 %v433_v4, 0.0  ;;  %v436_v11 = vadd.f32 %v1440_v27, %v435_v7  ;;  %v1193_v12 = vpop.f32.mrb[11].mxu1  ;;  %v514_v13 = vmax.f32 %v329_v2, 0.0 }
  0xee   :  { %v515_v14 = vmax.f32 %v332_v8, 0.0  ;;  %v541_v15 = vmax.f32 %v436_v11, 0.0 }
  0xf0   :  { %v972_v16 = vpack.c.bf16 %v515_v14, %v514_v13  ;;  %v1037_v17 = vpack.c.bf16 %v541_v15, %v540_v10 }
  0xf1   :  { %v336_v18 = vpop.f32.mrb[12].mxu0  ;;  %v440_v19 = vpop.f32.mrb[12].mxu1 }
  0xf2   :  { %1080 = vst [vmem:[%s1569_s3 + $0x10] sm:$0xff] %v972_v16   ;;  %v337_v20 = vadd.f32 %v1440_v27, %v336_v18  ;;  %v1144_v21 = vpop.f32.mrb[13].mxu0  ;;  %1093 = vst [vmem:[%s1569_s3 + $0x78] sm:$0xff] %v1037_v17   ;;  %v441_v22 = vadd.f32 %v1440_v27, %v440_v19  ;;  %v1196_v23 = vpop.f32.mrb[13].mxu1 }
  0xf3   :  { %v339_v24 = vpop.f32.mrb[14].mxu0  ;;  %v443_v25 = vpop.f32.mrb[14].mxu1 }
  0xf4   :  { %v340_v26 = vadd.f32 %v1440_v27, %v339_v24  ;;  %v1145_v28 = vpop.f32.mrb[15].mxu0  ;;  %v542_v29 = vmax.f32 %v441_v22, 0.0  ;;  %v444_v30 = vadd.f32 %v1440_v27, %v443_v25  ;;  %v1197_v31 = vpop.f32.mrb[15].mxu1  ;;  %v516_v32 = vmax.f32 %v337_v20, 0.0 }
  0xf6   :  { %v517_v33 = vmax.f32 %v340_v26, 0.0  ;;  %v543_v34 = vmax.f32 %v444_v30, 0.0 }
  0xf8   :  { %v977_v35 = vpack.c.bf16 %v517_v33, %v516_v32  ;;  %v1042_v36 = vpack.c.bf16 %v543_v34, %v542_v29 }
  0xf9   :  { %v344_v37 = vpop.f32.mrb[16].mxu0  ;;  %v448_v38 = vpop.f32.mrb[16].mxu1 }
  0xfa   :  { %1081 = vst [vmem:[%s1569_s3 + $0x18] sm:$0xff] %v977_v35   ;;  %v345_v39 = vadd.f32 %v1440_v27, %v344_v37  ;;  %v1148_v40 = vpop.f32.mrb[17].mxu0  ;;  %1094 = vst [vmem:[%s1569_s3 + $0x80] sm:$0xff] %v1042_v36   ;;  %v449_v41 = vadd.f32 %v1440_v27, %v448_v38  ;;  %v1200_v42 = vpop.f32.mrb[17].mxu1 }
  0xfb   :  { %v347_v43 = vpop.f32.mrb[18].mxu0  ;;  %v451_v44 = vpop.f32.mrb[18].mxu1 }
  0xfc   :  { %v348_v45 = vadd.f32 %v1440_v27, %v347_v43  ;;  %v1149_v46 = vpop.f32.mrb[19].mxu0  ;;  %v544_v47 = vmax.f32 %v449_v41, 0.0  ;;  %v452_v48 = vadd.f32 %v1440_v27, %v451_v44  ;;  %v1201_v49 = vpop.f32.mrb[19].mxu1  ;;  %v518_v50 = vmax.f32 %v345_v39, 0.0 }
  0xfe   :  { %v519_v51 = vmax.f32 %v348_v45, 0.0  ;;  %v545_v52 = vmax.f32 %v452_v48, 0.0 }
 0x100   :  { %v982_v53 = vpack.c.bf16 %v519_v51, %v518_v50  ;;  %v1047_v54 = vpack.c.bf16 %v545_v52, %v544_v47 }
 0x101   :  { %v352_v55 = vpop.f32.mrb[20].mxu0  ;;  %v456_v56 = vpop.f32.mrb[20].mxu1 }
 0x102   :  { %1082 = vst [vmem:[%s1569_s3 + $0x20] sm:$0xff] %v982_v53   ;;  %v353_v57 = vadd.f32 %v1440_v27, %v352_v55  ;;  %v1152_v58 = vpop.f32.mrb[21].mxu0  ;;  %1095 = vst [vmem:[%s1569_s3 + $0x88] sm:$0xff] %v1047_v54   ;;  %v457_v59 = vadd.f32 %v1440_v27, %v456_v56  ;;  %v1204_v60 = vpop.f32.mrb[21].mxu1 }
 0x103   :  { %v355_v61 = vpop.f32.mrb[22].mxu0  ;;  %v459_v62 = vpop.f32.mrb[22].mxu1 }
 0x104   :  { %v356_v63 = vadd.f32 %v1440_v27, %v355_v61  ;;  %v1153_v0 = vpop.f32.mrb[23].mxu0  ;;  %v546_v1 = vmax.f32 %v457_v59, 0.0  ;;  %v460_v2 = vadd.f32 %v1440_v27, %v459_v62  ;;  %v1205_v3 = vpop.f32.mrb[23].mxu1  ;;  %v520_v4 = vmax.f32 %v353_v57, 0.0 }
 0x106   :  { %v521_v5 = vmax.f32 %v356_v63, 0.0  ;;  %v547_v6 = vmax.f32 %v460_v2, 0.0 }
 0x108   :  { %v987_v7 = vpack.c.bf16 %v521_v5, %v520_v4  ;;  %v1052_v8 = vpack.c.bf16 %v547_v6, %v546_v1 }
 0x109   :  { %v360_v9 = vpop.f32.mrb[24].mxu0  ;;  %v464_v10 = vpop.f32.mrb[24].mxu1 }
 0x10a   :  { %1083 = vst [vmem:[%s1569_s3 + $0x28] sm:$0xff] %v987_v7   ;;  %v361_v11 = vadd.f32 %v1440_v27, %v360_v9  ;;  %v1156_v12 = vpop.f32.mrb[25].mxu0  ;;  %1096 = vst [vmem:[%s1569_s3 + $0x90] sm:$0xff] %v1052_v8   ;;  %v465_v13 = vadd.f32 %v1440_v27, %v464_v10  ;;  %v1208_v14 = vpop.f32.mrb[25].mxu1 }
 0x10b   :  { %v363_v15 = vpop.f32.mrb[26].mxu0  ;;  %v467_v16 = vpop.f32.mrb[26].mxu1 }
 0x10c   :  { %v364_v17 = vadd.f32 %v1440_v27, %v363_v15  ;;  %v1157_v18 = vpop.f32.mrb[27].mxu0  ;;  %v548_v19 = vmax.f32 %v465_v13, 0.0  ;;  %v468_v20 = vadd.f32 %v1440_v27, %v467_v16  ;;  %v1209_v21 = vpop.f32.mrb[27].mxu1  ;;  %v522_v22 = vmax.f32 %v361_v11, 0.0 }
 0x10e   :  { %v523_v23 = vmax.f32 %v364_v17, 0.0  ;;  %v549_v24 = vmax.f32 %v468_v20, 0.0 }
 0x110   :  { %v992_v25 = vpack.c.bf16 %v523_v23, %v522_v22  ;;  %v1057_v26 = vpack.c.bf16 %v549_v24, %v548_v19 }
 0x111   :  { %v368_v28 = vpop.f32.mrb[28].mxu0  ;;  %v472_v29 = vpop.f32.mrb[28].mxu1 }
 0x112   :  { %1084 = vst [vmem:[%s1569_s3 + $0x30] sm:$0xff] %v992_v25   ;;  %v369_v30 = vadd.f32 %v1440_v27, %v368_v28  ;;  %v1160_v31 = vpop.f32.mrb[29].mxu0  ;;  %1097 = vst [vmem:[%s1569_s3 + $0x98] sm:$0xff] %v1057_v26   ;;  %v473_v32 = vadd.f32 %v1440_v27, %v472_v29  ;;  %v1212_v33 = vpop.f32.mrb[29].mxu1 }
 0x113   :  { %v371_v34 = vpop.f32.mrb[30].mxu0  ;;  %v475_v35 = vpop.f32.mrb[30].mxu1 }
 0x114   :  { %v372_v36 = vadd.f32 %v1440_v27, %v371_v34  ;;  %v1161_v37 = vpop.f32.mrb[31].mxu0  ;;  %v550_v38 = vmax.f32 %v473_v32, 0.0  ;;  %v476_v39 = vadd.f32 %v1440_v27, %v475_v35  ;;  %v1213_v40 = vpop.f32.mrb[31].mxu1  ;;  %v524_v41 = vmax.f32 %v369_v30, 0.0 }
 0x116   :  { %v525_v42 = vmax.f32 %v372_v36, 0.0  ;;  %v551_v43 = vmax.f32 %v476_v39, 0.0 }
 0x118   :  { %v997_v44 = vpack.c.bf16 %v525_v42, %v524_v41  ;;  %v1062_v45 = vpack.c.bf16 %v551_v43, %v550_v38 }
 0x119   :  { %v376_v46 = vpop.f32.mrb[32].mxu0  ;;  %v480_v47 = vpop.f32.mrb[32].mxu1 }
 0x11a   :  { %1085 = vst [vmem:[%s1569_s3 + $0x38] sm:$0xff] %v997_v44   ;;  %v377_v48 = vadd.f32 %v1440_v27, %v376_v46  ;;  %v1164_v49 = vpop.f32.mrb[33].mxu0  ;;  %1098 = vst [vmem:[%s1569_s3 + $0xa0] sm:$0xff] %v1062_v45   ;;  %v481_v50 = vadd.f32 %v1440_v27, %v480_v47  ;;  %v1216_v51 = vpop.f32.mrb[33].mxu1 }
 0x11b   :  { %v379_v52 = vpop.f32.mrb[34].mxu0  ;;  %v483_v53 = vpop.f32.mrb[34].mxu1 }
 0x11c   :  { %v380_v54 = vadd.f32 %v1440_v27, %v379_v52  ;;  %v1165_v55 = vpop.f32.mrb[35].mxu0  ;;  %v552_v56 = vmax.f32 %v481_v50, 0.0  ;;  %v484_v57 = vadd.f32 %v1440_v27, %v483_v53  ;;  %v1217_v58 = vpop.f32.mrb[35].mxu1  ;;  %v526_v59 = vmax.f32 %v377_v48, 0.0 }
 0x11e   :  { %v527_v60 = vmax.f32 %v380_v54, 0.0  ;;  %v553_v61 = vmax.f32 %v484_v57, 0.0 }
 0x120   :  { %v1002_v62 = vpack.c.bf16 %v527_v60, %v526_v59  ;;  %v1067_v63 = vpack.c.bf16 %v553_v61, %v552_v56 }
 0x121   :  { %v384_v0 = vpop.f32.mrb[36].mxu0  ;;  %v488_v1 = vpop.f32.mrb[36].mxu1 }
 0x122   :  { %1086 = vst [vmem:[%s1569_s3 + $0x40] sm:$0xff] %v1002_v62   ;;  %v385_v2 = vadd.f32 %v1440_v27, %v384_v0  ;;  %v1168_v3 = vpop.f32.mrb[37].mxu0  ;;  %1099 = vst [vmem:[%s1569_s3 + $0xa8] sm:$0xff] %v1067_v63   ;;  %v489_v4 = vadd.f32 %v1440_v27, %v488_v1  ;;  %v1220_v5 = vpop.f32.mrb[37].mxu1 }
 0x123   :  { %v387_v6 = vpop.f32.mrb[38].mxu0  ;;  %v491_v7 = vpop.f32.mrb[38].mxu1 }
 0x124   :  { %v388_v8 = vadd.f32 %v1440_v27, %v387_v6  ;;  %v1169_v9 = vpop.f32.mrb[39].mxu0  ;;  %v554_v10 = vmax.f32 %v489_v4, 0.0  ;;  %v492_v11 = vadd.f32 %v1440_v27, %v491_v7  ;;  %v1221_v12 = vpop.f32.mrb[39].mxu1  ;;  %v528_v13 = vmax.f32 %v385_v2, 0.0 }
 0x126   :  { %v529_v14 = vmax.f32 %v388_v8, 0.0  ;;  %v555_v15 = vmax.f32 %v492_v11, 0.0 }
 0x128   :  { %v1007_v16 = vpack.c.bf16 %v529_v14, %v528_v13  ;;  %v1072_v17 = vpack.c.bf16 %v555_v15, %v554_v10 }
 0x129   :  { %v392_v18 = vpop.f32.mrb[40].mxu0  ;;  %v496_v19 = vpop.f32.mrb[40].mxu1 }
 0x12a   :  { %1087 = vst [vmem:[%s1569_s3 + $0x48] sm:$0xff] %v1007_v16   ;;  %v393_v20 = vadd.f32 %v1440_v27, %v392_v18  ;;  %v1172_v21 = vpop.f32.mrb[41].mxu0  ;;  %1100 = vst [vmem:[%s1569_s3 + $0xb0] sm:$0xff] %v1072_v17   ;;  %v497_v22 = vadd.f32 %v1440_v27, %v496_v19  ;;  %v1224_v23 = vpop.f32.mrb[41].mxu1 }
 0x12b   :  { %v395_v24 = vpop.f32.mrb[42].mxu0  ;;  %v499_v25 = vpop.f32.mrb[42].mxu1 }
 0x12c   :  { %v396_v26 = vadd.f32 %v1440_v27, %v395_v24  ;;  %v1173_v28 = vpop.f32.mrb[43].mxu0  ;;  %v556_v29 = vmax.f32 %v497_v22, 0.0  ;;  %v500_v30 = vadd.f32 %v1440_v27, %v499_v25  ;;  %v1225_v31 = vpop.f32.mrb[43].mxu1  ;;  %v530_v32 = vmax.f32 %v393_v20, 0.0 }
 0x12e   :  { %v531_v33 = vmax.f32 %v396_v26, 0.0  ;;  %v557_v34 = vmax.f32 %v500_v30, 0.0 }
 0x130   :  { %v1012_v35 = vpack.c.bf16 %v531_v33, %v530_v32  ;;  %v1077_v36 = vpack.c.bf16 %v557_v34, %v556_v29 }
 0x131   :  { %v400_v37 = vpop.f32.mrb[44].mxu0  ;;  %v504_v38 = vpop.f32.mrb[44].mxu1 }
 0x132   :  { %1088 = vst [vmem:[%s1569_s3 + $0x50] sm:$0xff] %v1012_v35   ;;  %v401_v39 = vadd.f32 %v1440_v27, %v400_v37  ;;  %v1176_v40 = vpop.f32.mrb[45].mxu0  ;;  %1101 = vst [vmem:[%s1569_s3 + $0xb8] sm:$0xff] %v1077_v36   ;;  %v505_v41 = vadd.f32 %v1440_v27, %v504_v38  ;;  %v1228_v42 = vpop.f32.mrb[45].mxu1 }
 0x133   :  { %v403_v43 = vpop.f32.mrb[46].mxu0  ;;  %v507_v44 = vpop.f32.mrb[46].mxu1 }
 0x134   :  { %v404_v45 = vadd.f32 %v1440_v27, %v403_v43  ;;  %v1177_v46 = vpop.f32.mrb[47].mxu0  ;;  %v558_v47 = vmax.f32 %v505_v41, 0.0  ;;  %v1229_v48 = vpop.f32.mrb[47].mxu1  ;;  %v532_v49 = vmax.f32 %v401_v39, 0.0 }
 0x136   :  { %v533_v50 = vmax.f32 %v404_v45, 0.0  ;;  %v958_v51 = vpack.c.bf16 %v558_v47, %v558_v47 }
 0x138   :  { %v1017_v52 = vpack.c.bf16 %v533_v50, %v532_v49  ;;  %804 = vst [vmem:[%s1569_s3 + $0xc0] sm:$0xf] %v958_v51 }
 0x139   :  { %v408_v53 = vpop.f32.mrb[48].mxu0 }
 0x13a   :  { %1089 = vst [vmem:[%s1569_s3 + $0x58] sm:$0xff] %v1017_v52   ;;  %v409_v54 = vadd.f32 %v1440_v27, %v408_v53  ;;  %v1180_v55 = vpop.f32.mrb[49].mxu0 }
 0x13b   :  { %v411_v56 = vpop.f32.mrb[50].mxu0 }
 0x13c   :  { %v412_v57 = vadd.f32 %v1440_v27, %v411_v56  ;;  %v1181_v58 = vpop.f32.mrb[51].mxu0  ;;  %v534_v59 = vmax.f32 %v409_v54, 0.0 }
 0x13e   :  { %v535_v60 = vmax.f32 %v412_v57, 0.0 }
 0x140   :  { %v1022_v61 = vpack.c.bf16 %v535_v60, %v534_v59 }
 0x142   :  { %1090 = vst [vmem:[%s1569_s3 + $0x60] sm:$0xff] %v1022_v61  }

// kernel: autoencoder_forward.8
= control target key start
LH: loop header
LB: loop body
LE: loop exit
PB: predicated region body
PF: predicated region fallthrough
CT: control target
= control target key end

     0   :  { %v456_v0 = vmov 0.0   ;;  %vm457_vm0 = vmmov 0   ;;  %vm126_vm1 = vcmask 1043456   ;;  %vm104_vm2 = vcmask 588800   ;;  %s567_s1 = inlined_call_operand.vmem [shape: bf16[72,128], index: 1, kind: input, shape index: {}]   ;;  %s568_s0 = inlined_call_operand.vmem [shape: bf16[104,72], index: 0, kind: input, shape index: {}]   ;;  %s569_s2 = inlined_call_operand.vmem [shape: f32[1,128], index: 2, kind: input, shape index: {}]   ;;  %s570_s3 = inlined_call_operand.vmem [shape: bf16[104,128], index: 3, kind: output, shape index: {}]  }
   0x1   :  { %394 = vmatprep.subr.bf16.mxu0 %v456_v0  ;;  %v444_v1 = vld [vmem:[%s567_s1] sm:$0xff]   ;;  %432 = vmatprep.subr.bf16.mxu1 %v456_v0  ;;  %v445_v2 = vld [vmem:[%s567_s1 + $0x8] sm:$0xff]   ;;  %v446_v3 = vld [vmem:[%s567_s1 + $0x10] sm:$0xff]  }
   0x2   :  { %404 = vmatprep.mubr.msk.bf16.mxu0 %vm457_vm0, %v456_v0  ;;  %420 = vmatprep.mubr.msk.bf16.mxu1 %vm457_vm0, %v456_v0  ;;  %v447_v4 = vld [vmem:[%s567_s1 + $0x18] sm:$0xff]   ;;  %v448_v5 = vld [vmem:[%s567_s1 + $0x20] ss:$0 sps:$4 sm:$0xff]   ;;  %v451_v9 = vld [vmem:[%s568_s0 + $0x8] sm:$0xff]  }
   0x3   :  { %395 = vmatpush3.bf16.msra.mxu0 %v444_v1  ;;  %437 = vmatpush3.bf16.msra.mxu1 %v444_v1  ;;  %v128_v6 = vsel %vm126_vm1, %v448_v5, 0  ;;  %v449_v7 = vld [vmem:[%s568_s0] sm:$0xff]   ;;  %v452_v10 = vld [vmem:[%s568_s0 + $0x28] sm:$0xff]   ;;  %v453_v11 = vld [vmem:[%s568_s0 + $0x10] sm:$0xff]  }
   0x4   :  { %396 = vmatprep.subr.bf16.mxu0 %v456_v0  ;;  %433 = vmatprep.subr.bf16.mxu1 %v456_v0  ;;  %v450_v8 = vld [vmem:[%s568_s0 + $0x20] sm:$0xff]   ;;  %v454_v12 = vld [vmem:[%s568_s0 + $0x30] ss:$0 sps:$4 sm:$0xff]   ;;  %v455_v13 = vld [vmem:[%s568_s0 + $0x18] sm:$0xff]  }
   0x5   :  { %v531_v14 = vld [vmem:[%s569_s2] ss:$0 sm:$0xff] }
   0x7   :  { %397 = vmatpush3.bf16.msra.mxu0 %v445_v2  ;;  %438 = vmatpush3.bf16.msra.mxu1 %v445_v2 }
   0x8   :  { %398 = vmatprep.subr.bf16.mxu0 %v456_v0  ;;  %434 = vmatprep.subr.bf16.mxu1 %v456_v0 }
   0xb   :  { %399 = vmatpush3.bf16.msra.mxu0 %v446_v3  ;;  %439 = vmatpush3.bf16.msra.mxu1 %v446_v3 }
   0xc   :  { %400 = vmatprep.subr.bf16.mxu0 %v456_v0  ;;  %435 = vmatprep.subr.bf16.mxu1 %v456_v0 }
   0xf   :  { %401 = vmatpush3.bf16.msra.mxu0 %v447_v4  ;;  %440 = vmatpush3.bf16.msra.mxu1 %v447_v4 }
  0x10   :  { %402 = vmatprep.subr.bf16.mxu0 %v456_v0  ;;  %436 = vmatprep.subr.bf16.mxu1 %v456_v0 }
  0x13   :  { %403 = vmatpush3.bf16.msra.mxu0 %v128_v6  ;;  %441 = vmatpush3.bf16.msra.mxu1 %v128_v6 }
  0x16   :  { %405 = vmatmul.mubr.msk.bf16.vlgmr.msra.gmra.mrb[0].mxu0 %vm104_vm2, %v449_v7  ;;  %421 = vmatmul.mubr.msk.bf16.vlgmr.msra.gmra.mrb[0].mxu1 %vm104_vm2, %v450_v8 }
  0x17   :  { %408 = vmatprep.mubr.msk.bf16.mxu0 %vm457_vm0, %v456_v0  ;;  %424 = vmatprep.mubr.msk.bf16.mxu1 %vm457_vm0, %v456_v0 }
  0x1e   :  { %409 = vmatmul.mubr.msk.bf16.gmra.mrb[4].mxu0 %vm104_vm2, %v451_v9  ;;  %425 = vmatmul.mubr.msk.bf16.gmra.mrb[4].mxu1 %vm104_vm2, %v452_v10 }
  0x1f   :  { %412 = vmatprep.mubr.msk.bf16.mxu0 %vm457_vm0, %v456_v0  ;;  %428 = vmatprep.mubr.msk.bf16.mxu1 %vm457_vm0, %v456_v0 }
  0x26   :  { %413 = vmatmul.mubr.msk.bf16.gmra.mrb[8].mxu0 %vm104_vm2, %v453_v11  ;;  %429 = vmatmul.mubr.msk.bf16.gmra.mrb[8].mxu1 %vm104_vm2, %v454_v12 }
  0x27   :  { %416 = vmatprep.mubr.msk.bf16.mxu0 %vm457_vm0, %v456_v0 }
  0x2e   :  { %417 = vmatmul.mubr.msk.bf16.gmra.mrb[12].mxu0 %vm104_vm2, %v455_v13 }
  0xe9   :  { %v164_v15 = vpop.f32.mrb[0].mxu0  ;;  %v196_v16 = vpop.f32.mrb[0].mxu1 }
  0xea   :  { %v165_v17 = vadd.f32 %v531_v14, %v164_v15  ;;  %v406_v18 = vpop.f32.mrb[1].mxu0  ;;  %v197_v19 = vadd.f32 %v531_v14, %v196_v16  ;;  %v422_v20 = vpop.f32.mrb[1].mxu1 }
  0xeb   :  { %v167_v21 = vpop.f32.mrb[2].mxu0  ;;  %v199_v22 = vpop.f32.mrb[2].mxu1 }
  0xec   :  { %v168_v23 = vadd.f32 %v531_v14, %v167_v21  ;;  %v407_v24 = vpop.f32.mrb[3].mxu0  ;;  %v226_v25 = vmax.f32 %v197_v19, 0.0  ;;  %v200_v26 = vadd.f32 %v531_v14, %v199_v22  ;;  %v423_v27 = vpop.f32.mrb[3].mxu1  ;;  %v218_v28 = vmax.f32 %v165_v17, 0.0 }
  0xee   :  { %v219_v29 = vmax.f32 %v168_v23, 0.0  ;;  %v227_v30 = vmax.f32 %v200_v26, 0.0 }
  0xf0   :  { %v350_v31 = vpack.c.bf16 %v219_v29, %v218_v28  ;;  %v370_v32 = vpack.c.bf16 %v227_v30, %v226_v25 }
  0xf1   :  { %v172_v33 = vpop.f32.mrb[4].mxu0  ;;  %v204_v34 = vpop.f32.mrb[4].mxu1 }
  0xf2   :  { %351 = vst [vmem:[%s570_s3] sm:$0xff] %v350_v31   ;;  %v173_v35 = vadd.f32 %v531_v14, %v172_v33  ;;  %v410_v36 = vpop.f32.mrb[5].mxu0  ;;  %380 = vst [vmem:[%s570_s3 + $0x20] sm:$0xff] %v370_v32   ;;  %v205_v37 = vadd.f32 %v531_v14, %v204_v34  ;;  %v426_v38 = vpop.f32.mrb[5].mxu1 }
  0xf3   :  { %v175_v39 = vpop.f32.mrb[6].mxu0  ;;  %v207_v40 = vpop.f32.mrb[6].mxu1 }
  0xf4   :  { %v176_v41 = vadd.f32 %v531_v14, %v175_v39  ;;  %v411_v42 = vpop.f32.mrb[7].mxu0  ;;  %v228_v43 = vmax.f32 %v205_v37, 0.0  ;;  %v208_v44 = vadd.f32 %v531_v14, %v207_v40  ;;  %v427_v45 = vpop.f32.mrb[7].mxu1  ;;  %v220_v46 = vmax.f32 %v173_v35, 0.0 }
  0xf6   :  { %v221_v47 = vmax.f32 %v176_v41, 0.0  ;;  %v229_v48 = vmax.f32 %v208_v44, 0.0 }
  0xf8   :  { %v355_v49 = vpack.c.bf16 %v221_v47, %v220_v46  ;;  %v375_v50 = vpack.c.bf16 %v229_v48, %v228_v43 }
  0xf9   :  { %v180_v51 = vpop.f32.mrb[8].mxu0  ;;  %v212_v52 = vpop.f32.mrb[8].mxu1 }
  0xfa   :  { %377 = vst [vmem:[%s570_s3 + $0x8] sm:$0xff] %v355_v49   ;;  %v181_v53 = vadd.f32 %v531_v14, %v180_v51  ;;  %v414_v54 = vpop.f32.mrb[9].mxu0  ;;  %381 = vst [vmem:[%s570_s3 + $0x28] sm:$0xff] %v375_v50   ;;  %v213_v55 = vadd.f32 %v531_v14, %v212_v52  ;;  %v430_v56 = vpop.f32.mrb[9].mxu1 }
  0xfb   :  { %v183_v57 = vpop.f32.mrb[10].mxu0  ;;  %v215_v58 = vpop.f32.mrb[10].mxu1 }
  0xfc   :  { %v184_v59 = vadd.f32 %v531_v14, %v183_v57  ;;  %v415_v60 = vpop.f32.mrb[11].mxu0  ;;  %v230_v61 = vmax.f32 %v213_v55, 0.0  ;;  %v431_v62 = vpop.f32.mrb[11].mxu1  ;;  %v222_v63 = vmax.f32 %v181_v53, 0.0 }
  0xfe   :  { %v223_v0 = vmax.f32 %v184_v59, 0.0  ;;  %v346_v1 = vpack.c.bf16 %v230_v61, %v230_v61 }
 0x100   :  { %v360_v2 = vpack.c.bf16 %v223_v0, %v222_v63  ;;  %296 = vst [vmem:[%s570_s3 + $0x30] sm:$0xf] %v346_v1 }
 0x101   :  { %v188_v3 = vpop.f32.mrb[12].mxu0 }
 0x102   :  { %378 = vst [vmem:[%s570_s3 + $0x10] sm:$0xff] %v360_v2   ;;  %v189_v4 = vadd.f32 %v531_v14, %v188_v3  ;;  %v418_v5 = vpop.f32.mrb[13].mxu0 }
 0x103   :  { %v191_v6 = vpop.f32.mrb[14].mxu0 }
 0x104   :  { %v192_v7 = vadd.f32 %v531_v14, %v191_v6  ;;  %v419_v8 = vpop.f32.mrb[15].mxu0  ;;  %v224_v9 = vmax.f32 %v189_v4, 0.0 }
 0x106   :  { %v225_v10 = vmax.f32 %v192_v7, 0.0 }
 0x108   :  { %v365_v11 = vpack.c.bf16 %v225_v10, %v224_v9 }
 0x10a   :  { %379 = vst [vmem:[%s570_s3 + $0x18] sm:$0xff] %v365_v11  }

// kernel: autoencoder_forward.9
= control target key start
LH: loop header
LB: loop body
LE: loop exit
PB: predicated region body
PF: predicated region fallthrough
CT: control target
= control target key end

     0   :  { %v250_v0 = vmov 0   ;;  %vm112_vm0 = vcmask 130048   ;;  %s316_s1 = inlined_call_operand.vmem [shape: bf16[144,128], index: 1, kind: input, shape index: {}]   ;;  %s317_s0 = inlined_call_operand.vmem [shape: bf16[24,144], index: 0, kind: input, shape index: {}]   ;;  %s318_s2 = inlined_call_operand.vmem [shape: f32[1,128], index: 2, kind: input, shape index: {}]   ;;  %s319_s3 = inlined_call_operand.vmem [shape: bf16[24,128], index: 3, kind: output, shape index: {}]  }
   0x1   :  { %119 = vmatprep.subr.bf16.mxu0 %v250_v0  ;;  %217 = vmatprep.subr.bf16.mxu1 %v250_v0  ;;  %v236_v1 = vld [vmem:[%s316_s1] sm:$0xff]   ;;  %v237_v2 = vld [vmem:[%s316_s1 + $0x8] sm:$0xff]   ;;  %v238_v3 = vld [vmem:[%s316_s1 + $0x10] sm:$0xff]  }
   0x2   :  { %120 = vmatpush1.bf16.msra.mxu0 %v236_v1  ;;  %226 = vmatpush1.bf16.msra.mxu1 %v236_v1  ;;  %v239_v4 = vld [vmem:[%s316_s1 + $0x18] sm:$0xff]   ;;  %v247_v5 = vld [vmem:[%s317_s0 + $0x4] ss:$8 sps:$4 sm:$0xff]   ;;  %v17_v6 = vld [vmem:[%s317_s0 + $0x10] sm:$0xff] }
   0x3   :  { %121 = vmatprep.subr.bf16.mxu0 %v250_v0  ;;  %218 = vmatprep.subr.bf16.mxu1 %v250_v0  ;;  %v194_v7 = vcombine.high %v17_v6, %v17_v6  ;;  %v240_v8 = vld [vmem:[%s316_s1 + $0x20] sm:$0xff]   ;;  %v241_v9 = vld [vmem:[%s316_s1 + $0x28] sm:$0xff]   ;;  %v242_v10 = vld [vmem:[%s316_s1 + $0x30] sm:$0xff]   ;;  %v193_v14 = vcombine.low %v17_v6, %v17_v6 }
   0x4   :  { %204 = vmatprep.mubr.msk.bf16.mxu0 %vm112_vm0, %v247_v5  ;;  %v243_v11 = vld [vmem:[%s316_s1 + $0x38] sm:$0xff]   ;;  %v244_v12 = vld [vmem:[%s316_s1 + $0x40] sm:$0xff]  }
   0x5   :  { %205 = vmatprep.mubr.msk.bf16.mxu1 %vm112_vm0, %v194_v7  ;;  %v245_v13 = vld [vmem:[%s317_s0] ss:$8 sps:$4 sm:$0xff]  }
   0x6   :  { %122 = vmatpush1.bf16.msra.mxu0 %v237_v2  ;;  %227 = vmatpush1.bf16.msra.mxu1 %v237_v2  ;;  %v190_v15 = vld [vmem:[%s318_s2] ss:$0 sm:$0xff] }
   0x7   :  { %123 = vmatprep.subr.bf16.mxu0 %v250_v0  ;;  %219 = vmatprep.subr.bf16.mxu1 %v250_v0 }
   0xa   :  { %124 = vmatpush1.bf16.msra.mxu0 %v238_v3  ;;  %228 = vmatpush1.bf16.msra.mxu1 %v238_v3 }
   0xb   :  { %125 = vmatprep.subr.bf16.mxu0 %v250_v0  ;;  %220 = vmatprep.subr.bf16.mxu1 %v250_v0 }
   0xe   :  { %126 = vmatpush1.bf16.msra.mxu0 %v239_v4  ;;  %229 = vmatpush1.bf16.msra.mxu1 %v239_v4 }
   0xf   :  { %127 = vmatprep.subr.bf16.mxu0 %v250_v0  ;;  %221 = vmatprep.subr.bf16.mxu1 %v250_v0 }
  0x12   :  { %128 = vmatpush1.bf16.msra.mxu0 %v240_v8  ;;  %230 = vmatpush1.bf16.msra.mxu1 %v240_v8 }
  0x13   :  { %129 = vmatprep.subr.bf16.mxu0 %v250_v0  ;;  %222 = vmatprep.subr.bf16.mxu1 %v250_v0 }
  0x16   :  { %130 = vmatpush1.bf16.msra.mxu0 %v241_v9  ;;  %231 = vmatpush1.bf16.msra.mxu1 %v241_v9 }
  0x17   :  { %131 = vmatprep.subr.bf16.mxu0 %v250_v0  ;;  %223 = vmatprep.subr.bf16.mxu1 %v250_v0 }
  0x1a   :  { %132 = vmatpush1.bf16.msra.mxu0 %v242_v10  ;;  %232 = vmatpush1.bf16.msra.mxu1 %v242_v10 }
  0x1b   :  { %133 = vmatprep.subr.bf16.mxu0 %v250_v0  ;;  %224 = vmatprep.subr.bf16.mxu1 %v250_v0 }
  0x1e   :  { %134 = vmatpush1.bf16.msra.mxu0 %v243_v11  ;;  %233 = vmatpush1.bf16.msra.mxu1 %v243_v11 }
  0x1f   :  { %135 = vmatprep.subr.bf16.mxu0 %v250_v0  ;;  %225 = vmatprep.subr.bf16.mxu1 %v250_v0 }
  0x22   :  { %136 = vmatpush1.bf16.msra.mxu0 %v244_v12  ;;  %234 = vmatpush1.bf16.msra.mxu1 %v244_v12 }
  0x25   :  { %152 = vmatmul.mubr.bf16.vlgmr.msra.gmra.mrb[0].mxu0 %v245_v13  ;;  %160 = vmatmul.mubr.bf16.vlgmr.msra.gmra.mrb[0].mxu1 %v193_v14 }
  0xf8   :  { %v153_v16 = vpop.f32.mrb[0].mxu0  ;;  %v161_v17 = vpop.f32.mrb[0].mxu1 }
  0xf9   :  { %v154_v18 = vadd.f32 %v190_v15, %v153_v16  ;;  %v162_v19 = vadd.f32 %v190_v15, %v161_v17  ;;  %v155_v20 = vpop.f32.mrb[1].mxu0  ;;  %v163_v21 = vpop.f32.mrb[1].mxu1 }
  0xfa   :  { %v156_v22 = vpop.f32.mrb[2].mxu0  ;;  %v164_v23 = vpop.f32.mrb[2].mxu1 }
  0xfb   :  { %v169_v24 = vmax.f32 %v162_v19, 0.0  ;;  %v157_v25 = vadd.f32 %v190_v15, %v156_v22  ;;  %v158_v26 = vpop.f32.mrb[3].mxu0  ;;  %v165_v27 = vpop.f32.mrb[3].mxu1  ;;  %v167_v28 = vmax.f32 %v154_v18, 0.0 }
  0xfd   :  { %v211_v29 = vpack.c.bf16 %v169_v24, %v169_v24  ;;  %v168_v30 = vmax.f32 %v157_v25, 0.0 }
  0xff   :  { %185 = vst [vmem:[%s319_s3 + $0x8] sm:$0xf] %v211_v29  ;;  %v215_v31 = vpack.c.bf16 %v168_v30, %v167_v28 }
 0x101   :  { %216 = vst [vmem:[%s319_s3] sm:$0xff] %v215_v31  }

// kernel: autoencoder_forward.10
= control target key start
LH: loop header
LB: loop body
LE: loop exit
PB: predicated region body
PF: predicated region fallthrough
CT: control target
= control target key end

     0   :  { %v1048_v1 = vmov 0.0   ;;  %vm1049_vm0 = vmmov 0   ;;  %vm196_vm1 = vcmask 261120   ;;  %s1333_s1 = inlined_call_operand.vmem [shape: bf16[288,128], index: 1, kind: input, shape index: {}]   ;;  %s1334_s0 = inlined_call_operand.vmem [shape: bf16[8,288], index: 0, kind: input, shape index: {}]   ;;  %s1335_s3 = inlined_call_operand.vmem [shape: bf16[128,128], index: 3, kind: input, shape index: {}]   ;;  %s1336_s5 = inlined_call_operand.vmem [shape: bf16[128,128], index: 5, kind: input, shape index: {}]   ;;  %s1337_s2 = inlined_call_operand.vmem [shape: f32[1,128], index: 2, kind: input, shape index: {}]   ;;  %s1338_s7 = inlined_call_operand.vmem [shape: bf16[128,384], index: 7, kind: input, shape index: {}]   ;;  %s1339_s4 = inlined_call_operand.vmem [shape: f32[1,128], index: 4, kind: input, shape index: {}]   ;;  %s1340_s6 = inlined_call_operand.vmem [shape: f32[1,128], index: 6, kind: input, shape index: {}]   ;;  %s1341_s8 = inlined_call_operand.vmem [shape: f32[1,384], index: 8, kind: input, shape index: {}]   ;;  %s1342_s9 = inlined_call_operand.vmem [shape: bf16[8,384], index: 9, kind: output, shape index: {}]  }
   0x1   :  { %v979_v0 = vld [vmem:[%s1333_s1 + $0x40] sm:$0xff]   ;;  %908 = vmatprep.subr.bf16.mxu1 %v1048_v1  ;;  %912 = vmatprep.mubr.msk.bf16.mxu1 %vm1049_vm0, %v1048_v1  ;;  %v981_v3 = vld [vmem:[%s1333_s1 + $0x48] sm:$0xff]   ;;  %v983_v5 = vld [vmem:[%s1333_s1 + $0x50] sm:$0xff]  }
   0x2   :  { %v980_v2 = vld [vmem:[%s1333_s1] sm:$0xff]   ;;  %856 = vmatprep.subr.bf16.mxu0 %v979_v0  ;;  %v982_v4 = vld [vmem:[%s1333_s1 + $0x8] sm:$0xff]   ;;  %v984_v6 = vld [vmem:[%s1333_s1 + $0x10] sm:$0xff]  }
   0x3   :  { %857 = vmatpush3.bf16.msra.mxu0 %v980_v2  ;;  %v985_v7 = vld [vmem:[%s1333_s1 + $0x58] sm:$0xff]   ;;  %v987_v9 = vld [vmem:[%s1333_s1 + $0x60] sm:$0xff]   ;;  %v989_v12 = vld [vmem:[%s1333_s1 + $0x68] sm:$0xff]  }
   0x4   :  { %858 = vmatprep.subr.bf16.mxu0 %v981_v3  ;;  %v986_v8 = vld [vmem:[%s1333_s1 + $0x18] sm:$0xff]   ;;  %v993_v10 = vld [vmem:[%s1333_s1 + $0x80] sm:$0xff]   ;;  %v990_v13 = vld [vmem:[%s1333_s1 + $0x28] sm:$0xff]  }
   0x5   :  { %v988_v11 = vld [vmem:[%s1333_s1 + $0x20] sm:$0xff]   ;;  %909 = vmatpush3.bf16.msra.mxu1 %v993_v10  ;;  %v999_v16 = vld [vmem:[%s1333_s1 + $0x88] sm:$0xff]   ;;  %v991_v17 = vld [vmem:[%s1333_s1 + $0x70] sm:$0xff]  }
   0x6   :  { %910 = vmatprep.subr.bf16.mxu1 %v1048_v1  ;;  %v33_v14 = vld [vmem:[%s1334_s0] sm:$0xff]  ;;  %v998_v18 = vld [vmem:[%s1334_s0 + $0x8] ss:$0 sps:$4 sm:$0xff]   ;;  %v992_v19 = vld [vmem:[%s1333_s1 + $0x30] sm:$0xff]  }
   0x7   :  { %859 = vmatpush3.bf16.msra.mxu0 %v982_v4  ;;  %v789_v15 = vcombine.high %v33_v14, %v33_v14  ;;  %v1000_v20 = vld [vmem:[%s1335_s3] sm:$0xff]   ;;  %v994_v21 = vld [vmem:[%s1333_s1 + $0x78] sm:$0xff]   ;;  %v1001_v22 = vld [vmem:[%s1335_s3 + $0x8] sm:$0xff]   ;;  %v788_v25 = vcombine.low %v33_v14, %v33_v14 }
   0x8   :  { %860 = vmatprep.subr.bf16.mxu0 %v983_v5  ;;  %v995_v23 = vld [vmem:[%s1333_s1 + $0x38] sm:$0xff]   ;;  %v1002_v24 = vld [vmem:[%s1335_s3 + $0x10] sm:$0xff]   ;;  %v1004_v27 = vld [vmem:[%s1335_s3 + $0x20] sm:$0xff]  }
   0x9   :  { %232 = vmatprep.mubr.bf16.mxu0 %v789_v15  ;;  %911 = vmatpush3.bf16.msra.mxu1 %v999_v16  ;;  %v1003_v26 = vld [vmem:[%s1335_s3 + $0x18] sm:$0xff]   ;;  %v1005_v28 = vld [vmem:[%s1335_s3 + $0x28] sm:$0xff]   ;;  %v1006_v29 = vld [vmem:[%s1335_s3 + $0x30] sm:$0xff]  }
   0xa   :  { %916 = vmatprep.subr.bf16.mxu1 %v1048_v1  ;;  %v1007_v30 = vld [vmem:[%s1335_s3 + $0x38] sm:$0xff]   ;;  %v1008_v31 = vld [vmem:[%s1336_s5] sm:$0xff]   ;;  %v1009_v32 = vld [vmem:[%s1336_s5 + $0x8] sm:$0xff]  }
   0xb   :  { %861 = vmatpush3.bf16.msra.mxu0 %v984_v6  ;;  %v1010_v33 = vld [vmem:[%s1336_s5 + $0x10] sm:$0xff]   ;;  %v1011_v34 = vld [vmem:[%s1336_s5 + $0x18] sm:$0xff]   ;;  %v1012_v35 = vld [vmem:[%s1336_s5 + $0x20] sm:$0xff]  }
   0xc   :  { %862 = vmatprep.subr.bf16.mxu0 %v985_v7  ;;  %913 = vmatmul.mubr.msk.bf16.vlgmr.msra.gmra.mrb[0].mxu1 %vm196_vm1, %v998_v18  ;;  %v1013_v36 = vld [vmem:[%s1336_s5 + $0x28] sm:$0xff]   ;;  %v1014_v37 = vld [vmem:[%s1336_s5 + $0x30] sm:$0xff]   ;;  %v787_v44 = vld [vmem:[%s1337_s2] ss:$0 sm:$0xff] }
   0xd   :  { %917 = vmatpush3.bf16.msra.mxu1 %v1000_v20  ;;  %932 = vmatprep.mubr.msk.bf16.mxu1 %vm1049_vm0, %v1048_v1  ;;  %v1015_v52 = vld [vmem:[%s1336_s5 + $0x38] sm:$0xff]   ;;  %v1016_v53 = vld [vmem:[%s1338_s7] ss:$12 sps:$4 sm:$0xff]   ;;  %v1018_v54 = vld [vmem:[%s1338_s7 + $0x4] ss:$12 sps:$4 sm:$0xff]  }
   0xe   :  { %918 = vmatprep.subr.bf16.mxu1 %v1048_v1  ;;  %v1022_v55 = vld [vmem:[%s1338_s7 + $0x1c] ss:$12 sps:$4 sm:$0xff]   ;;  %v1020_v56 = vld [vmem:[%s1338_s7 + $0x18] ss:$12 sps:$4 sm:$0xff]   ;;  %v1026_v57 = vld [vmem:[%s1338_s7 + $0x34] ss:$12 sps:$4 sm:$0xff]  }
   0xf   :  { %863 = vmatpush3.bf16.msra.mxu0 %v986_v8  ;;  %v1024_v58 = vld [vmem:[%s1338_s7 + $0x30] ss:$12 sps:$4 sm:$0xff]   ;;  %v1030_v59 = vld [vmem:[%s1338_s7 + $0x4c] ss:$12 sps:$4 sm:$0xff]   ;;  %v1028_v60 = vld [vmem:[%s1338_s7 + $0x48] ss:$12 sps:$4 sm:$0xff]  }
  0x10   :  { %864 = vmatprep.subr.bf16.mxu0 %v987_v9  ;;  %v1034_v61 = vld [vmem:[%s1338_s7 + $0x64] ss:$12 sps:$4 sm:$0xff]   ;;  %v1032_v62 = vld [vmem:[%s1338_s7 + $0x60] ss:$12 sps:$4 sm:$0xff]   ;;  %v1038_v63 = vld [vmem:[%s1338_s7 + $0x7c] ss:$12 sps:$4 sm:$0xff]  }
  0x11   :  { %919 = vmatpush3.bf16.msra.mxu1 %v1001_v22  ;;  %v1036_v0 = vld [vmem:[%s1338_s7 + $0x78] ss:$12 sps:$4 sm:$0xff]   ;;  %v1042_v2 = vld [vmem:[%s1338_s7 + $0x94] ss:$12 sps:$4 sm:$0xff]   ;;  %v1040_v3 = vld [vmem:[%s1338_s7 + $0x90] ss:$12 sps:$4 sm:$0xff]  }
  0x12   :  { %920 = vmatprep.subr.bf16.mxu1 %v1048_v1  ;;  %v810_v4 = vld [vmem:[%s1339_s4] ss:$0 sm:$0xff]  ;;  %v1019_v9 = vld [vmem:[%s1338_s7 + $0x8] ss:$12 sps:$4 sm:$0xff]   ;;  %v1031_v14 = vld [vmem:[%s1338_s7 + $0x50] ss:$12 sps:$4 sm:$0xff]  }
  0x13   :  { %865 = vmatpush3.bf16.msra.mxu0 %v988_v11  ;;  %v1035_v15 = vld [vmem:[%s1338_s7 + $0x68] ss:$12 sps:$4 sm:$0xff]   ;;  %v1039_v16 = vld [vmem:[%s1338_s7 + $0x80] ss:$12 sps:$4 sm:$0xff]   ;;  %v1047_v20 = vld [vmem:[%s1338_s7 + $0xb0] ss:$12 sps:$4 sm:$0xff]  }
  0x14   :  { %866 = vmatprep.subr.bf16.mxu0 %v989_v12  ;;  %v1023_v12 = vld [vmem:[%s1338_s7 + $0x20] ss:$12 sps:$4 sm:$0xff]  }
  0x15   :  { %921 = vmatpush3.bf16.msra.mxu1 %v1002_v24  ;;  %v1046_v18 = vld [vmem:[%s1338_s7 + $0xac] ss:$12 sps:$4 sm:$0xff]   ;;  %v819_v22 = vld [vmem:[%s1340_s6] ss:$0 sm:$0xff] }
  0x16   :  { %922 = vmatprep.subr.bf16.mxu1 %v1048_v1 }
  0x17   :  { %867 = vmatpush3.bf16.msra.mxu0 %v990_v13  ;;  %v1027_v13 = vld [vmem:[%s1338_s7 + $0x38] ss:$12 sps:$4 sm:$0xff]  }
  0x18   :  { %868 = vmatprep.subr.bf16.mxu0 %v991_v17  ;;  %v1043_v17 = vld [vmem:[%s1338_s7 + $0x98] ss:$12 sps:$4 sm:$0xff]  }
  0x19   :  { %923 = vmatpush3.bf16.msra.mxu1 %v1003_v26 }
  0x1a   :  { %924 = vmatprep.subr.bf16.mxu1 %v1048_v1 }
  0x1b   :  { %869 = vmatpush3.bf16.msra.mxu0 %v992_v19  ;;  %v1044_v19 = vld [vmem:[%s1338_s7 + $0xa8] ss:$12 sps:$4 sm:$0xff]  }
  0x1c   :  { %870 = vmatprep.subr.bf16.mxu0 %v994_v21  ;;  %v1050_v21 = vmov 0  }
  0x1d   :  { %925 = vmatpush3.bf16.msra.mxu1 %v1004_v27 }
  0x1e   :  { %926 = vmatprep.subr.bf16.mxu1 %v1048_v1 }
  0x1f   :  { %871 = vmatpush3.bf16.msra.mxu0 %v995_v23 }
  0x20   :  { %936 = vmatprep.subr.bf16.mxu0 %v1048_v1 }
  0x21   :  { %927 = vmatpush3.bf16.msra.mxu1 %v1005_v28 }
  0x22   :  { %233 = vmatmul.mubr.bf16.vlgmr.msra.gmra.mrb[0].mxu0 %v788_v25  ;;  %928 = vmatprep.subr.bf16.mxu1 %v1048_v1 }
  0x23   :  { %952 = vmatprep.mubr.msk.bf16.mxu0 %vm1049_vm0, %v1048_v1  ;;  %937 = vmatpush3.bf16.msra.mxu0 %v1008_v31 }
  0x24   :  { %938 = vmatprep.subr.bf16.mxu0 %v1048_v1 }
  0x25   :  { %929 = vmatpush3.bf16.msra.mxu1 %v1006_v29  ;;  %v541_v29 = vlaneseq }
  0x26   :  { %930 = vmatprep.subr.bf16.mxu1 %v1048_v1 }
  0x27   :  { %939 = vmatpush3.bf16.msra.mxu0 %v1009_v32 }
  0x28   :  { %940 = vmatprep.subr.bf16.mxu0 %v1048_v1 }
  0x29   :  { %931 = vmatpush3.bf16.msra.mxu1 %v1007_v30  ;;  %v542_v30 = vshrl.u32 %v541_v29, 7 }
  0x2a   :  { %684 = vmatprep.subr.bf16.mxu1 %v1018_v54 }
  0x2b   :  { %941 = vmatpush3.bf16.msra.mxu0 %v1010_v33  ;;  %v543_v31 = vsub.s32 0, %v542_v30  ;;  %v551_v32 = vsub.s32 2, %v542_v30  ;;  %v539_v33 = vld [vmem:[%s1341_s8] sm:$0x7] }
  0x2c   :  { %942 = vmatprep.subr.bf16.mxu0 %v1048_v1 }
  0x2f   :  { %943 = vmatpush3.bf16.msra.mxu0 %v1011_v34  ;;  %v547_v34 = vsub.s32 1, %v542_v30 }
  0x30   :  { %944 = vmatprep.subr.bf16.mxu0 %v1048_v1 }
  0x33   :  { %945 = vmatpush3.bf16.msra.mxu0 %v1012_v35  ;;  %v544_v35 = vrot.slane %v539_v33, %v543_v31 }
  0x34   :  { %946 = vmatprep.subr.bf16.mxu0 %v1048_v1 }
  0x37   :  { %947 = vmatpush3.bf16.msra.mxu0 %v1013_v36  ;;  %v552_v36 = vrot.slane %v539_v33, %v551_v32 }
  0x38   :  { %948 = vmatprep.subr.bf16.mxu0 %v1048_v1 }
  0x3b   :  { %949 = vmatpush3.bf16.msra.mxu0 %v1014_v37  ;;  %v548_v37 = vrot.slane %v539_v33, %v547_v34 }
  0x3c   :  { %950 = vmatprep.subr.bf16.mxu0 %v1048_v1 }
  0x3f   :  { %951 = vmatpush3.bf16.msra.mxu0 %v1015_v52 }
  0x40   :  { %956 = vmatprep.subr.bf16.mxu0 %v1048_v1 }
  0xdf   :  { %v274_v38 = vpop.f32.mrb[0].mxu1 }
  0xe0   :  { %v914_v39 = vpop.f32.mrb[1].mxu1 }
  0xe1   :  { %v277_v40 = vpop.f32.mrb[2].mxu1 }
  0xe2   :  { %v915_v41 = vpop.f32.mrb[3].mxu1 }
  0xf5   :  { %v872_v42 = vpop.f32.mrb[0].mxu0 }
  0xf6   :  { %v873_v43 = vpop.f32.mrb[1].mxu0 }
  0xf7   :  { %v874_v45 = vadd.f32 %v873_v43, %v872_v42  ;;  %v875_v46 = vpop.f32.mrb[2].mxu0 }
  0xf8   :  { %v876_v47 = vpop.f32.mrb[3].mxu0 }
  0xf9   :  { %v235_v48 = vadd.f32 %v874_v45, %v787_v44 }
  0xfb   :  { %v275_v49 = vadd.f32 %v274_v38, %v235_v48 }
  0xfd   :  { %v280_v50 = vmax.f32 %v275_v49, 0.0 }
  0xff   :  { %v281_v51 = vpack.c.bf16 %v280_v50, %v280_v50 }
 0x101   :  { %933 = vmatmul.mubr.bf16.vlgmr.msra.gmra.mrb[4].mxu1 %v281_v51 }
 0x102   :  { %685 = vmatpush1.bf16.msra.mxu1 %v1016_v53  ;;  %716 = vmatprep.mubr.bf16.mxu1 %v1050_v21 }
 0x103   :  { %686 = vmatprep.subr.bf16.mxu1 %v1022_v55 }
 0x106   :  { %687 = vmatpush1.bf16.msra.mxu1 %v1020_v56 }
 0x107   :  { %688 = vmatprep.subr.bf16.mxu1 %v1026_v57 }
 0x10a   :  { %689 = vmatpush1.bf16.msra.mxu1 %v1024_v58 }
 0x10b   :  { %690 = vmatprep.subr.bf16.mxu1 %v1030_v59 }
 0x10e   :  { %691 = vmatpush1.bf16.msra.mxu1 %v1028_v60 }
 0x10f   :  { %692 = vmatprep.subr.bf16.mxu1 %v1034_v61 }
 0x112   :  { %693 = vmatpush1.bf16.msra.mxu1 %v1032_v62 }
 0x113   :  { %694 = vmatprep.subr.bf16.mxu1 %v1038_v63 }
 0x116   :  { %695 = vmatpush1.bf16.msra.mxu1 %v1036_v0 }
 0x117   :  { %696 = vmatprep.subr.bf16.mxu1 %v1042_v2 }
 0x11a   :  { %697 = vmatpush1.bf16.msra.mxu1 %v1040_v3 }
 0x11b   :  { %698 = vmatprep.subr.bf16.mxu1 %v1046_v18 }
 0x11e   :  { %699 = vmatpush1.bf16.msra.mxu1 %v1044_v19 }
 0x1d4   :  { %v387_v5 = vpop.f32.mrb[4].mxu1 }
 0x1d5   :  { %v388_v6 = vadd.f32 %v810_v4, %v387_v5  ;;  %v934_v7 = vpop.f32.mrb[5].mxu1 }
 0x1d6   :  { %v390_v8 = vpop.f32.mrb[6].mxu1 }
 0x1d7   :  { %v393_v10 = vpack.c.bf16 %v388_v6, %v388_v6  ;;  %v935_v11 = vpop.f32.mrb[7].mxu1 }
 0x1d9   :  { %953 = vmatmul.mubr.bf16.vlgmr.msra.gmra.mrb[4].mxu0 %v393_v10 }
 0x1da   :  { %957 = vmatpush3.bf16.msra.mxu0 %v1019_v9  ;;  %972 = vmatprep.mubr.msk.bf16.mxu0 %vm1049_vm0, %v1048_v1 }
 0x1db   :  { %958 = vmatprep.subr.bf16.mxu0 %v1048_v1 }
 0x1de   :  { %959 = vmatpush3.bf16.msra.mxu0 %v1023_v12 }
 0x1df   :  { %960 = vmatprep.subr.bf16.mxu0 %v1048_v1 }
 0x1e2   :  { %961 = vmatpush3.bf16.msra.mxu0 %v1027_v13 }
 0x1e3   :  { %962 = vmatprep.subr.bf16.mxu0 %v1048_v1 }
 0x1e6   :  { %963 = vmatpush3.bf16.msra.mxu0 %v1031_v14 }
 0x1e7   :  { %964 = vmatprep.subr.bf16.mxu0 %v1048_v1 }
 0x1ea   :  { %965 = vmatpush3.bf16.msra.mxu0 %v1035_v15 }
 0x1eb   :  { %966 = vmatprep.subr.bf16.mxu0 %v1048_v1 }
 0x1ee   :  { %967 = vmatpush3.bf16.msra.mxu0 %v1039_v16 }
 0x1ef   :  { %968 = vmatprep.subr.bf16.mxu0 %v1048_v1 }
 0x1f2   :  { %969 = vmatpush3.bf16.msra.mxu0 %v1043_v17 }
 0x1f3   :  { %970 = vmatprep.subr.bf16.mxu0 %v1048_v1 }
 0x1f6   :  { %971 = vmatpush3.bf16.msra.mxu0 %v1047_v20 }
 0x2ac   :  { %v499_v23 = vpop.f32.mrb[4].mxu0 }
 0x2ad   :  { %v500_v24 = vadd.f32 %v819_v22, %v499_v23  ;;  %v954_v1 = vpop.f32.mrb[5].mxu0 }
 0x2ae   :  { %v502_v25 = vpop.f32.mrb[6].mxu0 }
 0x2af   :  { %v505_v26 = vmax.f32 %v500_v24, 0.0  ;;  %v955_v27 = vpop.f32.mrb[7].mxu0 }
 0x2b1   :  { %v506_v28 = vpack.c.bf16 %v505_v26, %v505_v26 }
 0x2b3   :  { %717 = vmatmul.mubr.bf16.vlgmr.msra.gmra.mrb[8].mxu1 %v506_v28  ;;  %973 = vmatmul.mubr.bf16.vlgmr.msra.gmra.mrb[8].mxu0 %v506_v28 }
 0x386   :  { %v718_v38 = vpop.f32.mrb[8].mxu1  ;;  %v759_v39 = vpop.f32.mrb[8].mxu0 }
 0x387   :  { %v719_v40 = vadd.f32 %v718_v38, %v544_v35  ;;  %v760_v41 = vadd.f32 %v759_v39, %v552_v36  ;;  %v720_v42 = vpop.f32.mrb[9].mxu1  ;;  %v974_v43 = vpop.f32.mrb[9].mxu0 }
 0x388   :  { %v721_v44 = vadd.f32 %v720_v42, %v548_v37  ;;  %v722_v45 = vpop.f32.mrb[10].mxu1  ;;  %v762_v46 = vpop.f32.mrb[10].mxu0 }
 0x389   :  { %v765_v47 = vmax.f32 %v719_v40, 0.0  ;;  %v767_v48 = vmax.f32 %v760_v41, 0.0  ;;  %v723_v49 = vpop.f32.mrb[11].mxu1  ;;  %v975_v50 = vpop.f32.mrb[11].mxu0 }
 0x38a   :  { %v766_v51 = vmax.f32 %v721_v44, 0.0 }
 0x38b   :  { %v855_v52 = vpack.c.bf16 %v767_v48, %v767_v48 }
 0x38c   :  { %v854_v53 = vpack.c.bf16 %v766_v51, %v765_v47 }
 0x38d   :  { %782 = vst [vmem:[%s1342_s9 + $0x8] sm:$0xf] %v855_v52 }
 0x38e   :  { %781 = vst [vmem:[%s1342_s9] sm:$0xff] %v854_v53 }

// kernel: autoencoder_forward.11
= control target key start
LH: loop header
LB: loop body
LE: loop exit
PB: predicated region body
PF: predicated region fallthrough
CT: control target
= control target key end

     0   :  { %v827_v1 = vmov 0.0   ;;  %vm828_vm0 = vmmov 0   ;;  %vm292_vm1 = vcmask 261120   ;;  %s1025_s1 = inlined_call_operand.vmem [shape: bf16[288,128], index: 1, kind: input, shape index: {}]   ;;  %s1026_s0 = inlined_call_operand.vmem [shape: bf16[104,288], index: 0, kind: input, shape index: {}]   ;;  %s1027_s2 = inlined_call_operand.vmem [shape: f32[1,128], index: 2, kind: input, shape index: {}]   ;;  %s1028_s3 = inlined_call_operand.vmem [shape: bf16[104,128], index: 3, kind: output, shape index: {}]  }
   0x1   :  { %v782_v0 = vld [vmem:[%s1025_s1 + $0x40] sm:$0xff]   ;;  %748 = vmatprep.subr.bf16.mxu1 %v827_v1  ;;  %752 = vmatprep.mubr.msk.bf16.mxu1 %vm828_vm0, %v827_v1  ;;  %v784_v3 = vld [vmem:[%s1025_s1 + $0x48] sm:$0xff]   ;;  %v786_v5 = vld [vmem:[%s1025_s1 + $0x50] sm:$0xff]  }
   0x2   :  { %v783_v2 = vld [vmem:[%s1025_s1] sm:$0xff]   ;;  %681 = vmatprep.subr.bf16.mxu0 %v782_v0  ;;  %v785_v4 = vld [vmem:[%s1025_s1 + $0x8] sm:$0xff]   ;;  %v787_v6 = vld [vmem:[%s1025_s1 + $0x10] sm:$0xff]  }
   0x3   :  { %682 = vmatpush3.bf16.msra.mxu0 %v783_v2  ;;  %v788_v7 = vld [vmem:[%s1025_s1 + $0x58] sm:$0xff]   ;;  %v790_v9 = vld [vmem:[%s1025_s1 + $0x60] sm:$0xff]   ;;  %v792_v12 = vld [vmem:[%s1025_s1 + $0x68] sm:$0xff]  }
   0x4   :  { %683 = vmatprep.subr.bf16.mxu0 %v784_v3  ;;  %v789_v8 = vld [vmem:[%s1025_s1 + $0x18] sm:$0xff]   ;;  %v796_v10 = vld [vmem:[%s1025_s1 + $0x80] sm:$0xff]   ;;  %v793_v13 = vld [vmem:[%s1025_s1 + $0x28] sm:$0xff]  }
   0x5   :  { %v791_v11 = vld [vmem:[%s1025_s1 + $0x20] sm:$0xff]   ;;  %749 = vmatpush3.bf16.msra.mxu1 %v796_v10  ;;  %v794_v14 = vld [vmem:[%s1025_s1 + $0x70] sm:$0xff]   ;;  %v802_v16 = vld [vmem:[%s1025_s1 + $0x88] sm:$0xff]  }
   0x6   :  { %750 = vmatprep.subr.bf16.mxu1 %v827_v1  ;;  %v801_v15 = vld [vmem:[%s1026_s0 + $0x4] ss:$12 sps:$4 sm:$0xff]   ;;  %v803_v17 = vld [vmem:[%s1026_s0 + $0x8] ss:$12 sps:$4 sm:$0xff]   ;;  %v797_v19 = vld [vmem:[%s1025_s1 + $0x78] sm:$0xff]  }
   0x7   :  { %684 = vmatpush3.bf16.msra.mxu0 %v785_v4  ;;  %346 = vmatprep.mubr.bf16.mxu0 %v801_v15  ;;  %v795_v18 = vld [vmem:[%s1025_s1 + $0x30] sm:$0xff]   ;;  %v798_v20 = vld [vmem:[%s1025_s1 + $0x38] sm:$0xff]   ;;  %v807_v21 = vld [vmem:[%s1026_s0 + $0x20] ss:$12 sps:$4 sm:$0xff]  }
   0x8   :  { %685 = vmatprep.subr.bf16.mxu0 %v786_v5  ;;  %v799_v22 = vld [vmem:[%s1026_s0] ss:$12 sps:$4 sm:$0xff]   ;;  %v804_v23 = vld [vmem:[%s1026_s0 + $0x1c] ss:$12 sps:$4 sm:$0xff]   ;;  %v811_v24 = vld [vmem:[%s1026_s0 + $0x38] ss:$12 sps:$4 sm:$0xff]  }
   0x9   :  { %751 = vmatpush3.bf16.msra.mxu1 %v802_v16  ;;  %v806_v25 = vld [vmem:[%s1026_s0 + $0x18] ss:$12 sps:$4 sm:$0xff]   ;;  %v808_v26 = vld [vmem:[%s1026_s0 + $0x34] ss:$12 sps:$4 sm:$0xff]   ;;  %v815_v27 = vld [vmem:[%s1026_s0 + $0x50] ss:$12 sps:$4 sm:$0xff]  }
   0xa   :  { %v810_v28 = vld [vmem:[%s1026_s0 + $0x30] ss:$12 sps:$4 sm:$0xff]   ;;  %v812_v29 = vld [vmem:[%s1026_s0 + $0x4c] ss:$12 sps:$4 sm:$0xff]   ;;  %v819_v30 = vld [vmem:[%s1026_s0 + $0x68] ss:$12 sps:$4 sm:$0xff]  }
   0xb   :  { %686 = vmatpush3.bf16.msra.mxu0 %v787_v6  ;;  %v814_v31 = vld [vmem:[%s1026_s0 + $0x48] ss:$12 sps:$4 sm:$0xff]   ;;  %v816_v32 = vld [vmem:[%s1026_s0 + $0x64] ss:$12 sps:$4 sm:$0xff]   ;;  %v823_v33 = vld [vmem:[%s1026_s0 + $0x80] ss:$12 sps:$4 sm:$0xff]  }
   0xc   :  { %687 = vmatprep.subr.bf16.mxu0 %v788_v7  ;;  %753 = vmatmul.mubr.msk.bf16.vlgmr.msra.gmra.mrb[0].mxu1 %vm292_vm1, %v803_v17  ;;  %v818_v34 = vld [vmem:[%s1026_s0 + $0x60] ss:$12 sps:$4 sm:$0xff]   ;;  %v820_v35 = vld [vmem:[%s1026_s0 + $0x7c] ss:$12 sps:$4 sm:$0xff]   ;;  %v39_v36 = vld [vmem:[%s1026_s0 + $0x90] sm:$0xff] }
   0xd   :  { %756 = vmatprep.mubr.msk.bf16.mxu1 %vm828_vm0, %v827_v1  ;;  %v826_v37 = vld [vmem:[%s1026_s0 + $0x98] ss:$0 sps:$4 sm:$0xff]   ;;  %v593_v39 = vcombine.high %v39_v36, %v39_v36  ;;  %v592_v40 = vcombine.low %v39_v36, %v39_v36  ;;  %v989_v50 = vld [vmem:[%s1027_s2] ss:$0 sm:$0xff] }
   0xe   :  { %v822_v38 = vld [vmem:[%s1026_s0 + $0x78] ss:$12 sps:$4 sm:$0xff]  }
   0xf   :  { %688 = vmatpush3.bf16.msra.mxu0 %v789_v8 }
  0x10   :  { %689 = vmatprep.subr.bf16.mxu0 %v790_v9 }
  0x13   :  { %690 = vmatpush3.bf16.msra.mxu0 %v791_v11 }
  0x14   :  { %691 = vmatprep.subr.bf16.mxu0 %v792_v12  ;;  %757 = vmatmul.mubr.msk.bf16.gmra.mrb[4].mxu1 %vm292_vm1, %v807_v21 }
  0x15   :  { %760 = vmatprep.mubr.msk.bf16.mxu1 %vm828_vm0, %v827_v1 }
  0x17   :  { %692 = vmatpush3.bf16.msra.mxu0 %v793_v13 }
  0x18   :  { %693 = vmatprep.subr.bf16.mxu0 %v794_v14 }
  0x1b   :  { %694 = vmatpush3.bf16.msra.mxu0 %v795_v18 }
  0x1c   :  { %695 = vmatprep.subr.bf16.mxu0 %v797_v19  ;;  %761 = vmatmul.mubr.msk.bf16.gmra.mrb[8].mxu1 %vm292_vm1, %v811_v24 }
  0x1d   :  { %764 = vmatprep.mubr.msk.bf16.mxu1 %vm828_vm0, %v827_v1 }
  0x1f   :  { %696 = vmatpush3.bf16.msra.mxu0 %v798_v20 }
  0x22   :  { %347 = vmatmul.mubr.bf16.vlgmr.msra.gmra.mrb[0].mxu0 %v799_v22 }
  0x23   :  { %354 = vmatprep.mubr.bf16.mxu0 %v804_v23 }
  0x24   :  { %765 = vmatmul.mubr.msk.bf16.gmra.mrb[12].mxu1 %vm292_vm1, %v815_v27 }
  0x25   :  { %768 = vmatprep.mubr.msk.bf16.mxu1 %vm828_vm0, %v827_v1 }
  0x2a   :  { %355 = vmatmul.mubr.bf16.gmra.mrb[4].mxu0 %v806_v25 }
  0x2b   :  { %362 = vmatprep.mubr.bf16.mxu0 %v808_v26 }
  0x2c   :  { %769 = vmatmul.mubr.msk.bf16.gmra.mrb[16].mxu1 %vm292_vm1, %v819_v30 }
  0x2d   :  { %772 = vmatprep.mubr.msk.bf16.mxu1 %vm828_vm0, %v827_v1 }
  0x32   :  { %363 = vmatmul.mubr.bf16.gmra.mrb[8].mxu0 %v810_v28 }
  0x33   :  { %370 = vmatprep.mubr.bf16.mxu0 %v812_v29 }
  0x34   :  { %773 = vmatmul.mubr.msk.bf16.gmra.mrb[20].mxu1 %vm292_vm1, %v823_v33 }
  0x35   :  { %776 = vmatprep.mubr.msk.bf16.mxu1 %vm828_vm0, %v827_v1 }
  0x3a   :  { %371 = vmatmul.mubr.bf16.gmra.mrb[12].mxu0 %v814_v31 }
  0x3b   :  { %378 = vmatprep.mubr.bf16.mxu0 %v816_v32 }
  0x3c   :  { %777 = vmatmul.mubr.msk.bf16.gmra.mrb[24].mxu1 %vm292_vm1, %v826_v37 }
  0x42   :  { %379 = vmatmul.mubr.bf16.gmra.mrb[16].mxu0 %v818_v34 }
  0x43   :  { %386 = vmatprep.mubr.bf16.mxu0 %v820_v35 }
  0x4a   :  { %387 = vmatmul.mubr.bf16.gmra.mrb[20].mxu0 %v822_v38 }
  0x4b   :  { %394 = vmatprep.mubr.bf16.mxu0 %v593_v39 }
  0x52   :  { %395 = vmatmul.mubr.bf16.gmra.mrb[24].mxu0 %v592_v40 }
  0xdf   :  { %v436_v41 = vpop.f32.mrb[0].mxu1 }
  0xe0   :  { %v754_v42 = vpop.f32.mrb[1].mxu1 }
  0xe1   :  { %v439_v43 = vpop.f32.mrb[2].mxu1 }
  0xe2   :  { %v755_v44 = vpop.f32.mrb[3].mxu1 }
  0xe7   :  { %v444_v45 = vpop.f32.mrb[4].mxu1 }
  0xe8   :  { %v758_v46 = vpop.f32.mrb[5].mxu1 }
  0xe9   :  { %v447_v48 = vpop.f32.mrb[6].mxu1 }
  0xea   :  { %v759_v51 = vpop.f32.mrb[7].mxu1 }
  0xef   :  { %v452_v59 = vpop.f32.mrb[8].mxu1 }
  0xf0   :  { %v762_v60 = vpop.f32.mrb[9].mxu1 }
  0xf1   :  { %v455_v63 = vpop.f32.mrb[10].mxu1 }
  0xf2   :  { %v763_v1 = vpop.f32.mrb[11].mxu1 }
  0xf5   :  { %v697_v47 = vpop.f32.mrb[0].mxu0 }
  0xf6   :  { %v698_v49 = vpop.f32.mrb[1].mxu0 }
  0xf7   :  { %v699_v52 = vadd.f32 %v698_v49, %v697_v47  ;;  %v700_v53 = vpop.f32.mrb[2].mxu0  ;;  %v460_v12 = vpop.f32.mrb[12].mxu1 }
  0xf8   :  { %v701_v54 = vpop.f32.mrb[3].mxu0  ;;  %v766_v13 = vpop.f32.mrb[13].mxu1 }
  0xf9   :  { %v349_v55 = vadd.f32 %v699_v52, %v989_v50  ;;  %v702_v56 = vadd.f32 %v701_v54, %v700_v53  ;;  %v463_v16 = vpop.f32.mrb[14].mxu1 }
  0xfa   :  { %v767_v18 = vpop.f32.mrb[15].mxu1 }
  0xfb   :  { %v437_v57 = vadd.f32 %v436_v41, %v349_v55  ;;  %v352_v58 = vadd.f32 %v702_v56, %v989_v50 }
  0xfd   :  { %v440_v61 = vadd.f32 %v439_v43, %v352_v58  ;;  %v703_v62 = vpop.f32.mrb[4].mxu0  ;;  %v490_v2 = vmax.f32 %v437_v57, 0.0 }
  0xfe   :  { %v704_v0 = vpop.f32.mrb[5].mxu0 }
  0xff   :  { %v491_v3 = vmax.f32 %v440_v61, 0.0  ;;  %v705_v4 = vadd.f32 %v704_v0, %v703_v62  ;;  %v706_v5 = vpop.f32.mrb[6].mxu0  ;;  %v468_v29 = vpop.f32.mrb[16].mxu1 }
 0x100   :  { %v707_v6 = vpop.f32.mrb[7].mxu0  ;;  %v770_v30 = vpop.f32.mrb[17].mxu1 }
 0x101   :  { %v649_v7 = vpack.c.bf16 %v491_v3, %v490_v2  ;;  %v357_v8 = vadd.f32 %v705_v4, %v989_v50  ;;  %v708_v9 = vadd.f32 %v707_v6, %v706_v5  ;;  %v471_v33 = vpop.f32.mrb[18].mxu1 }
 0x102   :  { %v771_v35 = vpop.f32.mrb[19].mxu1 }
 0x103   :  { %650 = vst [vmem:[%s1028_s3] sm:$0xff] %v649_v7   ;;  %v445_v10 = vadd.f32 %v444_v45, %v357_v8  ;;  %v360_v11 = vadd.f32 %v708_v9, %v989_v50 }
 0x105   :  { %v448_v14 = vadd.f32 %v447_v48, %v360_v11  ;;  %v709_v15 = vpop.f32.mrb[8].mxu0  ;;  %v492_v19 = vmax.f32 %v445_v10, 0.0 }
 0x106   :  { %v710_v17 = vpop.f32.mrb[9].mxu0 }
 0x107   :  { %v493_v20 = vmax.f32 %v448_v14, 0.0  ;;  %v711_v21 = vadd.f32 %v710_v17, %v709_v15  ;;  %v712_v22 = vpop.f32.mrb[10].mxu0  ;;  %v476_v46 = vpop.f32.mrb[20].mxu1 }
 0x108   :  { %v713_v23 = vpop.f32.mrb[11].mxu0  ;;  %v774_v47 = vpop.f32.mrb[21].mxu1 }
 0x109   :  { %v654_v24 = vpack.c.bf16 %v493_v20, %v492_v19  ;;  %v365_v25 = vadd.f32 %v711_v21, %v989_v50  ;;  %v714_v26 = vadd.f32 %v713_v23, %v712_v22  ;;  %v479_v51 = vpop.f32.mrb[22].mxu1 }
 0x10a   :  { %v775_v53 = vpop.f32.mrb[23].mxu1 }
 0x10b   :  { %676 = vst [vmem:[%s1028_s3 + $0x8] sm:$0xff] %v654_v24   ;;  %v453_v27 = vadd.f32 %v452_v59, %v365_v25  ;;  %v368_v28 = vadd.f32 %v714_v26, %v989_v50 }
 0x10d   :  { %v456_v31 = vadd.f32 %v455_v63, %v368_v28  ;;  %v715_v32 = vpop.f32.mrb[12].mxu0  ;;  %v494_v36 = vmax.f32 %v453_v27, 0.0 }
 0x10e   :  { %v716_v34 = vpop.f32.mrb[13].mxu0 }
 0x10f   :  { %v495_v37 = vmax.f32 %v456_v31, 0.0  ;;  %v717_v38 = vadd.f32 %v716_v34, %v715_v32  ;;  %v718_v39 = vpop.f32.mrb[14].mxu0  ;;  %v484_v0 = vpop.f32.mrb[24].mxu1 }
 0x110   :  { %v719_v40 = vpop.f32.mrb[15].mxu0  ;;  %v778_v1 = vpop.f32.mrb[25].mxu1 }
 0x111   :  { %v659_v41 = vpack.c.bf16 %v495_v37, %v494_v36  ;;  %v373_v42 = vadd.f32 %v717_v38, %v989_v50  ;;  %v720_v43 = vadd.f32 %v719_v40, %v718_v39  ;;  %v487_v4 = vpop.f32.mrb[26].mxu1 }
 0x112   :  { %v779_v6 = vpop.f32.mrb[27].mxu1 }
 0x113   :  { %677 = vst [vmem:[%s1028_s3 + $0x10] sm:$0xff] %v659_v41   ;;  %v461_v44 = vadd.f32 %v460_v12, %v373_v42  ;;  %v376_v45 = vadd.f32 %v720_v43, %v989_v50 }
 0x115   :  { %v464_v48 = vadd.f32 %v463_v16, %v376_v45  ;;  %v721_v49 = vpop.f32.mrb[16].mxu0  ;;  %v496_v54 = vmax.f32 %v461_v44, 0.0 }
 0x116   :  { %v722_v52 = vpop.f32.mrb[17].mxu0 }
 0x117   :  { %v497_v55 = vmax.f32 %v464_v48, 0.0  ;;  %v723_v56 = vadd.f32 %v722_v52, %v721_v49  ;;  %v724_v57 = vpop.f32.mrb[18].mxu0 }
 0x118   :  { %v725_v58 = vpop.f32.mrb[19].mxu0 }
 0x119   :  { %v664_v59 = vpack.c.bf16 %v497_v55, %v496_v54  ;;  %v381_v60 = vadd.f32 %v723_v56, %v989_v50  ;;  %v726_v61 = vadd.f32 %v725_v58, %v724_v57 }
 0x11b   :  { %678 = vst [vmem:[%s1028_s3 + $0x18] sm:$0xff] %v664_v59   ;;  %v469_v62 = vadd.f32 %v468_v29, %v381_v60  ;;  %v384_v63 = vadd.f32 %v726_v61, %v989_v50 }
 0x11d   :  { %v472_v2 = vadd.f32 %v471_v33, %v384_v63  ;;  %v727_v3 = vpop.f32.mrb[20].mxu0  ;;  %v498_v7 = vmax.f32 %v469_v62, 0.0 }
 0x11e   :  { %v728_v5 = vpop.f32.mrb[21].mxu0 }
 0x11f   :  { %v499_v8 = vmax.f32 %v472_v2, 0.0  ;;  %v729_v9 = vadd.f32 %v728_v5, %v727_v3  ;;  %v730_v10 = vpop.f32.mrb[22].mxu0 }
 0x120   :  { %v731_v11 = vpop.f32.mrb[23].mxu0 }
 0x121   :  { %v669_v12 = vpack.c.bf16 %v499_v8, %v498_v7  ;;  %v389_v13 = vadd.f32 %v729_v9, %v989_v50  ;;  %v732_v14 = vadd.f32 %v731_v11, %v730_v10 }
 0x123   :  { %679 = vst [vmem:[%s1028_s3 + $0x20] sm:$0xff] %v669_v12   ;;  %v477_v15 = vadd.f32 %v476_v46, %v389_v13  ;;  %v392_v16 = vadd.f32 %v732_v14, %v989_v50 }
 0x125   :  { %v480_v17 = vadd.f32 %v479_v51, %v392_v16  ;;  %v733_v18 = vpop.f32.mrb[24].mxu0  ;;  %v500_v20 = vmax.f32 %v477_v15, 0.0 }
 0x126   :  { %v734_v19 = vpop.f32.mrb[25].mxu0 }
 0x127   :  { %v501_v21 = vmax.f32 %v480_v17, 0.0  ;;  %v735_v22 = vadd.f32 %v734_v19, %v733_v18  ;;  %v736_v23 = vpop.f32.mrb[26].mxu0 }
 0x128   :  { %v737_v24 = vpop.f32.mrb[27].mxu0 }
 0x129   :  { %v674_v25 = vpack.c.bf16 %v501_v21, %v500_v20  ;;  %v397_v26 = vadd.f32 %v735_v22, %v989_v50 }
 0x12b   :  { %680 = vst [vmem:[%s1028_s3 + $0x28] sm:$0xff] %v674_v25   ;;  %v485_v27 = vadd.f32 %v484_v0, %v397_v26 }
 0x12d   :  { %v502_v28 = vmax.f32 %v485_v27, 0.0 }
 0x12f   :  { %v645_v29 = vpack.c.bf16 %v502_v28, %v502_v28 }
 0x131   :  { %568 = vst [vmem:[%s1028_s3 + $0x30] sm:$0xf] %v645_v29 }

// kernel: autoencoder_forward.12
= control target key start
LH: loop header
LB: loop body
LE: loop exit
PB: predicated region body
PF: predicated region fallthrough
CT: control target
= control target key end

     0   :  { %v1400_v0 = vmov 0   ;;  %vm365_vm0 = vcmask 130048   ;;  %s1749_s1 = inlined_call_operand.vmem [shape: bf16[144,128], index: 1, kind: input, shape index: {}]   ;;  %s1750_s0 = inlined_call_operand.vmem [shape: bf16[392,144], index: 0, kind: input, shape index: {}]   ;;  %s1751_s2 = inlined_call_operand.vmem [shape: f32[1,128], index: 2, kind: input, shape index: {}]   ;;  %s1752_s3 = inlined_call_operand.vmem [shape: bf16[392,128], index: 3, kind: output, shape index: {}]  }
   0x1   :  { %441 = vmatprep.subr.bf16.mxu0 %v1400_v0  ;;  %v1317_v1 = vld [vmem:[%s1749_s1] sm:$0xff]   ;;  %1298 = vmatprep.subr.bf16.mxu1 %v1400_v0  ;;  %v1318_v2 = vld [vmem:[%s1749_s1 + $0x8] sm:$0xff]   ;;  %v1319_v3 = vld [vmem:[%s1749_s1 + $0x10] sm:$0xff]  }
   0x2   :  { %442 = vmatpush1.bf16.msra.mxu0 %v1317_v1  ;;  %1307 = vmatpush1.bf16.msra.mxu1 %v1317_v1  ;;  %v1320_v4 = vld [vmem:[%s1749_s1 + $0x18] sm:$0xff]   ;;  %v1328_v5 = vld [vmem:[%s1750_s0 + $0x4] ss:$8 sps:$4 sm:$0xff]   ;;  %v1323_v9 = vld [vmem:[%s1749_s1 + $0x30] sm:$0xff]  }
   0x3   :  { %443 = vmatprep.subr.bf16.mxu0 %v1400_v0  ;;  %1299 = vmatprep.subr.bf16.mxu1 %v1400_v0  ;;  %v1331_v6 = vld [vmem:[%s1750_s0 + $0xd4] ss:$8 sps:$4 sm:$0xff]   ;;  %v1321_v7 = vld [vmem:[%s1749_s1 + $0x20] sm:$0xff]   ;;  %v1322_v8 = vld [vmem:[%s1749_s1 + $0x28] sm:$0xff]  }
   0x4   :  { %1032 = vmatprep.mubr.msk.bf16.mxu0 %vm365_vm0, %v1328_v5  ;;  %1045 = vmatprep.mubr.msk.bf16.mxu1 %vm365_vm0, %v1331_v6  ;;  %v1324_v10 = vld [vmem:[%s1749_s1 + $0x38] sm:$0xff]   ;;  %v1325_v11 = vld [vmem:[%s1749_s1 + $0x40] sm:$0xff]  }
   0x5   :  { %v1326_v12 = vld [vmem:[%s1750_s0] ss:$8 sps:$4 sm:$0xff]   ;;  %v1329_v13 = vld [vmem:[%s1750_s0 + $0xd0] ss:$8 sps:$4 sm:$0xff]   ;;  %v1332_v14 = vld [vmem:[%s1750_s0 + $0x14] ss:$8 sps:$4 sm:$0xff]  }
   0x6   :  { %444 = vmatpush1.bf16.msra.mxu0 %v1318_v2  ;;  %1308 = vmatpush1.bf16.msra.mxu1 %v1318_v2  ;;  %v1335_v15 = vld [vmem:[%s1750_s0 + $0xe4] ss:$8 sps:$4 sm:$0xff]   ;;  %v1334_v16 = vld [vmem:[%s1750_s0 + $0x10] ss:$8 sps:$4 sm:$0xff]   ;;  %v1339_v17 = vld [vmem:[%s1750_s0 + $0xe0] ss:$8 sps:$4 sm:$0xff]  }
   0x7   :  { %445 = vmatprep.subr.bf16.mxu0 %v1400_v0  ;;  %1300 = vmatprep.subr.bf16.mxu1 %v1400_v0  ;;  %v1337_v18 = vld [vmem:[%s1750_s0 + $0x24] ss:$8 sps:$4 sm:$0xff]   ;;  %v1341_v19 = vld [vmem:[%s1750_s0 + $0xf4] ss:$8 sps:$4 sm:$0xff]   ;;  %v1340_v20 = vld [vmem:[%s1750_s0 + $0x20] ss:$8 sps:$4 sm:$0xff]  }
   0x8   :  { %v1345_v21 = vld [vmem:[%s1750_s0 + $0xf0] ss:$8 sps:$4 sm:$0xff]   ;;  %v1343_v22 = vld [vmem:[%s1750_s0 + $0x34] ss:$8 sps:$4 sm:$0xff]   ;;  %v1347_v23 = vld [vmem:[%s1750_s0 + $0x104] ss:$8 sps:$4 sm:$0xff]  }
   0x9   :  { %v1346_v24 = vld [vmem:[%s1750_s0 + $0x30] ss:$8 sps:$4 sm:$0xff]   ;;  %v1351_v25 = vld [vmem:[%s1750_s0 + $0x100] ss:$8 sps:$4 sm:$0xff]   ;;  %v1349_v26 = vld [vmem:[%s1750_s0 + $0x44] ss:$8 sps:$4 sm:$0xff]  }
   0xa   :  { %446 = vmatpush1.bf16.msra.mxu0 %v1319_v3  ;;  %1309 = vmatpush1.bf16.msra.mxu1 %v1319_v3  ;;  %v1353_v27 = vld [vmem:[%s1750_s0 + $0x114] ss:$8 sps:$4 sm:$0xff]   ;;  %v1352_v28 = vld [vmem:[%s1750_s0 + $0x40] ss:$8 sps:$4 sm:$0xff]   ;;  %v1357_v29 = vld [vmem:[%s1750_s0 + $0x110] ss:$8 sps:$4 sm:$0xff]  }
   0xb   :  { %447 = vmatprep.subr.bf16.mxu0 %v1400_v0  ;;  %1301 = vmatprep.subr.bf16.mxu1 %v1400_v0  ;;  %v1355_v30 = vld [vmem:[%s1750_s0 + $0x54] ss:$8 sps:$4 sm:$0xff]   ;;  %v1359_v31 = vld [vmem:[%s1750_s0 + $0x124] ss:$8 sps:$4 sm:$0xff]   ;;  %v1358_v32 = vld [vmem:[%s1750_s0 + $0x50] ss:$8 sps:$4 sm:$0xff]  }
   0xc   :  { %v1363_v33 = vld [vmem:[%s1750_s0 + $0x120] ss:$8 sps:$4 sm:$0xff]   ;;  %v1361_v34 = vld [vmem:[%s1750_s0 + $0x64] ss:$8 sps:$4 sm:$0xff]   ;;  %v1365_v35 = vld [vmem:[%s1750_s0 + $0x134] ss:$8 sps:$4 sm:$0xff]  }
   0xd   :  { %v1364_v36 = vld [vmem:[%s1750_s0 + $0x60] ss:$8 sps:$4 sm:$0xff]   ;;  %v1369_v37 = vld [vmem:[%s1750_s0 + $0x130] ss:$8 sps:$4 sm:$0xff]   ;;  %v1367_v38 = vld [vmem:[%s1750_s0 + $0x74] ss:$8 sps:$4 sm:$0xff]  }
   0xe   :  { %448 = vmatpush1.bf16.msra.mxu0 %v1320_v4  ;;  %1310 = vmatpush1.bf16.msra.mxu1 %v1320_v4  ;;  %v1371_v39 = vld [vmem:[%s1750_s0 + $0x144] ss:$8 sps:$4 sm:$0xff]   ;;  %v1370_v40 = vld [vmem:[%s1750_s0 + $0x70] ss:$8 sps:$4 sm:$0xff]   ;;  %v1375_v41 = vld [vmem:[%s1750_s0 + $0x140] ss:$8 sps:$4 sm:$0xff]  }
   0xf   :  { %449 = vmatprep.subr.bf16.mxu0 %v1400_v0  ;;  %1302 = vmatprep.subr.bf16.mxu1 %v1400_v0  ;;  %v1373_v42 = vld [vmem:[%s1750_s0 + $0x84] ss:$8 sps:$4 sm:$0xff]   ;;  %v1377_v43 = vld [vmem:[%s1750_s0 + $0x154] ss:$8 sps:$4 sm:$0xff]   ;;  %v1376_v44 = vld [vmem:[%s1750_s0 + $0x80] ss:$8 sps:$4 sm:$0xff]  }
  0x10   :  { %v1381_v45 = vld [vmem:[%s1750_s0 + $0x150] ss:$8 sps:$4 sm:$0xff]   ;;  %v1379_v46 = vld [vmem:[%s1750_s0 + $0x94] ss:$8 sps:$4 sm:$0xff]   ;;  %v1383_v47 = vld [vmem:[%s1750_s0 + $0x164] ss:$8 sps:$4 sm:$0xff]  }
  0x11   :  { %v1382_v48 = vld [vmem:[%s1750_s0 + $0x90] ss:$8 sps:$4 sm:$0xff]   ;;  %v1387_v49 = vld [vmem:[%s1750_s0 + $0x160] ss:$8 sps:$4 sm:$0xff]   ;;  %v1385_v50 = vld [vmem:[%s1750_s0 + $0xa4] ss:$8 sps:$4 sm:$0xff]  }
  0x12   :  { %450 = vmatpush1.bf16.msra.mxu0 %v1321_v7  ;;  %1311 = vmatpush1.bf16.msra.mxu1 %v1321_v7  ;;  %v1389_v51 = vld [vmem:[%s1750_s0 + $0x174] ss:$8 sps:$4 sm:$0xff]   ;;  %v63_v52 = vld [vmem:[%s1750_s0 + $0x180] sm:$0xff]  ;;  %v1393_v54 = vld [vmem:[%s1750_s0 + $0x170] ss:$8 sps:$4 sm:$0xff]  }
  0x13   :  { %451 = vmatprep.subr.bf16.mxu0 %v1400_v0  ;;  %1303 = vmatprep.subr.bf16.mxu1 %v1400_v0  ;;  %v1388_v53 = vld [vmem:[%s1750_s0 + $0xa0] ss:$8 sps:$4 sm:$0xff]   ;;  %v1391_v55 = vld [vmem:[%s1750_s0 + $0xb4] ss:$8 sps:$4 sm:$0xff]   ;;  %v1022_v56 = vcombine.high %v63_v52, %v63_v52  ;;  %v1394_v57 = vld [vmem:[%s1750_s0 + $0xb0] ss:$8 sps:$4 sm:$0xff]   ;;  %v1021_v58 = vcombine.low %v63_v52, %v63_v52 }
  0x14   :  { %v1396_v59 = vld [vmem:[%s1750_s0 + $0xc4] ss:$8 sps:$4 sm:$0xff]   ;;  %v1399_v60 = vld [vmem:[%s1750_s0 + $0xc0] ss:$8 sps:$4 sm:$0xff]  }
  0x15   :  { %v1623_v61 = vld [vmem:[%s1751_s2] ss:$0 sm:$0xff] }
  0x16   :  { %452 = vmatpush1.bf16.msra.mxu0 %v1322_v8  ;;  %1312 = vmatpush1.bf16.msra.mxu1 %v1322_v8 }
  0x17   :  { %453 = vmatprep.subr.bf16.mxu0 %v1400_v0  ;;  %1304 = vmatprep.subr.bf16.mxu1 %v1400_v0 }
  0x1a   :  { %454 = vmatpush1.bf16.msra.mxu0 %v1323_v9  ;;  %1313 = vmatpush1.bf16.msra.mxu1 %v1323_v9 }
  0x1b   :  { %455 = vmatprep.subr.bf16.mxu0 %v1400_v0  ;;  %1305 = vmatprep.subr.bf16.mxu1 %v1400_v0 }
  0x1e   :  { %456 = vmatpush1.bf16.msra.mxu0 %v1324_v10  ;;  %1314 = vmatpush1.bf16.msra.mxu1 %v1324_v10 }
  0x1f   :  { %457 = vmatprep.subr.bf16.mxu0 %v1400_v0  ;;  %1306 = vmatprep.subr.bf16.mxu1 %v1400_v0 }
  0x22   :  { %458 = vmatpush1.bf16.msra.mxu0 %v1325_v11  ;;  %1315 = vmatpush1.bf16.msra.mxu1 %v1325_v11 }
  0x25   :  { %474 = vmatmul.mubr.bf16.vlgmr.msra.gmra.mrb[0].mxu0 %v1326_v12  ;;  %578 = vmatmul.mubr.bf16.vlgmr.msra.gmra.mrb[0].mxu1 %v1329_v13 }
  0x26   :  { %1033 = vmatprep.mubr.msk.bf16.mxu0 %vm365_vm0, %v1332_v14  ;;  %1046 = vmatprep.mubr.msk.bf16.mxu1 %vm365_vm0, %v1335_v15 }
  0x2d   :  { %482 = vmatmul.mubr.bf16.gmra.mrb[4].mxu0 %v1334_v16  ;;  %586 = vmatmul.mubr.bf16.gmra.mrb[4].mxu1 %v1339_v17 }
  0x2e   :  { %1034 = vmatprep.mubr.msk.bf16.mxu0 %vm365_vm0, %v1337_v18  ;;  %1047 = vmatprep.mubr.msk.bf16.mxu1 %vm365_vm0, %v1341_v19 }
  0x35   :  { %490 = vmatmul.mubr.bf16.gmra.mrb[8].mxu0 %v1340_v20  ;;  %594 = vmatmul.mubr.bf16.gmra.mrb[8].mxu1 %v1345_v21 }
  0x36   :  { %1035 = vmatprep.mubr.msk.bf16.mxu0 %vm365_vm0, %v1343_v22  ;;  %1048 = vmatprep.mubr.msk.bf16.mxu1 %vm365_vm0, %v1347_v23 }
  0x3d   :  { %498 = vmatmul.mubr.bf16.gmra.mrb[12].mxu0 %v1346_v24  ;;  %602 = vmatmul.mubr.bf16.gmra.mrb[12].mxu1 %v1351_v25 }
  0x3e   :  { %1036 = vmatprep.mubr.msk.bf16.mxu0 %vm365_vm0, %v1349_v26  ;;  %1049 = vmatprep.mubr.msk.bf16.mxu1 %vm365_vm0, %v1353_v27 }
  0x45   :  { %506 = vmatmul.mubr.bf16.gmra.mrb[16].mxu0 %v1352_v28  ;;  %610 = vmatmul.mubr.bf16.gmra.mrb[16].mxu1 %v1357_v29 }
  0x46   :  { %1037 = vmatprep.mubr.msk.bf16.mxu0 %vm365_vm0, %v1355_v30  ;;  %1050 = vmatprep.mubr.msk.bf16.mxu1 %vm365_vm0, %v1359_v31 }
  0x4d   :  { %514 = vmatmul.mubr.bf16.gmra.mrb[20].mxu0 %v1358_v32  ;;  %618 = vmatmul.mubr.bf16.gmra.mrb[20].mxu1 %v1363_v33 }
  0x4e   :  { %1038 = vmatprep.mubr.msk.bf16.mxu0 %vm365_vm0, %v1361_v34  ;;  %1051 = vmatprep.mubr.msk.bf16.mxu1 %vm365_vm0, %v1365_v35 }
  0x55   :  { %522 = vmatmul.mubr.bf16.gmra.mrb[24].mxu0 %v1364_v36  ;;  %626 = vmatmul.mubr.bf16.gmra.mrb[24].mxu1 %v1369_v37 }
  0x56   :  { %1039 = vmatprep.mubr.msk.bf16.mxu0 %vm365_vm0, %v1367_v38  ;;  %1052 = vmatprep.mubr.msk.bf16.mxu1 %vm365_vm0, %v1371_v39 }
  0x5d   :  { %530 = vmatmul.mubr.bf16.gmra.mrb[28].mxu0 %v1370_v40  ;;  %634 = vmatmul.mubr.bf16.gmra.mrb[28].mxu1 %v1375_v41 }
  0x5e   :  { %1040 = vmatprep.mubr.msk.bf16.mxu0 %vm365_vm0, %v1373_v42  ;;  %1053 = vmatprep.mubr.msk.bf16.mxu1 %vm365_vm0, %v1377_v43 }
  0x65   :  { %538 = vmatmul.mubr.bf16.gmra.mrb[32].mxu0 %v1376_v44  ;;  %642 = vmatmul.mubr.bf16.gmra.mrb[32].mxu1 %v1381_v45 }
  0x66   :  { %1041 = vmatprep.mubr.msk.bf16.mxu0 %vm365_vm0, %v1379_v46  ;;  %1054 = vmatprep.mubr.msk.bf16.mxu1 %vm365_vm0, %v1383_v47 }
  0x6d   :  { %546 = vmatmul.mubr.bf16.gmra.mrb[36].mxu0 %v1382_v48  ;;  %650 = vmatmul.mubr.bf16.gmra.mrb[36].mxu1 %v1387_v49 }
  0x6e   :  { %1042 = vmatprep.mubr.msk.bf16.mxu0 %vm365_vm0, %v1385_v50  ;;  %1055 = vmatprep.mubr.msk.bf16.mxu1 %vm365_vm0, %v1389_v51 }
  0x75   :  { %554 = vmatmul.mubr.bf16.gmra.mrb[40].mxu0 %v1388_v53  ;;  %658 = vmatmul.mubr.bf16.gmra.mrb[40].mxu1 %v1393_v54 }
  0x76   :  { %1043 = vmatprep.mubr.msk.bf16.mxu0 %vm365_vm0, %v1391_v55  ;;  %1056 = vmatprep.mubr.msk.bf16.mxu1 %vm365_vm0, %v1022_v56 }
  0x7d   :  { %562 = vmatmul.mubr.bf16.gmra.mrb[44].mxu0 %v1394_v57  ;;  %666 = vmatmul.mubr.bf16.gmra.mrb[44].mxu1 %v1021_v58 }
  0x7e   :  { %1044 = vmatprep.mubr.msk.bf16.mxu0 %vm365_vm0, %v1396_v59 }
  0x85   :  { %570 = vmatmul.mubr.bf16.gmra.mrb[48].mxu0 %v1399_v60 }
  0xf8   :  { %v475_v62 = vpop.f32.mrb[0].mxu0  ;;  %v579_v63 = vpop.f32.mrb[0].mxu1 }
  0xf9   :  { %v476_v0 = vadd.f32 %v1623_v61, %v475_v62  ;;  %v477_v1 = vpop.f32.mrb[1].mxu0  ;;  %v580_v2 = vadd.f32 %v1623_v61, %v579_v63  ;;  %v581_v3 = vpop.f32.mrb[1].mxu1 }
  0xfa   :  { %v478_v4 = vpop.f32.mrb[2].mxu0  ;;  %v582_v5 = vpop.f32.mrb[2].mxu1 }
  0xfb   :  { %v479_v6 = vadd.f32 %v1623_v61, %v478_v4  ;;  %v480_v7 = vpop.f32.mrb[3].mxu0  ;;  %v699_v8 = vmax.f32 %v580_v2, 0.0  ;;  %v583_v9 = vadd.f32 %v1623_v61, %v582_v5  ;;  %v584_v10 = vpop.f32.mrb[3].mxu1  ;;  %v673_v11 = vmax.f32 %v476_v0, 0.0 }
  0xfd   :  { %v674_v12 = vmax.f32 %v479_v6, 0.0  ;;  %v700_v13 = vmax.f32 %v583_v9, 0.0 }
  0xff   :  { %v1158_v14 = vpack.c.bf16 %v674_v12, %v673_v11  ;;  %v1223_v15 = vpack.c.bf16 %v700_v13, %v699_v8 }
 0x100   :  { %v483_v16 = vpop.f32.mrb[4].mxu0  ;;  %v587_v17 = vpop.f32.mrb[4].mxu1 }
 0x101   :  { %1159 = vst [vmem:[%s1752_s3] sm:$0xff] %v1158_v14   ;;  %v484_v18 = vadd.f32 %v1623_v61, %v483_v16  ;;  %v485_v19 = vpop.f32.mrb[5].mxu0  ;;  %1287 = vst [vmem:[%s1752_s3 + $0x68] sm:$0xff] %v1223_v15   ;;  %v588_v20 = vadd.f32 %v1623_v61, %v587_v17  ;;  %v589_v21 = vpop.f32.mrb[5].mxu1 }
 0x102   :  { %v486_v22 = vpop.f32.mrb[6].mxu0  ;;  %v590_v23 = vpop.f32.mrb[6].mxu1 }
 0x103   :  { %v487_v24 = vadd.f32 %v1623_v61, %v486_v22  ;;  %v488_v25 = vpop.f32.mrb[7].mxu0  ;;  %v701_v26 = vmax.f32 %v588_v20, 0.0  ;;  %v591_v27 = vadd.f32 %v1623_v61, %v590_v23  ;;  %v592_v28 = vpop.f32.mrb[7].mxu1  ;;  %v675_v29 = vmax.f32 %v484_v18, 0.0 }
 0x105   :  { %v676_v30 = vmax.f32 %v487_v24, 0.0  ;;  %v702_v31 = vmax.f32 %v591_v27, 0.0 }
 0x107   :  { %v1163_v32 = vpack.c.bf16 %v676_v30, %v675_v29  ;;  %v1228_v33 = vpack.c.bf16 %v702_v31, %v701_v26 }
 0x108   :  { %v491_v34 = vpop.f32.mrb[8].mxu0  ;;  %v595_v35 = vpop.f32.mrb[8].mxu1 }
 0x109   :  { %1275 = vst [vmem:[%s1752_s3 + $0x8] sm:$0xff] %v1163_v32   ;;  %v492_v36 = vadd.f32 %v1623_v61, %v491_v34  ;;  %v493_v37 = vpop.f32.mrb[9].mxu0  ;;  %1288 = vst [vmem:[%s1752_s3 + $0x70] sm:$0xff] %v1228_v33   ;;  %v596_v38 = vadd.f32 %v1623_v61, %v595_v35  ;;  %v597_v39 = vpop.f32.mrb[9].mxu1 }
 0x10a   :  { %v494_v40 = vpop.f32.mrb[10].mxu0  ;;  %v598_v41 = vpop.f32.mrb[10].mxu1 }
 0x10b   :  { %v495_v42 = vadd.f32 %v1623_v61, %v494_v40  ;;  %v496_v43 = vpop.f32.mrb[11].mxu0  ;;  %v703_v44 = vmax.f32 %v596_v38, 0.0  ;;  %v599_v45 = vadd.f32 %v1623_v61, %v598_v41  ;;  %v600_v46 = vpop.f32.mrb[11].mxu1  ;;  %v677_v47 = vmax.f32 %v492_v36, 0.0 }
 0x10d   :  { %v678_v48 = vmax.f32 %v495_v42, 0.0  ;;  %v704_v49 = vmax.f32 %v599_v45, 0.0 }
 0x10f   :  { %v1168_v50 = vpack.c.bf16 %v678_v48, %v677_v47  ;;  %v1233_v51 = vpack.c.bf16 %v704_v49, %v703_v44 }
 0x110   :  { %v499_v52 = vpop.f32.mrb[12].mxu0  ;;  %v603_v53 = vpop.f32.mrb[12].mxu1 }
 0x111   :  { %1276 = vst [vmem:[%s1752_s3 + $0x10] sm:$0xff] %v1168_v50   ;;  %v500_v54 = vadd.f32 %v1623_v61, %v499_v52  ;;  %v501_v55 = vpop.f32.mrb[13].mxu0  ;;  %1289 = vst [vmem:[%s1752_s3 + $0x78] sm:$0xff] %v1233_v51   ;;  %v604_v56 = vadd.f32 %v1623_v61, %v603_v53  ;;  %v605_v57 = vpop.f32.mrb[13].mxu1 }
 0x112   :  { %v502_v58 = vpop.f32.mrb[14].mxu0  ;;  %v606_v59 = vpop.f32.mrb[14].mxu1 }
 0x113   :  { %v503_v60 = vadd.f32 %v1623_v61, %v502_v58  ;;  %v504_v62 = vpop.f32.mrb[15].mxu0  ;;  %v705_v63 = vmax.f32 %v604_v56, 0.0  ;;  %v607_v0 = vadd.f32 %v1623_v61, %v606_v59  ;;  %v608_v1 = vpop.f32.mrb[15].mxu1  ;;  %v679_v2 = vmax.f32 %v500_v54, 0.0 }
 0x115   :  { %v680_v3 = vmax.f32 %v503_v60, 0.0  ;;  %v706_v4 = vmax.f32 %v607_v0, 0.0 }
 0x117   :  { %v1173_v5 = vpack.c.bf16 %v680_v3, %v679_v2  ;;  %v1238_v6 = vpack.c.bf16 %v706_v4, %v705_v63 }
 0x118   :  { %v507_v7 = vpop.f32.mrb[16].mxu0  ;;  %v611_v8 = vpop.f32.mrb[16].mxu1 }
 0x119   :  { %1277 = vst [vmem:[%s1752_s3 + $0x18] sm:$0xff] %v1173_v5   ;;  %v508_v9 = vadd.f32 %v1623_v61, %v507_v7  ;;  %v509_v10 = vpop.f32.mrb[17].mxu0  ;;  %1290 = vst [vmem:[%s1752_s3 + $0x80] sm:$0xff] %v1238_v6   ;;  %v612_v11 = vadd.f32 %v1623_v61, %v611_v8  ;;  %v613_v12 = vpop.f32.mrb[17].mxu1 }
 0x11a   :  { %v510_v13 = vpop.f32.mrb[18].mxu0  ;;  %v614_v14 = vpop.f32.mrb[18].mxu1 }
 0x11b   :  { %v511_v15 = vadd.f32 %v1623_v61, %v510_v13  ;;  %v512_v16 = vpop.f32.mrb[19].mxu0  ;;  %v707_v17 = vmax.f32 %v612_v11, 0.0  ;;  %v615_v18 = vadd.f32 %v1623_v61, %v614_v14  ;;  %v616_v19 = vpop.f32.mrb[19].mxu1  ;;  %v681_v20 = vmax.f32 %v508_v9, 0.0 }
 0x11d   :  { %v682_v21 = vmax.f32 %v511_v15, 0.0  ;;  %v708_v22 = vmax.f32 %v615_v18, 0.0 }
 0x11f   :  { %v1178_v23 = vpack.c.bf16 %v682_v21, %v681_v20  ;;  %v1243_v24 = vpack.c.bf16 %v708_v22, %v707_v17 }
 0x120   :  { %v515_v25 = vpop.f32.mrb[20].mxu0  ;;  %v619_v26 = vpop.f32.mrb[20].mxu1 }
 0x121   :  { %1278 = vst [vmem:[%s1752_s3 + $0x20] sm:$0xff] %v1178_v23   ;;  %v516_v27 = vadd.f32 %v1623_v61, %v515_v25  ;;  %v517_v28 = vpop.f32.mrb[21].mxu0  ;;  %1291 = vst [vmem:[%s1752_s3 + $0x88] sm:$0xff] %v1243_v24   ;;  %v620_v29 = vadd.f32 %v1623_v61, %v619_v26  ;;  %v621_v30 = vpop.f32.mrb[21].mxu1 }
 0x122   :  { %v518_v31 = vpop.f32.mrb[22].mxu0  ;;  %v622_v32 = vpop.f32.mrb[22].mxu1 }
 0x123   :  { %v519_v33 = vadd.f32 %v1623_v61, %v518_v31  ;;  %v520_v34 = vpop.f32.mrb[23].mxu0  ;;  %v709_v35 = vmax.f32 %v620_v29, 0.0  ;;  %v623_v36 = vadd.f32 %v1623_v61, %v622_v32  ;;  %v624_v37 = vpop.f32.mrb[23].mxu1  ;;  %v683_v38 = vmax.f32 %v516_v27, 0.0 }
 0x125   :  { %v684_v39 = vmax.f32 %v519_v33, 0.0  ;;  %v710_v40 = vmax.f32 %v623_v36, 0.0 }
 0x127   :  { %v1183_v41 = vpack.c.bf16 %v684_v39, %v683_v38  ;;  %v1248_v42 = vpack.c.bf16 %v710_v40, %v709_v35 }
 0x128   :  { %v523_v43 = vpop.f32.mrb[24].mxu0  ;;  %v627_v44 = vpop.f32.mrb[24].mxu1 }
 0x129   :  { %1279 = vst [vmem:[%s1752_s3 + $0x28] sm:$0xff] %v1183_v41   ;;  %v524_v45 = vadd.f32 %v1623_v61, %v523_v43  ;;  %v525_v46 = vpop.f32.mrb[25].mxu0  ;;  %1292 = vst [vmem:[%s1752_s3 + $0x90] sm:$0xff] %v1248_v42   ;;  %v628_v47 = vadd.f32 %v1623_v61, %v627_v44  ;;  %v629_v48 = vpop.f32.mrb[25].mxu1 }
 0x12a   :  { %v526_v49 = vpop.f32.mrb[26].mxu0  ;;  %v630_v50 = vpop.f32.mrb[26].mxu1 }
 0x12b   :  { %v527_v51 = vadd.f32 %v1623_v61, %v526_v49  ;;  %v528_v52 = vpop.f32.mrb[27].mxu0  ;;  %v711_v53 = vmax.f32 %v628_v47, 0.0  ;;  %v631_v54 = vadd.f32 %v1623_v61, %v630_v50  ;;  %v632_v55 = vpop.f32.mrb[27].mxu1  ;;  %v685_v56 = vmax.f32 %v524_v45, 0.0 }
 0x12d   :  { %v686_v57 = vmax.f32 %v527_v51, 0.0  ;;  %v712_v58 = vmax.f32 %v631_v54, 0.0 }
 0x12f   :  { %v1188_v59 = vpack.c.bf16 %v686_v57, %v685_v56  ;;  %v1253_v60 = vpack.c.bf16 %v712_v58, %v711_v53 }
 0x130   :  { %v531_v62 = vpop.f32.mrb[28].mxu0  ;;  %v635_v63 = vpop.f32.mrb[28].mxu1 }
 0x131   :  { %1280 = vst [vmem:[%s1752_s3 + $0x30] sm:$0xff] %v1188_v59   ;;  %v532_v0 = vadd.f32 %v1623_v61, %v531_v62  ;;  %v533_v1 = vpop.f32.mrb[29].mxu0  ;;  %1293 = vst [vmem:[%s1752_s3 + $0x98] sm:$0xff] %v1253_v60   ;;  %v636_v2 = vadd.f32 %v1623_v61, %v635_v63  ;;  %v637_v3 = vpop.f32.mrb[29].mxu1 }
 0x132   :  { %v534_v4 = vpop.f32.mrb[30].mxu0  ;;  %v638_v5 = vpop.f32.mrb[30].mxu1 }
 0x133   :  { %v535_v6 = vadd.f32 %v1623_v61, %v534_v4  ;;  %v536_v7 = vpop.f32.mrb[31].mxu0  ;;  %v713_v8 = vmax.f32 %v636_v2, 0.0  ;;  %v639_v9 = vadd.f32 %v1623_v61, %v638_v5  ;;  %v640_v10 = vpop.f32.mrb[31].mxu1  ;;  %v687_v11 = vmax.f32 %v532_v0, 0.0 }
 0x135   :  { %v688_v12 = vmax.f32 %v535_v6, 0.0  ;;  %v714_v13 = vmax.f32 %v639_v9, 0.0 }
 0x137   :  { %v1193_v14 = vpack.c.bf16 %v688_v12, %v687_v11  ;;  %v1258_v15 = vpack.c.bf16 %v714_v13, %v713_v8 }
 0x138   :  { %v539_v16 = vpop.f32.mrb[32].mxu0  ;;  %v643_v17 = vpop.f32.mrb[32].mxu1 }
 0x139   :  { %1281 = vst [vmem:[%s1752_s3 + $0x38] sm:$0xff] %v1193_v14   ;;  %v540_v18 = vadd.f32 %v1623_v61, %v539_v16  ;;  %v541_v19 = vpop.f32.mrb[33].mxu0  ;;  %1294 = vst [vmem:[%s1752_s3 + $0xa0] sm:$0xff] %v1258_v15   ;;  %v644_v20 = vadd.f32 %v1623_v61, %v643_v17  ;;  %v645_v21 = vpop.f32.mrb[33].mxu1 }
 0x13a   :  { %v542_v22 = vpop.f32.mrb[34].mxu0  ;;  %v646_v23 = vpop.f32.mrb[34].mxu1 }
 0x13b   :  { %v543_v24 = vadd.f32 %v1623_v61, %v542_v22  ;;  %v544_v25 = vpop.f32.mrb[35].mxu0  ;;  %v715_v26 = vmax.f32 %v644_v20, 0.0  ;;  %v647_v27 = vadd.f32 %v1623_v61, %v646_v23  ;;  %v648_v28 = vpop.f32.mrb[35].mxu1  ;;  %v689_v29 = vmax.f32 %v540_v18, 0.0 }
 0x13d   :  { %v690_v30 = vmax.f32 %v543_v24, 0.0  ;;  %v716_v31 = vmax.f32 %v647_v27, 0.0 }
 0x13f   :  { %v1198_v32 = vpack.c.bf16 %v690_v30, %v689_v29  ;;  %v1263_v33 = vpack.c.bf16 %v716_v31, %v715_v26 }
 0x140   :  { %v547_v34 = vpop.f32.mrb[36].mxu0  ;;  %v651_v35 = vpop.f32.mrb[36].mxu1 }
 0x141   :  { %1282 = vst [vmem:[%s1752_s3 + $0x40] sm:$0xff] %v1198_v32   ;;  %v548_v36 = vadd.f32 %v1623_v61, %v547_v34  ;;  %v549_v37 = vpop.f32.mrb[37].mxu0  ;;  %1295 = vst [vmem:[%s1752_s3 + $0xa8] sm:$0xff] %v1263_v33   ;;  %v652_v38 = vadd.f32 %v1623_v61, %v651_v35  ;;  %v653_v39 = vpop.f32.mrb[37].mxu1 }
 0x142   :  { %v550_v40 = vpop.f32.mrb[38].mxu0  ;;  %v654_v41 = vpop.f32.mrb[38].mxu1 }
 0x143   :  { %v551_v42 = vadd.f32 %v1623_v61, %v550_v40  ;;  %v552_v43 = vpop.f32.mrb[39].mxu0  ;;  %v717_v44 = vmax.f32 %v652_v38, 0.0  ;;  %v655_v45 = vadd.f32 %v1623_v61, %v654_v41  ;;  %v656_v46 = vpop.f32.mrb[39].mxu1  ;;  %v691_v47 = vmax.f32 %v548_v36, 0.0 }
 0x145   :  { %v692_v48 = vmax.f32 %v551_v42, 0.0  ;;  %v718_v49 = vmax.f32 %v655_v45, 0.0 }
 0x147   :  { %v1203_v50 = vpack.c.bf16 %v692_v48, %v691_v47  ;;  %v1268_v51 = vpack.c.bf16 %v718_v49, %v717_v44 }
 0x148   :  { %v555_v52 = vpop.f32.mrb[40].mxu0  ;;  %v659_v53 = vpop.f32.mrb[40].mxu1 }
 0x149   :  { %1283 = vst [vmem:[%s1752_s3 + $0x48] sm:$0xff] %v1203_v50   ;;  %v556_v54 = vadd.f32 %v1623_v61, %v555_v52  ;;  %v557_v55 = vpop.f32.mrb[41].mxu0  ;;  %1296 = vst [vmem:[%s1752_s3 + $0xb0] sm:$0xff] %v1268_v51   ;;  %v660_v56 = vadd.f32 %v1623_v61, %v659_v53  ;;  %v661_v57 = vpop.f32.mrb[41].mxu1 }
 0x14a   :  { %v558_v58 = vpop.f32.mrb[42].mxu0  ;;  %v662_v59 = vpop.f32.mrb[42].mxu1 }
 0x14b   :  { %v559_v60 = vadd.f32 %v1623_v61, %v558_v58  ;;  %v560_v62 = vpop.f32.mrb[43].mxu0  ;;  %v719_v63 = vmax.f32 %v660_v56, 0.0  ;;  %v663_v0 = vadd.f32 %v1623_v61, %v662_v59  ;;  %v664_v1 = vpop.f32.mrb[43].mxu1  ;;  %v693_v2 = vmax.f32 %v556_v54, 0.0 }
 0x14d   :  { %v694_v3 = vmax.f32 %v559_v60, 0.0  ;;  %v720_v4 = vmax.f32 %v663_v0, 0.0 }
 0x14f   :  { %v1208_v5 = vpack.c.bf16 %v694_v3, %v693_v2  ;;  %v1273_v6 = vpack.c.bf16 %v720_v4, %v719_v63 }
 0x150   :  { %v563_v7 = vpop.f32.mrb[44].mxu0  ;;  %v667_v8 = vpop.f32.mrb[44].mxu1 }
 0x151   :  { %1284 = vst [vmem:[%s1752_s3 + $0x50] sm:$0xff] %v1208_v5   ;;  %v564_v9 = vadd.f32 %v1623_v61, %v563_v7  ;;  %v565_v10 = vpop.f32.mrb[45].mxu0  ;;  %1297 = vst [vmem:[%s1752_s3 + $0xb8] sm:$0xff] %v1273_v6   ;;  %v668_v11 = vadd.f32 %v1623_v61, %v667_v8  ;;  %v669_v12 = vpop.f32.mrb[45].mxu1 }
 0x152   :  { %v566_v13 = vpop.f32.mrb[46].mxu0  ;;  %v670_v14 = vpop.f32.mrb[46].mxu1 }
 0x153   :  { %v567_v15 = vadd.f32 %v1623_v61, %v566_v13  ;;  %v568_v16 = vpop.f32.mrb[47].mxu0  ;;  %v721_v17 = vmax.f32 %v668_v11, 0.0  ;;  %v671_v18 = vpop.f32.mrb[47].mxu1  ;;  %v695_v19 = vmax.f32 %v564_v9, 0.0 }
 0x155   :  { %v696_v20 = vmax.f32 %v567_v15, 0.0  ;;  %v1154_v21 = vpack.c.bf16 %v721_v17, %v721_v17 }
 0x157   :  { %v1213_v22 = vpack.c.bf16 %v696_v20, %v695_v19  ;;  %967 = vst [vmem:[%s1752_s3 + $0xc0] sm:$0xf] %v1154_v21 }
 0x158   :  { %v571_v23 = vpop.f32.mrb[48].mxu0 }
 0x159   :  { %1285 = vst [vmem:[%s1752_s3 + $0x58] sm:$0xff] %v1213_v22   ;;  %v572_v24 = vadd.f32 %v1623_v61, %v571_v23  ;;  %v573_v25 = vpop.f32.mrb[49].mxu0 }
 0x15a   :  { %v574_v26 = vpop.f32.mrb[50].mxu0 }
 0x15b   :  { %v575_v27 = vadd.f32 %v1623_v61, %v574_v26  ;;  %v576_v28 = vpop.f32.mrb[51].mxu0  ;;  %v697_v29 = vmax.f32 %v572_v24, 0.0 }
 0x15d   :  { %v698_v30 = vmax.f32 %v575_v27, 0.0 }
 0x15f   :  { %v1218_v31 = vpack.c.bf16 %v698_v30, %v697_v29 }
 0x161   :  { %1286 = vst [vmem:[%s1752_s3 + $0x60] sm:$0xff] %v1218_v31  }

// kernel: autoencoder_forward.13
= control target key start
LH: loop header
LB: loop body
LE: loop exit
PB: predicated region body
PF: predicated region fallthrough
CT: control target
= control target key end

     0   :  { %s3215_s12 = smov 0   ;;  %s3960_s0 = inlined_call_operand.vmem [shape: bf16[2048,72], index: 0, kind: input, shape index: {}]   ;;  %s3961_s1 = inlined_call_operand.vmem [shape: bf16[72,128], index: 1, kind: input, shape index: {}]   ;;  %s3962_s2 = inlined_call_operand.vmem [shape: f32[1,128], index: 2, kind: input, shape index: {}]   ;;  %s3963_s3 = inlined_call_operand.vmem [shape: f32[2048,128], index: 3, kind: output, shape index: {}]  }
   0x1 LB: > { %s2232_s13 = sadd.s32 4294967295, %s3193_s12   ;;  %p2236_p0 = scmp.ge.s32.totalorder %s3193_s12, 1  ;;  %s3193_s12 = sphi %s3215_s12, %s13_s12  }
   0x2   : > { %p138_p1 = scmp.lt.s32.totalorder %s3193_s12, 3 }
   0x4   : > { %p139_p2 = pnand %p2236_p0, %p138_p1 }
   0x6   : > { %142 = sbr.rel (%p139_p2) target bundleno = 525 (0x20d), region = 32 }
   0xd   : > { %v2604_v0 = vld [vmem:[%s3961_s1] sm:$0xff]   ;;  %v2605_v1 = vld [vmem:[%s3961_s1 + $0x8] sm:$0xff]   ;;  %s2237_s18 = sshll.u32 %s2232_s13, 7  ;;  %v2606_v2 = vld [vmem:[%s3961_s1 + $0x10] sm:$0xff]   ;;  %vm666_vm0 = vcmask 588800   ;;  %vm859_vm1 = vcmask 1043456  }
   0xe   : > { %2446 = vmatprep.subr.bf16.mxu0 %v2604_v0  ;;  %2584 = vmatprep.subr.bf16.mxu1 %v2604_v0  ;;  %p163_p3 = scmp.lt.s32.totalorder %s2237_s18, 255  ;;  %v2607_v3 = vld [vmem:[%s3961_s1 + $0x18] sm:$0xff]   ;;  %v2608_v6 = vld [vmem:[%s3961_s1 + $0x20] ss:$0 sps:$4 sm:$0xff]  }
   0xf   : > { %2447 = vmatpush3.bf16.msra.mxu0 %v2604_v0  ;;  %2589 = vmatpush3.bf16.msra.mxu1 %v2604_v0  ;;  %v861_v7 = vsel %vm859_vm1, %v2608_v6, 0 }
  0x10   : > { %2448 = vmatprep.subr.bf16.mxu0 %v2605_v1  ;;  %2585 = vmatprep.subr.bf16.mxu1 %v2605_v1  ;;  %s3997_s18 = smov (!%p163_p3, %s2237_s18), 255 }
  0x11   : > { %s2238_s21 = sshll.u32 %s3997_s18, 2  ;;  %s2240_s4 = sshll.u32 %s3997_s18, 3 }
  0x12   : > { %s3241_s26 = scalar_lea.vmem %s3960_s0, %s2238_s21  ;;  %s3415_s7 = scalar_lea.vmem %s3963_s3, %s2240_s4 }
  0x13   : > { %2449 = vmatpush3.bf16.msra.mxu0 %v2605_v1  ;;  %2590 = vmatpush3.bf16.msra.mxu1 %v2605_v1  ;;  %v2609_v4 = vld [vmem:[%s3241_s26] sm:$0xff]   ;;  %v2611_v8 = vld [vmem:[%s3241_s26 + $0x8] sm:$0xff]   ;;  %v2613_v10 = vld [vmem:[%s3241_s26 + $0x10] sm:$0xff]  }
  0x14   : > { %2450 = vmatprep.subr.bf16.mxu0 %v2606_v2  ;;  %2586 = vmatprep.subr.bf16.mxu1 %v2606_v2  ;;  %v2610_v5 = vld [vmem:[%s3241_s26 + $0x100] sm:$0xff]   ;;  %v2612_v9 = vld [vmem:[%s3241_s26 + $0x108] sm:$0xff]   ;;  %v2614_v11 = vld [vmem:[%s3241_s26 + $0x110] sm:$0xff]  }
  0x15   : > { %2456 = vmatprep.mubr.msk.bf16.mxu0 %vm666_vm0, %v2609_v4  ;;  %2520 = vmatprep.mubr.msk.bf16.mxu1 %vm666_vm0, %v2610_v5  ;;  %v2615_v12 = vld [vmem:[%s3241_s26 + $0x18] sm:$0xff]   ;;  %v2617_v14 = vld [vmem:[%s3241_s26 + $0x20] sm:$0xff]   ;;  %v2619_v16 = vld [vmem:[%s3241_s26 + $0x28] sm:$0xff]  }
  0x16   : > { %v2616_v13 = vld [vmem:[%s3241_s26 + $0x118] sm:$0xff]   ;;  %v2618_v15 = vld [vmem:[%s3241_s26 + $0x120] sm:$0xff]   ;;  %v2620_v17 = vld [vmem:[%s3241_s26 + $0x128] sm:$0xff]  }
  0x17   : > { %2451 = vmatpush3.bf16.msra.mxu0 %v2606_v2  ;;  %2591 = vmatpush3.bf16.msra.mxu1 %v2606_v2  ;;  %v2621_v18 = vld [vmem:[%s3241_s26 + $0x30] sm:$0xff]   ;;  %v2623_v20 = vld [vmem:[%s3241_s26 + $0x38] sm:$0xff]   ;;  %v2625_v22 = vld [vmem:[%s3241_s26 + $0x40] sm:$0xff]  }
  0x18   : > { %2452 = vmatprep.subr.bf16.mxu0 %v2607_v3  ;;  %2587 = vmatprep.subr.bf16.mxu1 %v2607_v3  ;;  %v2622_v19 = vld [vmem:[%s3241_s26 + $0x130] sm:$0xff]   ;;  %v2624_v21 = vld [vmem:[%s3241_s26 + $0x138] sm:$0xff]   ;;  %v2626_v23 = vld [vmem:[%s3241_s26 + $0x140] sm:$0xff]  }
  0x19   : > { %v2627_v24 = vld [vmem:[%s3241_s26 + $0x48] sm:$0xff]   ;;  %v2629_v26 = vld [vmem:[%s3241_s26 + $0x50] sm:$0xff]   ;;  %v2631_v28 = vld [vmem:[%s3241_s26 + $0x58] sm:$0xff]  }
  0x1a   : > { %v2628_v25 = vld [vmem:[%s3241_s26 + $0x148] sm:$0xff]   ;;  %v2630_v27 = vld [vmem:[%s3241_s26 + $0x150] sm:$0xff]   ;;  %v2632_v29 = vld [vmem:[%s3241_s26 + $0x158] sm:$0xff]  }
  0x1b   : > { %2453 = vmatpush3.bf16.msra.mxu0 %v2607_v3  ;;  %2592 = vmatpush3.bf16.msra.mxu1 %v2607_v3  ;;  %v2633_v30 = vld [vmem:[%s3241_s26 + $0x60] sm:$0xff]   ;;  %v2635_v32 = vld [vmem:[%s3241_s26 + $0x68] sm:$0xff]   ;;  %v2637_v34 = vld [vmem:[%s3241_s26 + $0x70] sm:$0xff]  }
  0x1c   : > { %2594 = vmatprep.subr.msk.bf16.mxu0 %vm859_vm1, %v2608_v6  ;;  %2595 = vmatprep.subr.msk.bf16.mxu1 %vm859_vm1, %v2608_v6  ;;  %v2634_v31 = vld [vmem:[%s3241_s26 + $0x160] sm:$0xff]   ;;  %v2636_v33 = vld [vmem:[%s3241_s26 + $0x168] sm:$0xff]   ;;  %v2638_v35 = vld [vmem:[%s3241_s26 + $0x170] sm:$0xff]  }
  0x1d   : > { %v2639_v36 = vld [vmem:[%s3241_s26 + $0x78] sm:$0xff]   ;;  %v2641_v38 = vld [vmem:[%s3241_s26 + $0x80] sm:$0xff]   ;;  %v2643_v40 = vld [vmem:[%s3241_s26 + $0x88] sm:$0xff]  }
  0x1e   : > { %v2640_v37 = vld [vmem:[%s3241_s26 + $0x178] sm:$0xff]   ;;  %v2642_v39 = vld [vmem:[%s3241_s26 + $0x180] sm:$0xff]   ;;  %v2644_v41 = vld [vmem:[%s3241_s26 + $0x188] sm:$0xff]  }
  0x1f   : > { %2455 = vmatpush3.bf16.msra.mxu0 %v861_v7  ;;  %2593 = vmatpush3.bf16.msra.mxu1 %v861_v7  ;;  %v2645_v42 = vld [vmem:[%s3241_s26 + $0x90] sm:$0xff]   ;;  %v2647_v44 = vld [vmem:[%s3241_s26 + $0x98] sm:$0xff]   ;;  %v2649_v46 = vld [vmem:[%s3241_s26 + $0xa0] sm:$0xff]  }
  0x20   : > { %v2646_v43 = vld [vmem:[%s3241_s26 + $0x190] sm:$0xff]   ;;  %v2648_v45 = vld [vmem:[%s3241_s26 + $0x198] sm:$0xff]   ;;  %v2650_v47 = vld [vmem:[%s3241_s26 + $0x1a0] sm:$0xff]  }
  0x21   : > { %v2651_v48 = vld [vmem:[%s3241_s26 + $0xa8] sm:$0xff]   ;;  %v2653_v50 = vld [vmem:[%s3241_s26 + $0xb0] sm:$0xff]   ;;  %v2655_v52 = vld [vmem:[%s3241_s26 + $0xb8] sm:$0xff]  }
  0x22   : > { %2457 = vmatmul.mubr.msk.bf16.vlgmr.msra.gmra.mrb[0].mxu0 %vm666_vm0, %v2611_v8  ;;  %2521 = vmatmul.mubr.msk.bf16.vlgmr.msra.gmra.mrb[0].mxu1 %vm666_vm0, %v2612_v9  ;;  %v2652_v49 = vld [vmem:[%s3241_s26 + $0x1a8] sm:$0xff]   ;;  %v2654_v51 = vld [vmem:[%s3241_s26 + $0x1b0] sm:$0xff]   ;;  %v2656_v53 = vld [vmem:[%s3241_s26 + $0x1b8] sm:$0xff]  }
  0x23   : > { %2460 = vmatprep.mubr.msk.bf16.mxu0 %vm666_vm0, %v2613_v10  ;;  %2524 = vmatprep.mubr.msk.bf16.mxu1 %vm666_vm0, %v2614_v11  ;;  %v2657_v54 = vld [vmem:[%s3241_s26 + $0xc0] sm:$0xff]   ;;  %v2659_v56 = vld [vmem:[%s3241_s26 + $0xc8] sm:$0xff]   ;;  %v2661_v58 = vld [vmem:[%s3241_s26 + $0xd0] sm:$0xff]  }
  0x24   : > { %v2658_v55 = vld [vmem:[%s3241_s26 + $0x1c0] sm:$0xff]   ;;  %v2660_v57 = vld [vmem:[%s3241_s26 + $0x1c8] sm:$0xff]   ;;  %v2662_v59 = vld [vmem:[%s3241_s26 + $0x1d0] sm:$0xff]  }
  0x25   : > { %v2663_v60 = vld [vmem:[%s3241_s26 + $0xd8] sm:$0xff]   ;;  %v2665_v62 = vld [vmem:[%s3241_s26 + $0xe0] sm:$0xff]   ;;  %v2667_v0 = vld [vmem:[%s3241_s26 + $0xe8] sm:$0xff]  }
  0x26   : > { %v2664_v61 = vld [vmem:[%s3241_s26 + $0x1d8] sm:$0xff]   ;;  %v2666_v63 = vld [vmem:[%s3241_s26 + $0x1e0] sm:$0xff]   ;;  %v2668_v1 = vld [vmem:[%s3241_s26 + $0x1e8] sm:$0xff]  }
  0x27   : > { %v2669_v2 = vld [vmem:[%s3241_s26 + $0xf0] sm:$0xff]   ;;  %v2671_v4 = vld [vmem:[%s3241_s26 + $0xf8] sm:$0xff]   ;;  %v3377_v6 = vld [vmem:[%s3962_s2] ss:$0 sm:$0xff] }
  0x28   : > { %v2670_v3 = vld [vmem:[%s3241_s26 + $0x1f0] sm:$0xff]   ;;  %v2672_v5 = vld [vmem:[%s3241_s26 + $0x1f8] sm:$0xff]  }
  0x2a   : > { %2461 = vmatmul.mubr.msk.bf16.gmra.mrb[4].mxu0 %vm666_vm0, %v2615_v12  ;;  %2525 = vmatmul.mubr.msk.bf16.gmra.mrb[4].mxu1 %vm666_vm0, %v2616_v13 }
  0x2b   : > { %2464 = vmatprep.mubr.msk.bf16.mxu0 %vm666_vm0, %v2617_v14  ;;  %2528 = vmatprep.mubr.msk.bf16.mxu1 %vm666_vm0, %v2618_v15 }
  0x32   : > { %2465 = vmatmul.mubr.msk.bf16.gmra.mrb[8].mxu0 %vm666_vm0, %v2619_v16  ;;  %2529 = vmatmul.mubr.msk.bf16.gmra.mrb[8].mxu1 %vm666_vm0, %v2620_v17 }
  0x33   : > { %2468 = vmatprep.mubr.msk.bf16.mxu0 %vm666_vm0, %v2621_v18  ;;  %2532 = vmatprep.mubr.msk.bf16.mxu1 %vm666_vm0, %v2622_v19 }
  0x3a   : > { %2469 = vmatmul.mubr.msk.bf16.gmra.mrb[12].mxu0 %vm666_vm0, %v2623_v20  ;;  %2533 = vmatmul.mubr.msk.bf16.gmra.mrb[12].mxu1 %vm666_vm0, %v2624_v21 }
  0x3b   : > { %2472 = vmatprep.mubr.msk.bf16.mxu0 %vm666_vm0, %v2625_v22  ;;  %2536 = vmatprep.mubr.msk.bf16.mxu1 %vm666_vm0, %v2626_v23 }
  0x42   : > { %2473 = vmatmul.mubr.msk.bf16.gmra.mrb[16].mxu0 %vm666_vm0, %v2627_v24  ;;  %2537 = vmatmul.mubr.msk.bf16.gmra.mrb[16].mxu1 %vm666_vm0, %v2628_v25 }
  0x43   : > { %2476 = vmatprep.mubr.msk.bf16.mxu0 %vm666_vm0, %v2629_v26  ;;  %2540 = vmatprep.mubr.msk.bf16.mxu1 %vm666_vm0, %v2630_v27 }
  0x4a   : > { %2477 = vmatmul.mubr.msk.bf16.gmra.mrb[20].mxu0 %vm666_vm0, %v2631_v28  ;;  %2541 = vmatmul.mubr.msk.bf16.gmra.mrb[20].mxu1 %vm666_vm0, %v2632_v29 }
  0x4b   : > { %2480 = vmatprep.mubr.msk.bf16.mxu0 %vm666_vm0, %v2633_v30  ;;  %2544 = vmatprep.mubr.msk.bf16.mxu1 %vm666_vm0, %v2634_v31 }
  0x52   : > { %2481 = vmatmul.mubr.msk.bf16.gmra.mrb[24].mxu0 %vm666_vm0, %v2635_v32  ;;  %2545 = vmatmul.mubr.msk.bf16.gmra.mrb[24].mxu1 %vm666_vm0, %v2636_v33 }
  0x53   : > { %2484 = vmatprep.mubr.msk.bf16.mxu0 %vm666_vm0, %v2637_v34  ;;  %2548 = vmatprep.mubr.msk.bf16.mxu1 %vm666_vm0, %v2638_v35 }
  0x5a   : > { %2485 = vmatmul.mubr.msk.bf16.gmra.mrb[28].mxu0 %vm666_vm0, %v2639_v36  ;;  %2549 = vmatmul.mubr.msk.bf16.gmra.mrb[28].mxu1 %vm666_vm0, %v2640_v37 }
  0x5b   : > { %2488 = vmatprep.mubr.msk.bf16.mxu0 %vm666_vm0, %v2641_v38  ;;  %2552 = vmatprep.mubr.msk.bf16.mxu1 %vm666_vm0, %v2642_v39 }
  0x62   : > { %2489 = vmatmul.mubr.msk.bf16.gmra.mrb[32].mxu0 %vm666_vm0, %v2643_v40  ;;  %2553 = vmatmul.mubr.msk.bf16.gmra.mrb[32].mxu1 %vm666_vm0, %v2644_v41 }
  0x63   : > { %2492 = vmatprep.mubr.msk.bf16.mxu0 %vm666_vm0, %v2645_v42  ;;  %2556 = vmatprep.mubr.msk.bf16.mxu1 %vm666_vm0, %v2646_v43 }
  0x6a   : > { %2493 = vmatmul.mubr.msk.bf16.gmra.mrb[36].mxu0 %vm666_vm0, %v2647_v44  ;;  %2557 = vmatmul.mubr.msk.bf16.gmra.mrb[36].mxu1 %vm666_vm0, %v2648_v45 }
  0x6b   : > { %2496 = vmatprep.mubr.msk.bf16.mxu0 %vm666_vm0, %v2649_v46  ;;  %2560 = vmatprep.mubr.msk.bf16.mxu1 %vm666_vm0, %v2650_v47 }
  0x72   : > { %2497 = vmatmul.mubr.msk.bf16.gmra.mrb[40].mxu0 %vm666_vm0, %v2651_v48  ;;  %2561 = vmatmul.mubr.msk.bf16.gmra.mrb[40].mxu1 %vm666_vm0, %v2652_v49 }
  0x73   : > { %2500 = vmatprep.mubr.msk.bf16.mxu0 %vm666_vm0, %v2653_v50  ;;  %2564 = vmatprep.mubr.msk.bf16.mxu1 %vm666_vm0, %v2654_v51 }
  0x7a   : > { %2501 = vmatmul.mubr.msk.bf16.gmra.mrb[44].mxu0 %vm666_vm0, %v2655_v52  ;;  %2565 = vmatmul.mubr.msk.bf16.gmra.mrb[44].mxu1 %vm666_vm0, %v2656_v53 }
  0x7b   : > { %2504 = vmatprep.mubr.msk.bf16.mxu0 %vm666_vm0, %v2657_v54  ;;  %2568 = vmatprep.mubr.msk.bf16.mxu1 %vm666_vm0, %v2658_v55 }
  0x82   : > { %2505 = vmatmul.mubr.msk.bf16.gmra.mrb[48].mxu0 %vm666_vm0, %v2659_v56  ;;  %2569 = vmatmul.mubr.msk.bf16.gmra.mrb[48].mxu1 %vm666_vm0, %v2660_v57 }
  0x83   : > { %2508 = vmatprep.mubr.msk.bf16.mxu0 %vm666_vm0, %v2661_v58  ;;  %2572 = vmatprep.mubr.msk.bf16.mxu1 %vm666_vm0, %v2662_v59 }
  0x8a   : > { %2509 = vmatmul.mubr.msk.bf16.gmra.mrb[52].mxu0 %vm666_vm0, %v2663_v60  ;;  %2573 = vmatmul.mubr.msk.bf16.gmra.mrb[52].mxu1 %vm666_vm0, %v2664_v61 }
  0x8b   : > { %2512 = vmatprep.mubr.msk.bf16.mxu0 %vm666_vm0, %v2665_v62  ;;  %2576 = vmatprep.mubr.msk.bf16.mxu1 %vm666_vm0, %v2666_v63 }
  0x92   : > { %2513 = vmatmul.mubr.msk.bf16.gmra.mrb[56].mxu0 %vm666_vm0, %v2667_v0  ;;  %2577 = vmatmul.mubr.msk.bf16.gmra.mrb[56].mxu1 %vm666_vm0, %v2668_v1 }
  0x93   : > { %2516 = vmatprep.mubr.msk.bf16.mxu0 %vm666_vm0, %v2669_v2  ;;  %2580 = vmatprep.mubr.msk.bf16.mxu1 %vm666_vm0, %v2670_v3 }
  0x9a   : > { %2517 = vmatmul.mubr.msk.bf16.gmra.mrb[60].mxu0 %vm666_vm0, %v2671_v4  ;;  %2581 = vmatmul.mubr.msk.bf16.gmra.mrb[60].mxu1 %vm666_vm0, %v2672_v5 }
  0xf5   : > { %v2458_v7 = vpop.f32.mrb[0].mxu0  ;;  %v2522_v8 = vpop.f32.mrb[0].mxu1 }
  0xf6   : > { %v906_v9 = vadd.f32 %v2458_v7, %v3377_v6  ;;  %v1162_v10 = vadd.f32 %v2522_v8, %v3377_v6  ;;  %v897_v11 = vpop.f32.mrb[1].mxu0  ;;  %v1153_v12 = vpop.f32.mrb[1].mxu1 }
  0xf7   : > { %v898_v13 = vadd.f32 %v3377_v6, %v897_v11  ;;  %v1154_v14 = vadd.f32 %v3377_v6, %v1153_v12  ;;  %v2459_v15 = vpop.f32.mrb[2].mxu0  ;;  %v2523_v16 = vpop.f32.mrb[2].mxu1 }
  0xf8   : > { %v1410_v17 = vsub.f32 0.0, %v906_v9  ;;  %v1474_v18 = vsub.f32 0.0, %v1162_v10  ;;  %v909_v19 = vadd.f32 %v2459_v15, %v3377_v6  ;;  %v1165_v20 = vadd.f32 %v2523_v16, %v3377_v6  ;;  %v900_v21 = vpop.f32.mrb[3].mxu0  ;;  %v1156_v22 = vpop.f32.mrb[3].mxu1 }
  0xf9   : > { %v1408_v23 = vsub.f32 0.0, %v898_v13  ;;  %v1472_v24 = vsub.f32 0.0, %v1154_v14  ;;  %v901_v25 = vadd.f32 %v3377_v6, %v900_v21  ;;  %v1157_v26 = vadd.f32 %v3377_v6, %v1156_v22 }
  0xfa   : > { %v1540_v27 = vmul.f32 1.442695, %v1410_v17  ;;  %v1668_v28 = vmul.f32 1.442695, %v1474_v18  ;;  %v1411_v29 = vsub.f32 0.0, %v909_v19  ;;  %v1475_v30 = vsub.f32 0.0, %v1165_v20 }
  0xfb   : > { %v1536_v31 = vmul.f32 1.442695, %v1408_v23  ;;  %v1664_v32 = vmul.f32 1.442695, %v1472_v24  ;;  %v1409_v33 = vsub.f32 0.0, %v901_v25  ;;  %v1473_v34 = vsub.f32 0.0, %v1157_v26 }
  0xfc   : > { %2673 = vpow2.f32 %v1540_v27  ;;  %v1542_v35 = vmul.f32 1.442695, %v1411_v29  ;;  %v1670_v36 = vmul.f32 1.442695, %v1475_v30 }
  0xfd   : > { %2675 = vpow2.f32 %v1668_v28  ;;  %v2462_v37 = vpop.f32.mrb[4].mxu0  ;;  %v2526_v38 = vpop.f32.mrb[4].mxu1  ;;  %v1538_v39 = vmul.f32 1.442695, %v1409_v33  ;;  %v1666_v44 = vmul.f32 1.442695, %v1473_v34 }
  0xfe   : > { %2677 = vpow2.f32 %v1536_v31  ;;  %v922_v40 = vadd.f32 %v2462_v37, %v3377_v6  ;;  %v1178_v41 = vadd.f32 %v2526_v38, %v3377_v6  ;;  %v913_v42 = vpop.f32.mrb[5].mxu0  ;;  %v1169_v43 = vpop.f32.mrb[5].mxu1 }
  0xff   : > { %2679 = vpow2.f32 %v1664_v32  ;;  %v914_v45 = vadd.f32 %v3377_v6, %v913_v42  ;;  %v1170_v46 = vadd.f32 %v3377_v6, %v1169_v43  ;;  %v2463_v47 = vpop.f32.mrb[6].mxu0  ;;  %v2527_v48 = vpop.f32.mrb[6].mxu1 }
 0x100   : > { %2681 = vpow2.f32 %v1542_v35  ;;  %v1414_v49 = vsub.f32 0.0, %v922_v40  ;;  %v1478_v50 = vsub.f32 0.0, %v1178_v41  ;;  %v925_v51 = vadd.f32 %v2463_v47, %v3377_v6  ;;  %v916_v52 = vpop.f32.mrb[7].mxu0  ;;  %v1172_v53 = vpop.f32.mrb[7].mxu1 }
 0x101   : > { %2683 = vpow2.f32 %v1670_v36  ;;  %v1412_v54 = vsub.f32 0.0, %v914_v45  ;;  %v1476_v55 = vsub.f32 0.0, %v1170_v46  ;;  %v1181_v1 = vadd.f32 %v2527_v48, %v3377_v6 }
 0x102   : > { %2685 = vpow2.f32 %v1538_v39  ;;  %v1548_v56 = vmul.f32 1.442695, %v1414_v49  ;;  %v1676_v57 = vmul.f32 1.442695, %v1478_v50  ;;  %v1415_v58 = vsub.f32 0.0, %v925_v51 }
 0x103   : > { %2687 = vpow2.f32 %v1666_v44  ;;  %v1544_v59 = vmul.f32 1.442695, %v1412_v54  ;;  %v1672_v60 = vmul.f32 1.442695, %v1476_v55  ;;  %v917_v11 = vadd.f32 %v3377_v6, %v916_v52 }
 0x104   : > { %2689 = vpow2.f32 %v1548_v56  ;;  %v1550_v61 = vmul.f32 1.442695, %v1415_v58  ;;  %v1479_v18 = vsub.f32 0.0, %v1181_v1  ;;  %v1173_v21 = vadd.f32 %v3377_v6, %v1172_v53 }
 0x105   : > { %2691 = vpow2.f32 %v1676_v57  ;;  %v2466_v62 = vpop.f32.mrb[8].mxu0  ;;  %v2530_v63 = vpop.f32.mrb[8].mxu1  ;;  %v1413_v24 = vsub.f32 0.0, %v917_v11 }
 0x106   : > { %v2674_v0 = vpop.eup %2673  ;;  %2693 = vpow2.f32 %v1544_v59  ;;  %v929_v2 = vpop.f32.mrb[9].mxu0  ;;  %v938_v27 = vadd.f32 %v2466_v62, %v3377_v6  ;;  %v1678_v32 = vmul.f32 1.442695, %v1479_v18  ;;  %v1194_v33 = vadd.f32 %v2530_v63, %v3377_v6 }
 0x107   : > { %v1185_v3 = vpop.f32.mrb[9].mxu1  ;;  %v2676_v4 = vpop.eup %2675  ;;  %v1794_v5 = vadd.f32 1.0, %v2674_v0  ;;  %2695 = vpow2.f32 %v1672_v60  ;;  %v1477_v38 = vsub.f32 0.0, %v1173_v21  ;;  %v930_v39 = vadd.f32 %v3377_v6, %v929_v2 }
 0x108   : > { %v2467_v7 = vpop.f32.mrb[10].mxu0  ;;  %v2531_v8 = vpop.f32.mrb[10].mxu1  ;;  %v1858_v10 = vadd.f32 1.0, %v2676_v4  ;;  %2697 = vpow2.f32 %v1550_v61  ;;  %v1546_v44 = vmul.f32 1.442695, %v1413_v24  ;;  %v1186_v45 = vadd.f32 %v3377_v6, %v1185_v3 }
 0x109   : > { %v2678_v9 = vpop.eup %2677  ;;  %v932_v12 = vpop.f32.mrb[11].mxu0  ;;  %2699 = vrcp.f32 %v1794_v5  ;;  %v1418_v50 = vsub.f32 0.0, %v938_v27  ;;  %v941_v51 = vadd.f32 %v2467_v7, %v3377_v6  ;;  %v1482_v54 = vsub.f32 0.0, %v1194_v33 }
 0x10a   : > { %v2680_v13 = vpop.eup %2679  ;;  %v1792_v14 = vadd.f32 1.0, %v2678_v9  ;;  %v1188_v15 = vpop.f32.mrb[11].mxu1  ;;  %2701 = vrcp.f32 %v1858_v10  ;;  %v1197_v55 = vadd.f32 %v2531_v8, %v3377_v6  ;;  %v1416_v58 = vsub.f32 0.0, %v930_v39 }
 0x10b   : > { %v2682_v16 = vpop.eup %2681  ;;  %v1856_v17 = vadd.f32 1.0, %v2680_v13  ;;  %v933_v59 = vadd.f32 %v3377_v6, %v932_v12  ;;  %v1674_v61 = vmul.f32 1.442695, %v1477_v38  ;;  %v1480_v62 = vsub.f32 0.0, %v1186_v45 }
 0x10c   : > { %v2684_v19 = vpop.eup %2683  ;;  %2703 = vrcp.f32 %v1792_v14  ;;  %v1795_v20 = vadd.f32 1.0, %v2682_v16  ;;  %v1189_v63 = vadd.f32 %v3377_v6, %v1188_v15  ;;  %v1556_v1 = vmul.f32 1.442695, %v1418_v50 }
 0x10d   : > { %v2686_v22 = vpop.eup %2685  ;;  %2705 = vrcp.f32 %v1856_v17  ;;  %v1859_v23 = vadd.f32 1.0, %v2684_v19  ;;  %v2470_v28 = vpop.f32.mrb[12].mxu0  ;;  %v1419_v2 = vsub.f32 0.0, %v941_v51  ;;  %v1684_v8 = vmul.f32 1.442695, %v1482_v54 }
 0x10e   : > { %v2688_v25 = vpop.eup %2687  ;;  %2707 = vrcp.f32 %v1795_v20  ;;  %v1793_v26 = vadd.f32 1.0, %v2686_v22  ;;  %v2534_v29 = vpop.f32.mrb[12].mxu1  ;;  %v954_v3 = vadd.f32 %v2470_v28, %v3377_v6  ;;  %v1483_v9 = vsub.f32 0.0, %v1197_v55 }
 0x10f   : > { %v2690_v30 = vpop.eup %2689  ;;  %2709 = vrcp.f32 %v1859_v23  ;;  %v1857_v31 = vadd.f32 1.0, %v2688_v25  ;;  %v3398_v34 = vpop.f32.mrb[13].mxu0  ;;  %v1210_v10 = vadd.f32 %v2534_v29, %v3377_v6  ;;  %v1552_v14 = vmul.f32 1.442695, %v1416_v58 }
 0x110   : > { %v3400_v35 = vpop.f32.mrb[13].mxu1  ;;  %v2692_v36 = vpop.eup %2691  ;;  %2711 = vrcp.f32 %v1793_v26  ;;  %v1798_v37 = vadd.f32 1.0, %v2690_v30  ;;  %v1417_v15 = vsub.f32 0.0, %v933_v59  ;;  %v1680_v18 = vmul.f32 1.442695, %v1480_v62 }
 0x111   : > { %v3403_v40 = vpop.f32.mrb[14].mxu0  ;;  %v3405_v41 = vpop.f32.mrb[14].mxu1  ;;  %2713 = vrcp.f32 %v1857_v31  ;;  %v1862_v43 = vadd.f32 1.0, %v2692_v36  ;;  %v1481_v19 = vsub.f32 0.0, %v1189_v63  ;;  %v1558_v22 = vmul.f32 1.442695, %v1419_v2 }
 0x112   : > { %v2694_v42 = vpop.eup %2693  ;;  %v3408_v46 = vpop.f32.mrb[15].mxu0  ;;  %2715 = vrcp.f32 %v1798_v37  ;;  %v1422_v23 = vsub.f32 0.0, %v954_v3  ;;  %v1686_v27 = vmul.f32 1.442695, %v1483_v9  ;;  %v1486_v28 = vsub.f32 0.0, %v1210_v10 }
 0x113   : > { %v3410_v47 = vpop.f32.mrb[15].mxu1  ;;  %v2696_v48 = vpop.eup %2695  ;;  %v1796_v49 = vadd.f32 1.0, %v2694_v42  ;;  %2717 = vrcp.f32 %v1862_v43  ;;  %v1554_v30 = vmul.f32 1.442695, %v1417_v15  ;;  %v1202_v58 = vadd.f32 %v3377_v6, %v3400_v35 }
 0x114   : > { %v2698_v52 = vpop.eup %2697  ;;  %v1860_v53 = vadd.f32 1.0, %v2696_v48  ;;  %v1564_v36 = vmul.f32 1.442695, %v1422_v23  ;;  %v1692_v39 = vmul.f32 1.442695, %v1486_v28  ;;  %v957_v63 = vadd.f32 %v3403_v40, %v3377_v6 }
 0x115   : > { %v2700_v56 = vpop.eup %2699  ;;  %2719 = vrcp.f32 %v1796_v49  ;;  %v1799_v57 = vadd.f32 1.0, %v2698_v52  ;;  %v3424_v4 = vpop.f32.mrb[16].mxu0  ;;  %v1213_v40 = vadd.f32 %v3405_v41, %v3377_v6  ;;  %v1205_v41 = vadd.f32 %v3377_v6, %v3410_v47 }
 0x116   : > { %v2702_v60 = vpop.eup %2701  ;;  %2050 = vst [vmem:[%s3415_s7 + $0x10] sm:$0xff] %v2700_v56  ;;  %2721 = vrcp.f32 %v1860_v53  ;;  %v3426_v5 = vpop.f32.mrb[16].mxu1  ;;  %v946_v53 = vadd.f32 %v3377_v6, %v3398_v34 }
 0x117   : > { %v2704_v0 = vpop.eup %2703  ;;  %2114 = vst [vmem:[%s3415_s7 + $0x210] sm:$0xff] %v2702_v60  ;;  %2723 = vrcp.f32 %v1799_v57  ;;  %v3430_v11 = vpop.f32.mrb[17].mxu0 }
 0x118   : > { %v2706_v7 = vpop.eup %2705  ;;  %2048 = vst [vmem:[%s3415_s7] sm:$0xff] %v2704_v0  ;;  %2725 = vpow2.f32 %v1678_v32  ;;  %v3432_v12 = vpop.f32.mrb[17].mxu1  ;;  %v1682_v32 = vmul.f32 1.442695, %v1481_v19  ;;  %v962_v47 = vadd.f32 %v3377_v6, %v3430_v11 }
 0x119   : > { %v2708_v13 = vpop.eup %2707  ;;  %2112 = vst [vmem:[%s3415_s7 + $0x200] sm:$0xff] %v2706_v7  ;;  %2727 = vpow2.f32 %v1546_v44  ;;  %v3435_v16 = vpop.f32.mrb[18].mxu0 }
 0x11a   : > { %v2710_v17 = vpop.eup %2709  ;;  %2051 = vst [vmem:[%s3415_s7 + $0x18] sm:$0xff] %v2708_v13  ;;  %2729 = vpow2.f32 %v1674_v61  ;;  %v3438_v20 = vpop.f32.mrb[18].mxu1  ;;  %v973_v11 = vadd.f32 %v3435_v16, %v3377_v6 }
 0x11b   : > { %v2712_v21 = vpop.eup %2711  ;;  %2115 = vst [vmem:[%s3415_s7 + $0x218] sm:$0xff] %v2710_v17  ;;  %2731 = vpow2.f32 %v1556_v1  ;;  %v3441_v24 = vpop.f32.mrb[19].mxu0  ;;  %v1420_v1 = vsub.f32 0.0, %v946_v53 }
 0x11c   : > { %v3443_v25 = vpop.f32.mrb[19].mxu1  ;;  %v2714_v26 = vpop.eup %2713  ;;  %2049 = vst [vmem:[%s3415_s7 + $0x8] sm:$0xff] %v2712_v21  ;;  %2733 = vpow2.f32 %v1684_v8  ;;  %v1484_v8 = vsub.f32 0.0, %v1202_v58  ;;  %v1423_v21 = vsub.f32 0.0, %v957_v63 }
 0x11d   : > { %v2716_v29 = vpop.eup %2715  ;;  %2113 = vst [vmem:[%s3415_s7 + $0x208] sm:$0xff] %v2714_v26  ;;  %2735 = vpow2.f32 %v1552_v14  ;;  %v3449_v37 = vpop.f32.mrb[20].mxu0 }
 0x11e   : > { %v2718_v31 = vpop.eup %2717  ;;  %2054 = vst [vmem:[%s3415_s7 + $0x30] sm:$0xff] %v2716_v29  ;;  %2737 = vpow2.f32 %v1680_v18  ;;  %v3452_v42 = vpop.f32.mrb[20].mxu1  ;;  %v1560_v29 = vmul.f32 1.442695, %v1420_v1 }
 0x11f   : > { %v2720_v33 = vpop.eup %2719  ;;  %2118 = vst [vmem:[%s3415_s7 + $0x230] sm:$0xff] %v2718_v31  ;;  %2739 = vpow2.f32 %v1558_v22  ;;  %v3455_v44 = vpop.f32.mrb[21].mxu0  ;;  %v949_v22 = vadd.f32 %v3377_v6, %v3408_v46 }
 0x120   : > { %v2722_v38 = vpop.eup %2721  ;;  %2052 = vst [vmem:[%s3415_s7 + $0x20] sm:$0xff] %v2720_v33  ;;  %2741 = vpow2.f32 %v1686_v27  ;;  %v3457_v45 = vpop.f32.mrb[21].mxu1  ;;  %v970_v33 = vadd.f32 %v3424_v4, %v3377_v6  ;;  %v1485_v4 = vsub.f32 0.0, %v1205_v41 }
 0x121   : > { %v2724_v43 = vpop.eup %2723  ;;  %2116 = vst [vmem:[%s3415_s7 + $0x220] sm:$0xff] %v2722_v38  ;;  %2743 = vpow2.f32 %v1554_v30  ;;  %v3460_v49 = vpop.f32.mrb[22].mxu0  ;;  %v1487_v38 = vsub.f32 0.0, %v1213_v40 }
 0x122   : > { %v2726_v48 = vpop.eup %2725  ;;  %2055 = vst [vmem:[%s3415_s7 + $0x38] sm:$0xff] %v2724_v43  ;;  %2745 = vpow2.f32 %v1682_v32  ;;  %v3462_v50 = vpop.f32.mrb[22].mxu1  ;;  %v1688_v32 = vmul.f32 1.442695, %v1484_v8  ;;  %v1424_v8 = vsub.f32 0.0, %v962_v47 }
 0x123   : > { %v2728_v51 = vpop.eup %2727  ;;  %v1863_v52 = vadd.f32 1.0, %v2726_v48  ;;  %2747 = vpow2.f32 %v1564_v36  ;;  %v3466_v54 = vpop.f32.mrb[23].mxu0 }
 0x124   : > { %v3468_v55 = vpop.f32.mrb[23].mxu1  ;;  %v2730_v56 = vpop.eup %2729  ;;  %v1797_v57 = vadd.f32 1.0, %v2728_v51  ;;  %2749 = vpow2.f32 %v1692_v39  ;;  %v1226_v39 = vadd.f32 %v3426_v5, %v3377_v6  ;;  %v1421_v51 = vsub.f32 0.0, %v949_v22 }
 0x125   : > { %v2732_v59 = vpop.eup %2731  ;;  %2751 = vrcp.f32 %v1863_v52  ;;  %v1861_v60 = vadd.f32 1.0, %v2730_v56  ;;  %v3474_v2 = vpop.f32.mrb[24].mxu0  ;;  %v1218_v56 = vadd.f32 %v3377_v6, %v3432_v12  ;;  %v1694_v12 = vmul.f32 1.442695, %v1487_v38 }
 0x126   : > { %v2734_v61 = vpop.eup %2733  ;;  %2753 = vrcp.f32 %v1797_v57  ;;  %v1802_v62 = vadd.f32 1.0, %v2732_v59  ;;  %v3476_v3 = vpop.f32.mrb[24].mxu1  ;;  %v1566_v59 = vmul.f32 1.442695, %v1423_v21  ;;  %v1562_v16 = vmul.f32 1.442695, %v1421_v51 }
 0x127   : > { %v2736_v34 = vpop.eup %2735  ;;  %2755 = vrcp.f32 %v1861_v60  ;;  %v1866_v0 = vadd.f32 1.0, %v2734_v61  ;;  %v3478_v9 = vpop.f32.mrb[25].mxu0  ;;  %v1426_v60 = vsub.f32 0.0, %v970_v33 }
 0x128   : > { %v2738_v7 = vpop.eup %2737  ;;  %2757 = vrcp.f32 %v1802_v62  ;;  %v1800_v35 = vadd.f32 1.0, %v2736_v34  ;;  %v3480_v10 = vpop.f32.mrb[25].mxu1  ;;  %v1490_v34 = vsub.f32 0.0, %v1226_v39 }
 0x129   : > { %v2740_v13 = vpop.eup %2739  ;;  %2759 = vrcp.f32 %v1866_v0  ;;  %v1864_v14 = vadd.f32 1.0, %v2738_v7  ;;  %v3484_v15 = vpop.f32.mrb[26].mxu0  ;;  %v1229_v0 = vadd.f32 %v3438_v20, %v3377_v6  ;;  %v1690_v20 = vmul.f32 1.442695, %v1485_v4 }
 0x12a   : > { %v3486_v17 = vpop.f32.mrb[26].mxu1  ;;  %v2742_v18 = vpop.eup %2741  ;;  %2761 = vrcp.f32 %v1800_v35  ;;  %v1803_v19 = vadd.f32 1.0, %v2740_v13  ;;  %v965_v13 = vadd.f32 %v3377_v6, %v3441_v24  ;;  %v1572_v22 = vmul.f32 1.442695, %v1426_v60 }
 0x12b   : > { %v3490_v23 = vpop.f32.mrb[27].mxu0  ;;  %v3492_v26 = vpop.f32.mrb[27].mxu1  ;;  %2763 = vrcp.f32 %v1864_v14  ;;  %v1867_v28 = vadd.f32 1.0, %v2742_v18  ;;  %v1488_v18 = vsub.f32 0.0, %v1218_v56  ;;  %v1700_v24 = vmul.f32 1.442695, %v1490_v34 }
 0x12c   : > { %v2744_v27 = vpop.eup %2743  ;;  %2765 = vrcp.f32 %v1803_v19 }
 0x12d   : > { %v2746_v30 = vpop.eup %2745  ;;  %v1801_v31 = vadd.f32 1.0, %v2744_v27  ;;  %2767 = vrcp.f32 %v1867_v28  ;;  %v3504_v57 = vpop.f32.mrb[28].mxu0  ;;  %v1427_v27 = vsub.f32 0.0, %v973_v11  ;;  %v1696_v33 = vmul.f32 1.442695, %v1488_v18 }
 0x12e   : > { %v2748_v36 = vpop.eup %2747  ;;  %v1865_v46 = vadd.f32 1.0, %v2746_v30  ;;  %v3506_v58 = vpop.f32.mrb[28].mxu1  ;;  %v1568_v30 = vmul.f32 1.442695, %v1424_v8 }
 0x12f   : > { %v2750_v43 = vpop.eup %2749  ;;  %2769 = vrcp.f32 %v1801_v31  ;;  %v1806_v48 = vadd.f32 1.0, %v2748_v36  ;;  %v3511_v61 = vpop.f32.mrb[29].mxu0  ;;  %v1425_v31 = vsub.f32 0.0, %v965_v13  ;;  %v1574_v39 = vmul.f32 1.442695, %v1427_v27 }
 0x130   : > { %v2752_v52 = vpop.eup %2751  ;;  %2771 = vrcp.f32 %v1865_v46  ;;  %v1870_v53 = vadd.f32 1.0, %v2750_v43  ;;  %v3513_v62 = vpop.f32.mrb[29].mxu1 }
 0x131   : > { %v2754_v5 = vpop.eup %2753  ;;  %2119 = vst [vmem:[%s3415_s7 + $0x238] sm:$0xff] %v2752_v52  ;;  %2773 = vrcp.f32 %v1806_v48  ;;  %v3518_v1 = vpop.f32.mrb[30].mxu0  ;;  %v1570_v4 = vmul.f32 1.442695, %v1425_v31 }
 0x132   : > { %v2756_v63 = vpop.eup %2755  ;;  %2053 = vst [vmem:[%s3415_s7 + $0x28] sm:$0xff] %v2754_v5  ;;  %2775 = vrcp.f32 %v1870_v53  ;;  %v3520_v7 = vpop.f32.mrb[30].mxu1 }
 0x133   : > { %v2758_v35 = vpop.eup %2757  ;;  %2117 = vst [vmem:[%s3415_s7 + $0x228] sm:$0xff] %v2756_v63  ;;  %2777 = vpow2.f32 %v1560_v29  ;;  %v3525_v14 = vpop.f32.mrb[31].mxu0  ;;  %v1491_v29 = vsub.f32 0.0, %v1229_v0  ;;  %v1221_v63 = vadd.f32 %v3377_v6, %v3443_v25  ;;  %v986_v25 = vadd.f32 %v3449_v37, %v3377_v6 }
 0x134   : > { %v2760_v40 = vpop.eup %2759  ;;  %2058 = vst [vmem:[%s3415_s7 + $0x50] sm:$0xff] %v2758_v35  ;;  %2779 = vpow2.f32 %v1688_v32  ;;  %v3528_v19 = vpop.f32.mrb[31].mxu1  ;;  %v978_v37 = vadd.f32 %v3377_v6, %v3455_v44  ;;  %v989_v44 = vadd.f32 %v3460_v49, %v3377_v6 }
 0x135   : > { %v2762_v21 = vpop.eup %2761  ;;  %2122 = vst [vmem:[%s3415_s7 + $0x250] sm:$0xff] %v2760_v40  ;;  %2781 = vpow2.f32 %v1566_v59  ;;  %v3534_v36 = vpop.f32.mrb[32].mxu0  ;;  %v1702_v51 = vmul.f32 1.442695, %v1491_v29  ;;  %v1242_v29 = vadd.f32 %v3452_v42, %v3377_v6  ;;  %v1234_v42 = vadd.f32 %v3377_v6, %v3457_v45 }
 0x136   : > { %v2764_v28 = vpop.eup %2763  ;;  %2056 = vst [vmem:[%s3415_s7 + $0x40] sm:$0xff] %v2762_v21  ;;  %2783 = vpow2.f32 %v1694_v12  ;;  %v3536_v46 = vpop.f32.mrb[32].mxu1  ;;  %v1489_v21 = vsub.f32 0.0, %v1221_v63 }
 0x137   : > { %v2766_v41 = vpop.eup %2765  ;;  %2120 = vst [vmem:[%s3415_s7 + $0x240] sm:$0xff] %v2764_v28  ;;  %2785 = vpow2.f32 %v1562_v16  ;;  %v3539_v43 = vpop.f32.mrb[33].mxu0 }
 0x138   : > { %v2768_v32 = vpop.eup %2767  ;;  %2059 = vst [vmem:[%s3415_s7 + $0x58] sm:$0xff] %v2766_v41  ;;  %2787 = vpow2.f32 %v1690_v20  ;;  %v3542_v47 = vpop.f32.mrb[33].mxu1 }
 0x139   : > { %v2770_v38 = vpop.eup %2769  ;;  %2123 = vst [vmem:[%s3415_s7 + $0x258] sm:$0xff] %v2768_v32  ;;  %2789 = vpow2.f32 %v1572_v22  ;;  %v3544_v52 = vpop.f32.mrb[34].mxu0 }
 0x13a   : > { %v2772_v48 = vpop.eup %2771  ;;  %2057 = vst [vmem:[%s3415_s7 + $0x48] sm:$0xff] %v2770_v38  ;;  %2791 = vpow2.f32 %v1700_v24  ;;  %v3547_v56 = vpop.f32.mrb[34].mxu1 }
 0x13b   : > { %v2774_v53 = vpop.eup %2773  ;;  %2121 = vst [vmem:[%s3415_s7 + $0x248] sm:$0xff] %v2772_v48  ;;  %2793 = vpow2.f32 %v1568_v30  ;;  %v3549_v5 = vpop.f32.mrb[35].mxu0 }
 0x13c   : > { %v2776_v59 = vpop.eup %2775  ;;  %2062 = vst [vmem:[%s3415_s7 + $0x70] sm:$0xff] %v2774_v53  ;;  %2795 = vpow2.f32 %v1696_v33  ;;  %v3552_v60 = vpop.f32.mrb[35].mxu1 }
 0x13d   : > { %v2778_v11 = vpop.eup %2777  ;;  %2126 = vst [vmem:[%s3415_s7 + $0x270] sm:$0xff] %v2776_v59  ;;  %2797 = vpow2.f32 %v1574_v39  ;;  %v3557_v13 = vpop.f32.mrb[36].mxu0  ;;  %v1430_v59 = vsub.f32 0.0, %v986_v25 }
 0x13e   : > { %v2780_v12 = vpop.eup %2779  ;;  %v1804_v34 = vadd.f32 1.0, %v2778_v11  ;;  %2799 = vpow2.f32 %v1702_v51  ;;  %v3559_v40 = vpop.f32.mrb[36].mxu1 }
 0x13f   : > { %v2782_v0 = vpop.eup %2781  ;;  %v1868_v35 = vadd.f32 1.0, %v2780_v12  ;;  %2801 = vpow2.f32 %v1570_v4  ;;  %v3563_v22 = vpop.f32.mrb[37].mxu0  ;;  %v1698_v4 = vmul.f32 1.442695, %v1489_v21  ;;  %v1494_v12 = vsub.f32 0.0, %v1242_v29 }
 0x140   : > { %v2784_v16 = vpop.eup %2783  ;;  %2803 = vrcp.f32 %v1804_v34  ;;  %v1807_v8 = vadd.f32 1.0, %v2782_v0  ;;  %v3565_v27 = vpop.f32.mrb[37].mxu1  ;;  %v1237_v29 = vadd.f32 %v3377_v6, %v3468_v55 }
 0x141   : > { %v2786_v20 = vpop.eup %2785  ;;  %2805 = vrcp.f32 %v1868_v35  ;;  %v1871_v18 = vadd.f32 1.0, %v2784_v16  ;;  %v3569_v41 = vpop.f32.mrb[38].mxu0  ;;  %v1428_v35 = vsub.f32 0.0, %v978_v37  ;;  %v1245_v16 = vadd.f32 %v3462_v50, %v3377_v6 }
 0x142   : > { %v2788_v28 = vpop.eup %2787  ;;  %2807 = vrcp.f32 %v1807_v8  ;;  %v1805_v24 = vadd.f32 1.0, %v2786_v20  ;;  %v3571_v30 = vpop.f32.mrb[38].mxu1  ;;  %v1492_v20 = vsub.f32 0.0, %v1234_v42  ;;  %v1431_v37 = vsub.f32 0.0, %v989_v44 }
 0x143   : > { %v2790_v31 = vpop.eup %2789  ;;  %2809 = vrcp.f32 %v1871_v18  ;;  %v1869_v32 = vadd.f32 1.0, %v2788_v28  ;;  %v3575_v33 = vpop.f32.mrb[39].mxu0  ;;  %v981_v18 = vadd.f32 %v3377_v6, %v3466_v54  ;;  %v1708_v55 = vmul.f32 1.442695, %v1494_v12 }
 0x144   : > { %v3577_v38 = vpop.f32.mrb[39].mxu1  ;;  %v2792_v39 = vpop.eup %2791  ;;  %2811 = vrcp.f32 %v1805_v24  ;;  %v1810_v48 = vadd.f32 1.0, %v2790_v31  ;;  %v1580_v24 = vmul.f32 1.442695, %v1430_v59  ;;  %v1258_v59 = vadd.f32 %v3476_v3, %v3377_v6 }
 0x145   : > { %v2794_v51 = vpop.eup %2793  ;;  %2813 = vrcp.f32 %v1869_v32  ;;  %v1874_v53 = vadd.f32 1.0, %v2792_v39  ;;  %v3587_v21 = vpop.f32.mrb[40].mxu0  ;;  %v1002_v39 = vadd.f32 %v3474_v2, %v3377_v6  ;;  %v1576_v2 = vmul.f32 1.442695, %v1428_v35 }
 0x146   : > { %v2796_v11 = vpop.eup %2795  ;;  %2815 = vrcp.f32 %v1810_v48  ;;  %v1808_v63 = vadd.f32 1.0, %v2794_v51  ;;  %v3589_v25 = vpop.f32.mrb[40].mxu1  ;;  %v1704_v12 = vmul.f32 1.442695, %v1492_v20  ;;  %v1493_v3 = vsub.f32 0.0, %v1237_v29 }
 0x147   : > { %v2798_v34 = vpop.eup %2797  ;;  %2817 = vrcp.f32 %v1874_v53  ;;  %v1872_v0 = vadd.f32 1.0, %v2796_v11  ;;  %v3593_v50 = vpop.f32.mrb[41].mxu0  ;;  %v1495_v53 = vsub.f32 0.0, %v1245_v16  ;;  %v1250_v16 = vadd.f32 %v3377_v6, %v3480_v10 }
 0x148   : > { %v2800_v45 = vpop.eup %2799  ;;  %2819 = vrcp.f32 %v1808_v63  ;;  %v1811_v8 = vadd.f32 1.0, %v2798_v34  ;;  %v3595_v31 = vpop.f32.mrb[41].mxu1  ;;  %v1429_v34 = vsub.f32 0.0, %v981_v18 }
 0x149   : > { %v2802_v49 = vpop.eup %2801  ;;  %2821 = vrcp.f32 %v1872_v0  ;;  %v1875_v28 = vadd.f32 1.0, %v2800_v45  ;;  %v3599_v48 = vpop.f32.mrb[42].mxu0  ;;  %v994_v0 = vadd.f32 %v3377_v6, %v3478_v9  ;;  %v1710_v18 = vmul.f32 1.442695, %v1495_v53 }
 0x14a   : > { %v2804_v32 = vpop.eup %2803  ;;  %2823 = vrcp.f32 %v1811_v8  ;;  %v1809_v54 = vadd.f32 1.0, %v2802_v49  ;;  %v3601_v42 = vpop.f32.mrb[42].mxu1  ;;  %v1582_v49 = vmul.f32 1.442695, %v1431_v37  ;;  %v1498_v9 = vsub.f32 0.0, %v1258_v59 }
 0x14b   : > { %v2806_v51 = vpop.eup %2805  ;;  %2060 = vst [vmem:[%s3415_s7 + $0x60] sm:$0xff] %v2804_v32  ;;  %2825 = vrcp.f32 %v1875_v28  ;;  %v3606_v11 = vpop.f32.mrb[43].mxu0  ;;  %v1434_v28 = vsub.f32 0.0, %v1002_v39  ;;  %v1432_v20 = vsub.f32 0.0, %v994_v0  ;;  %v1496_v37 = vsub.f32 0.0, %v1250_v16 }
 0x14c   : > { %v3608_v63 = vpop.f32.mrb[43].mxu1  ;;  %v2808_v44 = vpop.eup %2807  ;;  %2124 = vst [vmem:[%s3415_s7 + $0x260] sm:$0xff] %v2806_v51  ;;  %2827 = vrcp.f32 %v1809_v54  ;;  %v1706_v54 = vmul.f32 1.442695, %v1493_v3 }
 0x14d   : > { %v2810_v45 = vpop.eup %2809  ;;  %2063 = vst [vmem:[%s3415_s7 + $0x78] sm:$0xff] %v2808_v44  ;;  %2829 = vpow2.f32 %v1698_v4  ;;  %v1578_v4 = vmul.f32 1.442695, %v1429_v34  ;;  %v3619_v29 = vpop.f32.mrb[44].mxu0  ;;  %v1588_v53 = vmul.f32 1.442695, %v1434_v28 }
 0x14e   : > { %v2812_v8 = vpop.eup %2811  ;;  %2127 = vst [vmem:[%s3415_s7 + $0x278] sm:$0xff] %v2810_v45  ;;  %2831 = vpow2.f32 %v1580_v24  ;;  %v3621_v10 = vpop.f32.mrb[44].mxu1  ;;  %v1716_v34 = vmul.f32 1.442695, %v1498_v9  ;;  %v1584_v3 = vmul.f32 1.442695, %v1432_v20 }
 0x14f   : > { %v2814_v35 = vpop.eup %2813  ;;  %2061 = vst [vmem:[%s3415_s7 + $0x68] sm:$0xff] %v2812_v8  ;;  %2833 = vpow2.f32 %v1708_v55  ;;  %v3624_v39 = vpop.f32.mrb[45].mxu0  ;;  %v1712_v8 = vmul.f32 1.442695, %v1496_v37 }
 0x150   : > { %v2816_v32 = vpop.eup %2815  ;;  %2125 = vst [vmem:[%s3415_s7 + $0x268] sm:$0xff] %v2814_v35  ;;  %2835 = vpow2.f32 %v1576_v2  ;;  %v3626_v51 = vpop.f32.mrb[45].mxu1  ;;  %v1005_v35 = vadd.f32 %v3484_v15, %v3377_v6 }
 0x151   : > { %v2818_v24 = vpop.eup %2817  ;;  %2066 = vst [vmem:[%s3415_s7 + $0x90] sm:$0xff] %v2816_v32  ;;  %2837 = vpow2.f32 %v1704_v12  ;;  %v3629_v59 = vpop.f32.mrb[46].mxu0  ;;  %v1261_v32 = vadd.f32 %v3486_v17, %v3377_v6 }
 0x152   : > { %v2820_v55 = vpop.eup %2819  ;;  %2130 = vst [vmem:[%s3415_s7 + $0x290] sm:$0xff] %v2818_v24  ;;  %2839 = vpow2.f32 %v1582_v49  ;;  %v3631_v44 = vpop.f32.mrb[46].mxu1  ;;  %v1435_v17 = vsub.f32 0.0, %v1005_v35 }
 0x153   : > { %v2822_v2 = vpop.eup %2821  ;;  %2064 = vst [vmem:[%s3415_s7 + $0x80] sm:$0xff] %v2820_v55  ;;  %2841 = vpow2.f32 %v1710_v18  ;;  %v3634_v0 = vpop.f32.mrb[47].mxu0 }
 0x154   : > { %v3636_v45 = vpop.f32.mrb[47].mxu1  ;;  %v2824_v12 = vpop.eup %2823  ;;  %2128 = vst [vmem:[%s3415_s7 + $0x280] sm:$0xff] %v2822_v2  ;;  %2843 = vpow2.f32 %v1578_v4 }
 0x155   : > { %v2826_v16 = vpop.eup %2825  ;;  %2067 = vst [vmem:[%s3415_s7 + $0x98] sm:$0xff] %v2824_v12  ;;  %2845 = vpow2.f32 %v1706_v54  ;;  %v3646_v4 = vpop.f32.mrb[48].mxu0 }
 0x156   : > { %v2828_v49 = vpop.eup %2827  ;;  %2131 = vst [vmem:[%s3415_s7 + $0x298] sm:$0xff] %v2826_v16  ;;  %2847 = vpow2.f32 %v1588_v53  ;;  %v3648_v20 = vpop.f32.mrb[48].mxu1 }
 0x157   : > { %v2830_v28 = vpop.eup %2829  ;;  %2065 = vst [vmem:[%s3415_s7 + $0x88] sm:$0xff] %v2828_v49  ;;  %2849 = vpow2.f32 %v1716_v34  ;;  %v3650_v37 = vpop.f32.mrb[49].mxu0 }
 0x158   : > { %v2832_v18 = vpop.eup %2831  ;;  %v1873_v9 = vadd.f32 1.0, %v2830_v28  ;;  %2851 = vpow2.f32 %v1584_v3  ;;  %v3652_v55 = vpop.f32.mrb[49].mxu1  ;;  %v1499_v28 = vsub.f32 0.0, %v1261_v32 }
 0x159   : > { %v2834_v24 = vpop.eup %2833  ;;  %v1814_v54 = vadd.f32 1.0, %v2832_v18  ;;  %2853 = vpow2.f32 %v1712_v8  ;;  %v3654_v2 = vpop.f32.mrb[50].mxu0 }
 0x15a   : > { %v2836_v53 = vpop.eup %2835  ;;  %2855 = vrcp.f32 %v1873_v9  ;;  %v1878_v15 = vadd.f32 1.0, %v2834_v24  ;;  %3964 = vst [vmem:[#allocation2_spill] sm:$0xff] %v3654_v2  ;;  %v3656_v34 = vpop.f32.mrb[50].mxu1  ;;  %v3665_v24 = vld [vmem:[%s3962_s2] ss:$0 sm:$0xff] }
 0x15b   : > { %3965 = vst [vmem:[#allocation3_spill] sm:$0xff] %v3656_v34  ;;  %v2838_v12 = vpop.eup %2837  ;;  %2857 = vrcp.f32 %v1814_v54  ;;  %v1812_v6 = vadd.f32 1.0, %v2836_v53  ;;  %v3658_v3 = vpop.f32.mrb[51].mxu0  ;;  %v997_v54 = vadd.f32 %v3665_v24, %v3490_v23  ;;  %v1718_v34 = vmul.f32 1.442695, %v1499_v28 }
 0x15c   : > { %3966 = vst [vmem:[#allocation4_spill] sm:$0xff] %v3658_v3  ;;  %v3660_v16 = vpop.f32.mrb[51].mxu1  ;;  %v2840_v8 = vpop.eup %2839  ;;  %2859 = vrcp.f32 %v1878_v15  ;;  %v1876_v49 = vadd.f32 1.0, %v2838_v12  ;;  %v1590_v12 = vmul.f32 1.442695, %v1435_v17  ;;  %v1274_v23 = vadd.f32 %v3665_v24, %v3506_v58 }
 0x15d   : > { %3967 = vst [vmem:[#allocation5_spill] sm:$0xff] %v3660_v16  ;;  %v2842_v18 = vpop.eup %2841  ;;  %2861 = vrcp.f32 %v1812_v6  ;;  %v1815_v9 = vadd.f32 1.0, %v2840_v8  ;;  %v1253_v16 = vadd.f32 %v3665_v24, %v3492_v26  ;;  %v1018_v6 = vadd.f32 %v3665_v24, %v3504_v57  ;;  %v3675_v2 = vpop.f32.mrb[52].mxu0 }
 0x15e   : > { %v2844_v35 = vpop.eup %2843  ;;  %2863 = vrcp.f32 %v1876_v49  ;;  %v1879_v53 = vadd.f32 1.0, %v2842_v18  ;;  %v3677_v49 = vpop.f32.mrb[52].mxu1  ;;  %v1010_v17 = vadd.f32 %v3665_v24, %v3511_v61  ;;  %v1266_v58 = vadd.f32 %v3665_v24, %v3513_v62 }
 0x15f   : > { %v2846_v15 = vpop.eup %2845  ;;  %2865 = vrcp.f32 %v1815_v9  ;;  %v1813_v32 = vadd.f32 1.0, %v2844_v35  ;;  %3968 = vst [vmem:[#allocation6_spill] sm:$0xff] %v3677_v49  ;;  %v1433_v9 = vsub.f32 0.0, %v997_v54  ;;  %v3681_v35 = vpop.f32.mrb[53].mxu0  ;;  %v1438_v61 = vsub.f32 0.0, %v1018_v6 }
 0x160   : > { %v2848_v8 = vpop.eup %2847  ;;  %2867 = vrcp.f32 %v1879_v53  ;;  %v1877_v3 = vadd.f32 1.0, %v2846_v15  ;;  %3969 = vst [vmem:[#allocation7_spill] sm:$0xff] %v3681_v35  ;;  %v3683_v57 = vpop.f32.mrb[53].mxu1  ;;  %v1497_v15 = vsub.f32 0.0, %v1253_v16 }
 0x161   : > { %v2850_v18 = vpop.eup %2849  ;;  %2869 = vrcp.f32 %v1813_v32  ;;  %v1818_v26 = vadd.f32 1.0, %v2848_v8  ;;  %3970 = vst [vmem:[#allocation8_spill] sm:$0xff] %v3683_v57  ;;  %v3687_v49 = vpop.f32.mrb[54].mxu0  ;;  %v1021_v57 = vadd.f32 %v3665_v24, %v3518_v1  ;;  %v1586_v6 = vmul.f32 1.442695, %v1433_v9 }
 0x162   : > { %v2852_v53 = vpop.eup %2851  ;;  %2871 = vrcp.f32 %v1877_v3  ;;  %v1882_v28 = vadd.f32 1.0, %v2850_v18  ;;  %3971 = vst [vmem:[#allocation9_spill] sm:$0xff] %v3687_v49  ;;  %v3689_v32 = vpop.f32.mrb[54].mxu1  ;;  %v1502_v18 = vsub.f32 0.0, %v1274_v23  ;;  %v1013_v1 = vadd.f32 %v3665_v24, %v3525_v14 }
 0x163   : > { %3972 = vst [vmem:[#allocation10_spill] sm:$0xff] %v3689_v32  ;;  %v2854_v54 = vpop.eup %2853  ;;  %2873 = vrcp.f32 %v1818_v26  ;;  %v1816_v8 = vadd.f32 1.0, %v2852_v53  ;;  %v3693_v35 = vpop.f32.mrb[55].mxu0  ;;  %v1277_v32 = vadd.f32 %v3665_v24, %v3520_v7  ;;  %v1436_v26 = vsub.f32 0.0, %v1010_v17 }
 0x164   : > { %v3695_v3 = vpop.f32.mrb[55].mxu1  ;;  %v2856_v16 = vpop.eup %2855  ;;  %2875 = vrcp.f32 %v1882_v28  ;;  %v1880_v62 = vadd.f32 1.0, %v2854_v54  ;;  %v1500_v28 = vsub.f32 0.0, %v1266_v58  ;;  %v1269_v23 = vadd.f32 %v3665_v24, %v3528_v19 }
 0x165   : > { %3973 = vst [vmem:[#allocation11_spill] sm:$0xff] %v3695_v3  ;;  %v2858_v49 = vpop.eup %2857  ;;  %2129 = vst [vmem:[%s3415_s7 + $0x288] sm:$0xff] %v2856_v16  ;;  %2877 = vrcp.f32 %v1816_v8  ;;  %v1714_v3 = vmul.f32 1.442695, %v1497_v15  ;;  %v1596_v7 = vmul.f32 1.442695, %v1438_v61  ;;  %v1034_v9 = vadd.f32 %v3665_v24, %v3534_v36 }
 0x166   : > { %v2860_v53 = vpop.eup %2859  ;;  %2070 = vst [vmem:[%s3415_s7 + $0xb0] sm:$0xff] %v2858_v49  ;;  %2879 = vrcp.f32 %v1880_v62  ;;  %v1439_v8 = vsub.f32 0.0, %v1021_v57  ;;  %v1724_v14 = vmul.f32 1.442695, %v1502_v18  ;;  %v1503_v49 = vsub.f32 0.0, %v1277_v32  ;;  %v3709_v15 = vpop.f32.mrb[56].mxu0 }
 0x167   : > { %v2862_v54 = vpop.eup %2861  ;;  %2134 = vst [vmem:[%s3415_s7 + $0x2b0] sm:$0xff] %v2860_v53  ;;  %2881 = vpow2.f32 %v1590_v12  ;;  %v3711_v58 = vpop.f32.mrb[56].mxu1  ;;  %v1592_v12 = vmul.f32 1.442695, %v1436_v26  ;;  %v1437_v61 = vsub.f32 0.0, %v1013_v1  ;;  %v1501_v32 = vsub.f32 0.0, %v1269_v23 }
 0x168   : > { %v2864_v17 = vpop.eup %2863  ;;  %2068 = vst [vmem:[%s3415_s7 + $0xa0] sm:$0xff] %v2862_v54  ;;  %2883 = vpow2.f32 %v1718_v34  ;;  %v3714_v57 = vpop.f32.mrb[57].mxu0  ;;  %v1720_v34 = vmul.f32 1.442695, %v1500_v28  ;;  %v1442_v26 = vsub.f32 0.0, %v1034_v9 }
 0x169   : > { %v2866_v19 = vpop.eup %2865  ;;  %2132 = vst [vmem:[%s3415_s7 + $0x2a0] sm:$0xff] %v2864_v17  ;;  %2885 = vpow2.f32 %v1586_v6  ;;  %v3716_v16 = vpop.f32.mrb[57].mxu1  ;;  %v1598_v6 = vmul.f32 1.442695, %v1439_v8  ;;  %v1594_v23 = vmul.f32 1.442695, %v1437_v61 }
 0x16a   : > { %v2868_v36 = vpop.eup %2867  ;;  %2071 = vst [vmem:[%s3415_s7 + $0xb8] sm:$0xff] %v2866_v19  ;;  %2887 = vpow2.f32 %v1714_v3  ;;  %v3719_v62 = vpop.f32.mrb[58].mxu0  ;;  %v1726_v3 = vmul.f32 1.442695, %v1503_v49  ;;  %v1604_v9 = vmul.f32 1.442695, %v1442_v26 }
 0x16b   : > { %v3721_v18 = vpop.f32.mrb[58].mxu1  ;;  %v2870_v53 = vpop.eup %2869  ;;  %2135 = vst [vmem:[%s3415_s7 + $0x2b8] sm:$0xff] %v2868_v36  ;;  %2889 = vpow2.f32 %v1596_v7  ;;  %v1722_v7 = vmul.f32 1.442695, %v1501_v32 }
 0x16c   : > { %v3724_v1 = vpop.f32.mrb[59].mxu0  ;;  %v3726_v54 = vpop.f32.mrb[59].mxu1  ;;  %2069 = vst [vmem:[%s3415_s7 + $0xa8] sm:$0xff] %v2870_v53  ;;  %2891 = vpow2.f32 %v1724_v14 }
 0x16d   : > { %v2872_v17 = vpop.eup %2871  ;;  %2893 = vpow2.f32 %v1592_v12  ;;  %v3733_v53 = vpop.f32.mrb[60].mxu0 }
 0x16e   : > { %v2874_v28 = vpop.eup %2873  ;;  %2133 = vst [vmem:[%s3415_s7 + $0x2a8] sm:$0xff] %v2872_v17  ;;  %2895 = vpow2.f32 %v1720_v34  ;;  %v3735_v14 = vpop.f32.mrb[60].mxu1 }
 0x16f   : > { %v2876_v19 = vpop.eup %2875  ;;  %2074 = vst [vmem:[%s3415_s7 + $0xd0] sm:$0xff] %v2874_v28  ;;  %2897 = vpow2.f32 %v1598_v6  ;;  %v3738_v12 = vpop.f32.mrb[61].mxu0  ;;  %v1290_v6 = vadd.f32 %v3665_v24, %v3536_v46 }
 0x170   : > { %v2878_v8 = vpop.eup %2877  ;;  %2138 = vst [vmem:[%s3415_s7 + $0x2d0] sm:$0xff] %v2876_v19  ;;  %2899 = vpow2.f32 %v1726_v3  ;;  %3974 = vst [vmem:[#allocation12_spill] sm:$0xff] %v3738_v12  ;;  %v3740_v61 = vpop.f32.mrb[61].mxu1 }
 0x171   : > { %v2880_v36 = vpop.eup %2879  ;;  %2072 = vst [vmem:[%s3415_s7 + $0xc0] sm:$0xff] %v2878_v8  ;;  %2901 = vpow2.f32 %v1594_v23  ;;  %3975 = vst [vmem:[#allocation13_spill] sm:$0xff] %v3740_v61  ;;  %v3744_v26 = vpop.f32.mrb[62].mxu0  ;;  %v1026_v23 = vadd.f32 %v3665_v24, %v3539_v43 }
 0x172   : > { %v2882_v49 = vpop.eup %2881  ;;  %2136 = vst [vmem:[%s3415_s7 + $0x2c0] sm:$0xff] %v2880_v36  ;;  %2903 = vpow2.f32 %v1722_v7  ;;  %3976 = vst [vmem:[#allocation14_spill] sm:$0xff] %v3744_v26  ;;  %v3746_v17 = vpop.f32.mrb[62].mxu1  ;;  %v1282_v26 = vadd.f32 %v3665_v24, %v3542_v47  ;;  %v1293_v47 = vadd.f32 %v3665_v24, %v3547_v56  ;;  %v1050_v56 = vadd.f32 %v3665_v24, %v3557_v13 }
 0x173   : > { %v2884_v34 = vpop.eup %2883  ;;  %v1819_v32 = vadd.f32 1.0, %v2882_v49  ;;  %3977 = vst [vmem:[#allocation15_spill] sm:$0xff] %v3746_v17  ;;  %2905 = vpow2.f32 %v1604_v9  ;;  %v3750_v19 = vpop.f32.mrb[63].mxu0  ;;  %v1506_v9 = vsub.f32 0.0, %v1290_v6  ;;  %v1440_v12 = vsub.f32 0.0, %v1026_v23 }
 0x174   : > { %v2886_v3 = vpop.eup %2885  ;;  %v1883_v28 = vadd.f32 1.0, %v2884_v34  ;;  %3978 = vst [vmem:[#allocation16_spill] sm:$0xff] %v3750_v19  ;;  %v3752_v8 = vpop.f32.mrb[63].mxu1 }
 0x175   : > { %3979 = vst [vmem:[#allocation17_spill] sm:$0xff] %v3752_v8  ;;  %v2888_v36 = vpop.eup %2887  ;;  %2907 = vrcp.f32 %v1819_v32  ;;  %v1817_v7 = vadd.f32 1.0, %v2886_v3  ;;  %v1037_v32 = vadd.f32 %v3665_v24, %v3544_v52  ;;  %v1285_v52 = vadd.f32 %v3665_v24, %v3552_v60 }
 0x176   : > { %v2890_v49 = vpop.eup %2889  ;;  %2909 = vrcp.f32 %v1883_v28  ;;  %v1881_v46 = vadd.f32 1.0, %v2888_v36  ;;  %v1504_v36 = vsub.f32 0.0, %v1282_v26 }
 0x177   : > { %v2892_v17 = vpop.eup %2891  ;;  %2911 = vrcp.f32 %v1817_v7  ;;  %v1822_v34 = vadd.f32 1.0, %v2890_v49  ;;  %v1732_v49 = vmul.f32 1.442695, %v1506_v9 }
 0x178   : > { %v2894_v61 = vpop.eup %2893  ;;  %2913 = vrcp.f32 %v1881_v46  ;;  %v1886_v43 = vadd.f32 1.0, %v2892_v17  ;;  %v1029_v17 = vadd.f32 %v3665_v24, %v3549_v5  ;;  %v1600_v46 = vmul.f32 1.442695, %v1440_v12 }
 0x179   : > { %v2896_v19 = vpop.eup %2895  ;;  %2915 = vrcp.f32 %v1822_v34  ;;  %v1820_v8 = vadd.f32 1.0, %v2894_v61  ;;  %v1507_v5 = vsub.f32 0.0, %v1293_v47  ;;  %v1728_v13 = vmul.f32 1.442695, %v1504_v36 }
 0x17a   : > { %v2898_v3 = vpop.eup %2897  ;;  %2917 = vrcp.f32 %v1886_v43  ;;  %v1884_v28 = vadd.f32 1.0, %v2896_v19  ;;  %v1443_v19 = vsub.f32 0.0, %v1037_v32  ;;  %v1306_v43 = vadd.f32 %v3665_v24, %v3559_v40 }
 0x17b   : > { %v2900_v7 = vpop.eup %2899  ;;  %2919 = vrcp.f32 %v1820_v8  ;;  %v1823_v6 = vadd.f32 1.0, %v2898_v3  ;;  %v1441_v60 = vsub.f32 0.0, %v1029_v17  ;;  %v1298_v47 = vadd.f32 %v3665_v24, %v3565_v27 }
 0x17c   : > { %v2902_v23 = vpop.eup %2901  ;;  %2921 = vrcp.f32 %v1884_v28  ;;  %v1887_v61 = vadd.f32 1.0, %v2900_v7  ;;  %v1042_v28 = vadd.f32 %v3665_v24, %v3563_v22  ;;  %v1505_v7 = vsub.f32 0.0, %v1285_v52 }
 0x17d   : > { %v2904_v34 = vpop.eup %2903  ;;  %2923 = vrcp.f32 %v1823_v6  ;;  %v1821_v26 = vadd.f32 1.0, %v2902_v23  ;;  %v1606_v40 = vmul.f32 1.442695, %v1443_v19  ;;  %v1446_v23 = vsub.f32 0.0, %v1050_v56 }
 0x17e   : > { %v2906_v8 = vpop.eup %2905  ;;  %2925 = vrcp.f32 %v1887_v61  ;;  %v1885_v9 = vadd.f32 1.0, %v2904_v34  ;;  %v1053_v17 = vadd.f32 %v3665_v24, %v3569_v41  ;;  %v1734_v22 = vmul.f32 1.442695, %v1507_v5 }
 0x17f   : > { %v2908_v12 = vpop.eup %2907  ;;  %2927 = vrcp.f32 %v1821_v26  ;;  %v1826_v3 = vadd.f32 1.0, %v2906_v8  ;;  %v1510_v36 = vsub.f32 0.0, %v1306_v43  ;;  %v1309_v52 = vadd.f32 %v3665_v24, %v3571_v30 }
 0x180   : > { %v2910_v32 = vpop.eup %2909  ;;  %2075 = vst [vmem:[%s3415_s7 + $0xd8] sm:$0xff] %v2908_v12  ;;  %2929 = vrcp.f32 %v1885_v9  ;;  %v1602_v27 = vmul.f32 1.442695, %v1441_v60  ;;  %v1444_v26 = vsub.f32 0.0, %v1042_v28  ;;  %v1730_v41 = vmul.f32 1.442695, %v1505_v7 }
 0x181   : > { %v2912_v6 = vpop.eup %2911  ;;  %2139 = vst [vmem:[%s3415_s7 + $0x2d8] sm:$0xff] %v2910_v32  ;;  %2931 = vrcp.f32 %v1826_v3  ;;  %v1508_v56 = vsub.f32 0.0, %v1298_v47  ;;  %v1447_v9 = vsub.f32 0.0, %v1053_v17  ;;  %v1511_v5 = vsub.f32 0.0, %v1309_v52 }
 0x182   : > { %v2914_v61 = vpop.eup %2913  ;;  %2073 = vst [vmem:[%s3415_s7 + $0xc8] sm:$0xff] %v2912_v6  ;;  %2933 = vpow2.f32 %v1732_v49  ;;  %v1612_v49 = vmul.f32 1.442695, %v1446_v23  ;;  %v1608_v12 = vmul.f32 1.442695, %v1444_v26 }
 0x183   : > { %v2916_v34 = vpop.eup %2915  ;;  %2137 = vst [vmem:[%s3415_s7 + $0x2c8] sm:$0xff] %v2914_v61  ;;  %2935 = vpow2.f32 %v1600_v46  ;;  %v1740_v46 = vmul.f32 1.442695, %v1510_v36  ;;  %v1736_v60 = vmul.f32 1.442695, %v1508_v56  ;;  %v1301_v61 = vadd.f32 %v3665_v24, %v3577_v38 }
 0x184   : > { %v2918_v19 = vpop.eup %2917  ;;  %2078 = vst [vmem:[%s3415_s7 + $0xf0] sm:$0xff] %v2916_v34  ;;  %2937 = vpow2.f32 %v1728_v13  ;;  %v1614_v32 = vmul.f32 1.442695, %v1447_v9  ;;  %v1742_v7 = vmul.f32 1.442695, %v1511_v5  ;;  %v1066_v38 = vadd.f32 %v3665_v24, %v3587_v21 }
 0x185   : > { %v2920_v8 = vpop.eup %2919  ;;  %2142 = vst [vmem:[%s3415_s7 + $0x2f0] sm:$0xff] %v2918_v19  ;;  %2939 = vpow2.f32 %v1606_v40  ;;  %v1045_v40 = vadd.f32 %v3665_v24, %v3575_v33  ;;  %v1509_v33 = vsub.f32 0.0, %v1301_v61  ;;  %v1314_v21 = vadd.f32 %v3665_v24, %v3595_v31 }
 0x186   : > { %v2922_v30 = vpop.eup %2921  ;;  %2076 = vst [vmem:[%s3415_s7 + $0xe0] sm:$0xff] %v2920_v8  ;;  %2941 = vpow2.f32 %v1734_v22 }
 0x187   : > { %v2924_v43 = vpop.eup %2923  ;;  %2140 = vst [vmem:[%s3415_s7 + $0x2e0] sm:$0xff] %v2922_v30  ;;  %2943 = vpow2.f32 %v1602_v27  ;;  %v1445_v19 = vsub.f32 0.0, %v1045_v40 }
 0x188   : > { %v2926_v3 = vpop.eup %2925  ;;  %2079 = vst [vmem:[%s3415_s7 + $0xf8] sm:$0xff] %v2924_v43  ;;  %2945 = vpow2.f32 %v1730_v41 }
 0x189   : > { %v2928_v28 = vpop.eup %2927  ;;  %2143 = vst [vmem:[%s3415_s7 + $0x2f8] sm:$0xff] %v2926_v3  ;;  %2947 = vpow2.f32 %v1612_v49  ;;  %v1058_v3 = vadd.f32 %v3665_v24, %v3593_v50  ;;  %v1325_v50 = vadd.f32 %v3665_v24, %v3601_v42 }
 0x18a   : > { %v2930_v13 = vpop.eup %2929  ;;  %2077 = vst [vmem:[%s3415_s7 + $0xe8] sm:$0xff] %v2928_v28  ;;  %2949 = vpow2.f32 %v1740_v46  ;;  %v1322_v46 = vadd.f32 %v3665_v24, %v3589_v25  ;;  %v1069_v25 = vadd.f32 %v3665_v24, %v3599_v48  ;;  %v1512_v48 = vsub.f32 0.0, %v1314_v21 }
 0x18b   : > { %v2932_v47 = vpop.eup %2931  ;;  %2141 = vst [vmem:[%s3415_s7 + $0x2e8] sm:$0xff] %v2930_v13  ;;  %2951 = vpow2.f32 %v1608_v12  ;;  %v1610_v12 = vmul.f32 1.442695, %v1445_v19  ;;  %v1448_v31 = vsub.f32 0.0, %v1058_v3  ;;  %v1082_v19 = vadd.f32 %v3665_v24, %v3619_v29 }
 0x18c   : > { %v2934_v6 = vpop.eup %2933  ;;  %2082 = vst [vmem:[%s3415_s7 + $0x110] sm:$0xff] %v2932_v47  ;;  %2953 = vpow2.f32 %v1736_v60  ;;  %v1450_v47 = vsub.f32 0.0, %v1066_v38  ;;  %v1074_v38 = vadd.f32 %v3665_v24, %v3624_v39  ;;  %v1744_v29 = vmul.f32 1.442695, %v1512_v48 }
 0x18d   : > { %v2936_v23 = vpop.eup %2935  ;;  %v1890_v17 = vadd.f32 1.0, %v2934_v6  ;;  %2955 = vpow2.f32 %v1614_v32  ;;  %v1738_v32 = vmul.f32 1.442695, %v1509_v33  ;;  %v1338_v33 = vadd.f32 %v3665_v24, %v3621_v10 }
 0x18e   : > { %v2938_v22 = vpop.eup %2937  ;;  %v1824_v36 = vadd.f32 1.0, %v2936_v23  ;;  %2957 = vpow2.f32 %v1742_v7  ;;  %v1514_v23 = vsub.f32 0.0, %v1322_v46  ;;  %v1620_v42 = vmul.f32 1.442695, %v1450_v47 }
 0x18f   : > { %v2940_v52 = vpop.eup %2939  ;;  %2959 = vrcp.f32 %v1890_v17  ;;  %v1888_v34 = vadd.f32 1.0, %v2938_v22  ;;  %v1061_v22 = vadd.f32 %v3665_v24, %v3606_v11  ;;  %v1518_v3 = vsub.f32 0.0, %v1338_v33 }
 0x190   : > { %v2942_v27 = vpop.eup %2941  ;;  %2961 = vrcp.f32 %v1824_v36  ;;  %v1827_v26 = vadd.f32 1.0, %v2940_v52  ;;  %v1748_v11 = vmul.f32 1.442695, %v1514_v23 }
 0x191   : > { %v2944_v41 = vpop.eup %2943  ;;  %2963 = vrcp.f32 %v1888_v34  ;;  %v1891_v56 = vadd.f32 1.0, %v2942_v27  ;;  %v1317_v34 = vadd.f32 %v3665_v24, %v3608_v63  ;;  %v1616_v63 = vmul.f32 1.442695, %v1448_v31 }
 0x192   : > { %v2946_v8 = vpop.eup %2945  ;;  %2965 = vrcp.f32 %v1827_v26  ;;  %v1825_v49 = vadd.f32 1.0, %v2944_v41  ;;  %v1451_v26 = vsub.f32 0.0, %v1069_v25  ;;  %v1756_v25 = vmul.f32 1.442695, %v1518_v3 }
 0x193   : > { %v2948_v9 = vpop.eup %2947  ;;  %2967 = vrcp.f32 %v1891_v56  ;;  %v1889_v30 = vadd.f32 1.0, %v2946_v8  ;;  %v1515_v56 = vsub.f32 0.0, %v1325_v50  ;;  %v1330_v31 = vadd.f32 %v3665_v24, %v3626_v51 }
 0x194   : > { %v2950_v5 = vpop.eup %2949  ;;  %2969 = vrcp.f32 %v1825_v49  ;;  %v1830_v43 = vadd.f32 1.0, %v2948_v9  ;;  %v1449_v49 = vsub.f32 0.0, %v1061_v22  ;;  %v1622_v10 = vmul.f32 1.442695, %v1451_v26 }
 0x195   : > { %v2952_v60 = vpop.eup %2951  ;;  %2971 = vrcp.f32 %v1889_v30  ;;  %v1894_v28 = vadd.f32 1.0, %v2950_v5  ;;  %v1513_v30 = vsub.f32 0.0, %v1317_v34  ;;  %v1454_v5 = vsub.f32 0.0, %v1082_v19 }
 0x196   : > { %v2954_v13 = vpop.eup %2953  ;;  %2973 = vrcp.f32 %v1830_v43  ;;  %v1828_v7 = vadd.f32 1.0, %v2952_v60  ;;  %v1618_v60 = vmul.f32 1.442695, %v1449_v49  ;;  %v1341_v26 = vadd.f32 %v3665_v24, %v3631_v44 }
 0x197   : > { %v2956_v6 = vpop.eup %2955  ;;  %2975 = vrcp.f32 %v1894_v28  ;;  %v1892_v40 = vadd.f32 1.0, %v2954_v13  ;;  %v1452_v28 = vsub.f32 0.0, %v1074_v38  ;;  %v1746_v21 = vmul.f32 1.442695, %v1513_v30 }
 0x198   : > { %v2958_v17 = vpop.eup %2957  ;;  %2977 = vrcp.f32 %v1828_v7  ;;  %v1831_v61 = vadd.f32 1.0, %v2956_v6  ;;  %v1628_v7 = vmul.f32 1.442695, %v1454_v5  ;;  %v1333_v44 = vadd.f32 %v3665_v24, %v3636_v45 }
 0x199   : > { %v2960_v36 = vpop.eup %2959  ;;  %2979 = vrcp.f32 %v1892_v40  ;;  %v1895_v52 = vadd.f32 1.0, %v2958_v17  ;;  %v1624_v40 = vmul.f32 1.442695, %v1452_v28  ;;  %v1090_v45 = vadd.f32 %v3665_v24, %v3650_v37 }
 0x19a   : > { %v2962_v27 = vpop.eup %2961  ;;  %2146 = vst [vmem:[%s3415_s7 + $0x310] sm:$0xff] %v2960_v36  ;;  %2981 = vrcp.f32 %v1831_v61 }
 0x19b   : > { %v2964_v41 = vpop.eup %2963  ;;  %2080 = vst [vmem:[%s3415_s7 + $0x100] sm:$0xff] %v2962_v27  ;;  %2983 = vrcp.f32 %v1895_v52  ;;  %v1085_v52 = vadd.f32 %v3665_v24, %v3629_v59 }
 0x19c   : > { %v2966_v8 = vpop.eup %2965  ;;  %2144 = vst [vmem:[%s3415_s7 + $0x300] sm:$0xff] %v2964_v41  ;;  %2985 = vpow2.f32 %v1610_v12  ;;  %v1750_v12 = vmul.f32 1.442695, %v1515_v56 }
 0x19d   : > { %v2968_v9 = vpop.eup %2967  ;;  %2083 = vst [vmem:[%s3415_s7 + $0x118] sm:$0xff] %v2966_v8  ;;  %2987 = vpow2.f32 %v1738_v32  ;;  %v1455_v33 = vsub.f32 0.0, %v1085_v52 }
 0x19e   : > { %v2970_v46 = vpop.eup %2969  ;;  %2147 = vst [vmem:[%s3415_s7 + $0x318] sm:$0xff] %v2968_v9  ;;  %2989 = vpow2.f32 %v1620_v42  ;;  %v1519_v9 = vsub.f32 0.0, %v1341_v26 }
 0x19f   : > { %v2972_v43 = vpop.eup %2971  ;;  %2081 = vst [vmem:[%s3415_s7 + $0x108] sm:$0xff] %v2970_v46  ;;  %2991 = vpow2.f32 %v1748_v11  ;;  %v1516_v11 = vsub.f32 0.0, %v1330_v31  ;;  %v3982_v31 = vld [vmem:[#allocation4_spill] sm:$0xff] }
 0x1a0   : > { %v2974_v39 = vpop.eup %2973  ;;  %2145 = vst [vmem:[%s3415_s7 + $0x308] sm:$0xff] %v2972_v43  ;;  %2993 = vpow2.f32 %v1616_v63  ;;  %v1077_v63 = vadd.f32 %v3665_v24, %v3634_v0  ;;  %v1354_v0 = vadd.f32 %v3665_v24, %v3648_v20  ;;  %v1758_v37 = vmul.f32 1.442695, %v1519_v9 }
 0x1a1   : > { %v2976_v32 = vpop.eup %2975  ;;  %2086 = vst [vmem:[%s3415_s7 + $0x130] sm:$0xff] %v2974_v39  ;;  %2995 = vpow2.f32 %v1744_v29  ;;  %v1752_v46 = vmul.f32 1.442695, %v1516_v11 }
 0x1a2   : > { %v2978_v13 = vpop.eup %2977  ;;  %2150 = vst [vmem:[%s3415_s7 + $0x330] sm:$0xff] %v2976_v32  ;;  %2997 = vpow2.f32 %v1622_v10  ;;  %v1098_v10 = vadd.f32 %v3665_v24, %v3646_v4  ;;  %v1517_v4 = vsub.f32 0.0, %v1333_v44 }
 0x1a3   : > { %v2980_v47 = vpop.eup %2979  ;;  %2084 = vst [vmem:[%s3415_s7 + $0x120] sm:$0xff] %v2978_v13  ;;  %2999 = vpow2.f32 %v1750_v12  ;;  %v1630_v12 = vmul.f32 1.442695, %v1455_v33 }
 0x1a4   : > { %v2982_v6 = vpop.eup %2981  ;;  %2148 = vst [vmem:[%s3415_s7 + $0x320] sm:$0xff] %v2980_v47  ;;  %3001 = vpow2.f32 %v1618_v60  ;;  %v1453_v60 = vsub.f32 0.0, %v1077_v63  ;;  %v1458_v20 = vsub.f32 0.0, %v1098_v10  ;;  %v3980_v47 = vld [vmem:[#allocation2_spill] sm:$0xff]  ;;  %v1754_v52 = vmul.f32 1.442695, %v1517_v4 }
 0x1a5   : > { %v2984_v23 = vpop.eup %2983  ;;  %2087 = vst [vmem:[%s3415_s7 + $0x138] sm:$0xff] %v2982_v6  ;;  %3003 = vpow2.f32 %v1746_v21  ;;  %v1346_v21 = vadd.f32 %v3665_v24, %v3652_v55 }
 0x1a6   : > { %v2986_v50 = vpop.eup %2985  ;;  %2151 = vst [vmem:[%s3415_s7 + $0x338] sm:$0xff] %v2984_v23  ;;  %3005 = vpow2.f32 %v1628_v7  ;;  %v3981_v23 = vld [vmem:[#allocation3_spill] sm:$0xff]  ;;  %v1626_v55 = vmul.f32 1.442695, %v1453_v60  ;;  %v1636_v26 = vmul.f32 1.442695, %v1458_v20 }
 0x1a7   : > { %v2988_v17 = vpop.eup %2987  ;;  %v1829_v61 = vadd.f32 1.0, %v2986_v50  ;;  %3007 = vpow2.f32 %v1756_v25  ;;  %v1101_v25 = vadd.f32 %v3665_v24, %v3980_v47  ;;  %v1357_v50 = vadd.f32 %v3665_v24, %v3981_v23 }
 0x1a8   : > { %v2990_v22 = vpop.eup %2989  ;;  %v1893_v36 = vadd.f32 1.0, %v2988_v17  ;;  %3009 = vpow2.f32 %v1624_v40  ;;  %v1522_v40 = vsub.f32 0.0, %v1354_v0  ;;  %v1114_v0 = vadd.f32 %v3665_v24, %v3675_v2  ;;  %v3985_v2 = vld [vmem:[#allocation7_spill] sm:$0xff] }
 0x1a9   : > { %v2992_v48 = vpop.eup %2991  ;;  %3011 = vrcp.f32 %v1829_v61  ;;  %v1834_v34 = vadd.f32 1.0, %v2990_v22  ;;  %v1456_v61 = vsub.f32 0.0, %v1090_v45  ;;  %v1093_v22 = vadd.f32 %v3665_v24, %v3982_v31 }
 0x1aa   : > { %v2994_v27 = vpop.eup %2993  ;;  %3013 = vrcp.f32 %v1893_v36  ;;  %v1898_v42 = vadd.f32 1.0, %v2992_v48  ;;  %v1520_v48 = vsub.f32 0.0, %v1346_v21  ;;  %v1764_v11 = vmul.f32 1.442695, %v1522_v40 }
 0x1ab   : > { %v2996_v19 = vpop.eup %2995  ;;  %3015 = vrcp.f32 %v1834_v34  ;;  %v1832_v41 = vadd.f32 1.0, %v2994_v27  ;;  %v3983_v34 = vld [vmem:[#allocation5_spill] sm:$0xff]  ;;  %v1632_v33 = vmul.f32 1.442695, %v1456_v61  ;;  %v1462_v20 = vsub.f32 0.0, %v1114_v0 }
 0x1ac   : > { %v2998_v51 = vpop.eup %2997  ;;  %3017 = vrcp.f32 %v1898_v42  ;;  %v1896_v56 = vadd.f32 1.0, %v2996_v19  ;;  %v1349_v27 = vadd.f32 %v3665_v24, %v3983_v34  ;;  %v1459_v19 = vsub.f32 0.0, %v1101_v25 }
 0x1ad   : > { %v3000_v8 = vpop.eup %2999  ;;  %3019 = vrcp.f32 %v1832_v41  ;;  %v1835_v59 = vadd.f32 1.0, %v2998_v51  ;;  %v1523_v51 = vsub.f32 0.0, %v1357_v50  ;;  %v1760_v63 = vmul.f32 1.442695, %v1520_v48 }
 0x1ae   : > { %v3002_v49 = vpop.eup %3001  ;;  %3021 = vrcp.f32 %v1896_v56  ;;  %v1899_v38 = vadd.f32 1.0, %v3000_v8  ;;  %v1457_v8 = vsub.f32 0.0, %v1093_v22  ;;  %v1638_v9 = vmul.f32 1.442695, %v1459_v19 }
 0x1af   : > { %v3004_v29 = vpop.eup %3003  ;;  %3023 = vrcp.f32 %v1835_v59  ;;  %v1833_v30 = vadd.f32 1.0, %v3002_v49  ;;  %v1521_v49 = vsub.f32 0.0, %v1349_v27 }
 0x1b0   : > { %v3006_v5 = vpop.eup %3005  ;;  %3025 = vrcp.f32 %v1899_v38  ;;  %v1897_v43 = vadd.f32 1.0, %v3004_v29  ;;  %v1766_v29 = vmul.f32 1.442695, %v1523_v51 }
 0x1b1   : > { %v3008_v3 = vpop.eup %3007  ;;  %3027 = vrcp.f32 %v1833_v30  ;;  %v1838_v39 = vadd.f32 1.0, %v3006_v5  ;;  %v1762_v5 = vmul.f32 1.442695, %v1521_v49  ;;  %v3989_v49 = vld [vmem:[#allocation11_spill] sm:$0xff] }
 0x1b2   : > { %v3010_v28 = vpop.eup %3009  ;;  %3029 = vrcp.f32 %v1897_v43  ;;  %v1902_v32 = vadd.f32 1.0, %v3008_v3 }
 0x1b3   : > { %v3012_v13 = vpop.eup %3011  ;;  %3031 = vrcp.f32 %v1838_v39  ;;  %v1836_v7 = vadd.f32 1.0, %v3010_v28  ;;  %v3984_v28 = vld [vmem:[#allocation6_spill] sm:$0xff] }
 0x1b4   : > { %v3014_v6 = vpop.eup %3013  ;;  %2085 = vst [vmem:[%s3415_s7 + $0x128] sm:$0xff] %v3012_v13  ;;  %3033 = vrcp.f32 %v1902_v32  ;;  %v1370_v32 = vadd.f32 %v3665_v24, %v3984_v28 }
 0x1b5   : > { %v3016_v17 = vpop.eup %3015  ;;  %2149 = vst [vmem:[%s3415_s7 + $0x328] sm:$0xff] %v3014_v6  ;;  %3035 = vrcp.f32 %v1836_v7  ;;  %v1106_v6 = vadd.f32 %v3665_v24, %v3985_v2 }
 0x1b6   : > { %v3018_v36 = vpop.eup %3017  ;;  %2090 = vst [vmem:[%s3415_s7 + $0x150] sm:$0xff] %v3016_v17  ;;  %3037 = vpow2.f32 %v1752_v46  ;;  %v1634_v46 = vmul.f32 1.442695, %v1457_v8  ;;  %v1526_v23 = vsub.f32 0.0, %v1370_v32 }
 0x1b7   : > { %v3020_v42 = vpop.eup %3019  ;;  %2154 = vst [vmem:[%s3415_s7 + $0x350] sm:$0xff] %v3018_v36  ;;  %3039 = vpow2.f32 %v1630_v12  ;;  %v1644_v36 = vmul.f32 1.442695, %v1462_v20 }
 0x1b8   : > { %v3022_v41 = vpop.eup %3021  ;;  %2088 = vst [vmem:[%s3415_s7 + $0x140] sm:$0xff] %v3020_v42  ;;  %3041 = vpow2.f32 %v1758_v37  ;;  %v1460_v42 = vsub.f32 0.0, %v1106_v6  ;;  %v1772_v51 = vmul.f32 1.442695, %v1526_v23 }
 0x1b9   : > { %v3024_v56 = vpop.eup %3023  ;;  %2152 = vst [vmem:[%s3415_s7 + $0x340] sm:$0xff] %v3022_v41  ;;  %3043 = vpow2.f32 %v1626_v55  ;;  %v3986_v55 = vld [vmem:[#allocation8_spill] sm:$0xff] }
 0x1ba   : > { %v3026_v59 = vpop.eup %3025  ;;  %2091 = vst [vmem:[%s3415_s7 + $0x158] sm:$0xff] %v3024_v56  ;;  %3045 = vpow2.f32 %v1754_v52  ;;  %v1362_v61 = vadd.f32 %v3665_v24, %v3986_v55  ;;  %v3987_v52 = vld [vmem:[#allocation9_spill] sm:$0xff]  ;;  %v1109_v56 = vadd.f32 %v3665_v24, %v3693_v35 }
 0x1bb   : > { %v3028_v38 = vpop.eup %3027  ;;  %2155 = vst [vmem:[%s3415_s7 + $0x358] sm:$0xff] %v3026_v59  ;;  %3047 = vpow2.f32 %v1636_v26  ;;  %v1117_v48 = vadd.f32 %v3665_v24, %v3987_v52  ;;  %v3988_v26 = vld [vmem:[#allocation10_spill] sm:$0xff] }
 0x1bc   : > { %v3030_v44 = vpop.eup %3029  ;;  %2089 = vst [vmem:[%s3415_s7 + $0x148] sm:$0xff] %v3028_v38  ;;  %3049 = vpow2.f32 %v1764_v11  ;;  %v1373_v19 = vadd.f32 %v3665_v24, %v3988_v26  ;;  %v1524_v59 = vsub.f32 0.0, %v1362_v61 }
 0x1bd   : > { %v3032_v30 = vpop.eup %3031  ;;  %2153 = vst [vmem:[%s3415_s7 + $0x348] sm:$0xff] %v3030_v44  ;;  %3051 = vpow2.f32 %v1632_v33 }
 0x1be   : > { %v3034_v10 = vpop.eup %3033  ;;  %2094 = vst [vmem:[%s3415_s7 + $0x170] sm:$0xff] %v3032_v30  ;;  %3053 = vpow2.f32 %v1760_v63  ;;  %v3884_v63 = vld [vmem:[%s3962_s2] ss:$0 sm:$0xff] }
 0x1bf   : > { %v3036_v43 = vpop.eup %3035  ;;  %2158 = vst [vmem:[%s3415_s7 + $0x370] sm:$0xff] %v3034_v10  ;;  %3055 = vpow2.f32 %v1638_v9  ;;  %v1365_v38 = vadd.f32 %v3884_v63, %v3989_v49  ;;  %v1130_v24 = vadd.f32 %v3884_v63, %v3709_v15  ;;  %v1386_v10 = vadd.f32 %v3884_v63, %v3711_v58 }
 0x1c0   : > { %v3038_v12 = vpop.eup %3037  ;;  %2092 = vst [vmem:[%s3415_s7 + $0x160] sm:$0xff] %v3036_v43  ;;  %3057 = vpow2.f32 %v1766_v29  ;;  %v1463_v29 = vsub.f32 0.0, %v1117_v48  ;;  %v1640_v43 = vmul.f32 1.442695, %v1460_v42  ;;  %v1122_v0 = vadd.f32 %v3884_v63, %v3714_v57 }
 0x1c1   : > { %v3040_v3 = vpop.eup %3039  ;;  %v1900_v39 = vadd.f32 1.0, %v3038_v12  ;;  %3059 = vpow2.f32 %v1634_v46  ;;  %v1527_v46 = vsub.f32 0.0, %v1373_v19  ;;  %v1461_v12 = vsub.f32 0.0, %v1109_v56 }
 0x1c2   : > { %v3042_v60 = vpop.eup %3041  ;;  %v1839_v45 = vadd.f32 1.0, %v3040_v3  ;;  %3061 = vpow2.f32 %v1762_v5  ;;  %v1768_v15 = vmul.f32 1.442695, %v1524_v59  ;;  %v1646_v58 = vmul.f32 1.442695, %v1463_v29 }
 0x1c3   : > { %v3044_v4 = vpop.eup %3043  ;;  %3063 = vrcp.f32 %v1900_v39  ;;  %v1903_v21 = vadd.f32 1.0, %v3042_v60  ;;  %v1525_v39 = vsub.f32 0.0, %v1365_v38  ;;  %v1378_v60 = vadd.f32 %v3884_v63, %v3716_v16 }
 0x1c4   : > { %v3046_v13 = vpop.eup %3045  ;;  %3065 = vrcp.f32 %v1839_v45  ;;  %v1837_v7 = vadd.f32 1.0, %v3044_v4  ;;  %v1466_v28 = vsub.f32 0.0, %v1130_v24  ;;  %v1133_v32 = vadd.f32 %v3884_v63, %v3719_v62 }
 0x1c5   : > { %v3048_v47 = vpop.eup %3047  ;;  %3067 = vrcp.f32 %v1903_v21  ;;  %v1901_v25 = vadd.f32 1.0, %v3046_v13  ;;  %v1774_v57 = vmul.f32 1.442695, %v1527_v46  ;;  %v1530_v21 = vsub.f32 0.0, %v1386_v10 }
 0x1c6   : > { %v3050_v37 = vpop.eup %3049  ;;  %3069 = vrcp.f32 %v1837_v7  ;;  %v1842_v40 = vadd.f32 1.0, %v3048_v47  ;;  %v1642_v16 = vmul.f32 1.442695, %v1461_v12  ;;  %v1464_v7 = vsub.f32 0.0, %v1122_v0 }
 0x1c7   : > { %v3052_v50 = vpop.eup %3051  ;;  %3071 = vrcp.f32 %v1901_v25  ;;  %v1906_v17 = vadd.f32 1.0, %v3050_v37  ;;  %v1770_v47 = vmul.f32 1.442695, %v1525_v39  ;;  %v1528_v25 = vsub.f32 0.0, %v1378_v60 }
 0x1c8   : > { %v3054_v31 = vpop.eup %3053  ;;  %3073 = vrcp.f32 %v1842_v40  ;;  %v1840_v22 = vadd.f32 1.0, %v3052_v50  ;;  %v1652_v2 = vmul.f32 1.442695, %v1466_v28  ;;  %v1467_v6 = vsub.f32 0.0, %v1133_v32 }
 0x1c9   : > { %v3056_v34 = vpop.eup %3055  ;;  %3075 = vrcp.f32 %v1906_v17  ;;  %v1904_v27 = vadd.f32 1.0, %v3054_v31  ;;  %v1780_v40 = vmul.f32 1.442695, %v1530_v21  ;;  %v1648_v50 = vmul.f32 1.442695, %v1464_v7 }
 0x1ca   : > { %v3058_v41 = vpop.eup %3057  ;;  %3077 = vrcp.f32 %v1840_v22  ;;  %v1843_v11 = vadd.f32 1.0, %v3056_v34  ;;  %v1776_v55 = vmul.f32 1.442695, %v1528_v25  ;;  %v1654_v31 = vmul.f32 1.442695, %v1467_v6  ;;  %v3995_v6 = vld [vmem:[#allocation17_spill] sm:$0xff] }
 0x1cb   : > { %v3060_v33 = vpop.eup %3059  ;;  %3079 = vrcp.f32 %v1904_v27  ;;  %v1907_v8 = vadd.f32 1.0, %v3058_v41  ;;  %v1389_v52 = vadd.f32 %v3884_v63, %v3721_v18  ;;  %v1125_v26 = vadd.f32 %v3884_v63, %v3724_v1 }
 0x1cc   : > { %v3062_v9 = vpop.eup %3061  ;;  %3081 = vrcp.f32 %v1843_v11  ;;  %v1841_v44 = vadd.f32 1.0, %v3060_v33  ;;  %v1381_v18 = vadd.f32 %v3884_v63, %v3726_v54 }
 0x1cd   : > { %v3064_v35 = vpop.eup %3063  ;;  %3083 = vrcp.f32 %v1907_v8  ;;  %v1905_v30 = vadd.f32 1.0, %v3062_v9  ;;  %v1531_v56 = vsub.f32 0.0, %v1389_v52  ;;  %v1465_v38 = vsub.f32 0.0, %v1125_v26 }
 0x1ce   : > { %v3066_v5 = vpop.eup %3065  ;;  %2156 = vst [vmem:[%s3415_s7 + $0x360] sm:$0xff] %v3064_v35  ;;  %3085 = vrcp.f32 %v1841_v44  ;;  %v1146_v44 = vadd.f32 %v3884_v63, %v3733_v53  ;;  %v1529_v10 = vsub.f32 0.0, %v1381_v18 }
 0x1cf   : > { %v3068_v3 = vpop.eup %3067  ;;  %2095 = vst [vmem:[%s3415_s7 + $0x178] sm:$0xff] %v3066_v5  ;;  %3087 = vrcp.f32 %v1905_v30  ;;  %v1782_v35 = vmul.f32 1.442695, %v1531_v56  ;;  %v1402_v30 = vadd.f32 %v3884_v63, %v3735_v14  ;;  %v3990_v5 = vld [vmem:[#allocation12_spill] sm:$0xff]  ;;  %v3992_v14 = vld [vmem:[#allocation14_spill] sm:$0xff] }
 0x1d0   : > { %v3070_v45 = vpop.eup %3069  ;;  %2159 = vst [vmem:[%s3415_s7 + $0x378] sm:$0xff] %v3068_v3  ;;  %3089 = vpow2.f32 %v1644_v36  ;;  %v1650_v3 = vmul.f32 1.442695, %v1465_v38 }
 0x1d1   : > { %v3072_v4 = vpop.eup %3071  ;;  %2093 = vst [vmem:[%s3415_s7 + $0x168] sm:$0xff] %v3070_v45  ;;  %3091 = vpow2.f32 %v1772_v51  ;;  %v1470_v45 = vsub.f32 0.0, %v1146_v44 }
 0x1d2   : > { %v3074_v13 = vpop.eup %3073  ;;  %2157 = vst [vmem:[%s3415_s7 + $0x368] sm:$0xff] %v3072_v4  ;;  %3093 = vpow2.f32 %v1640_v43  ;;  %v1138_v43 = vadd.f32 %v3884_v63, %v3990_v5  ;;  %v1534_v4 = vsub.f32 0.0, %v1402_v30 }
 0x1d3   : > { %v3076_v20 = vpop.eup %3075  ;;  %2098 = vst [vmem:[%s3415_s7 + $0x190] sm:$0xff] %v3074_v13  ;;  %3095 = vpow2.f32 %v1768_v15  ;;  %v3991_v15 = vld [vmem:[#allocation13_spill] sm:$0xff] }
 0x1d4   : > { %v3078_v62 = vpop.eup %3077  ;;  %2162 = vst [vmem:[%s3415_s7 + $0x390] sm:$0xff] %v3076_v20  ;;  %3097 = vpow2.f32 %v1646_v58  ;;  %v1394_v53 = vadd.f32 %v3884_v63, %v3991_v15  ;;  %v1149_v58 = vadd.f32 %v3884_v63, %v3992_v14  ;;  %v1468_v7 = vsub.f32 0.0, %v1138_v43  ;;  %v3994_v20 = vld [vmem:[#allocation16_spill] sm:$0xff] }
 0x1d5   : > { %v3080_v37 = vpop.eup %3079  ;;  %2096 = vst [vmem:[%s3415_s7 + $0x180] sm:$0xff] %v3078_v62  ;;  %3099 = vpow2.f32 %v1774_v57  ;;  %v3993_v57 = vld [vmem:[#allocation15_spill] sm:$0xff]  ;;  %v1778_v62 = vmul.f32 1.442695, %v1529_v10 }
 0x1d6   : > { %v3082_v23 = vpop.eup %3081  ;;  %2160 = vst [vmem:[%s3415_s7 + $0x380] sm:$0xff] %v3080_v37  ;;  %3101 = vpow2.f32 %v1642_v16  ;;  %v1405_v21 = vadd.f32 %v3884_v63, %v3993_v57  ;;  %v1397_v37 = vadd.f32 %v3884_v63, %v3995_v6 }
 0x1d7   : > { %v3084_v17 = vpop.eup %3083  ;;  %2099 = vst [vmem:[%s3415_s7 + $0x198] sm:$0xff] %v3082_v23  ;;  %3103 = vpow2.f32 %v1770_v47  ;;  %v1141_v47 = vadd.f32 %v3884_v63, %v3994_v20  ;;  %v1660_v23 = vmul.f32 1.442695, %v1470_v45 }
 0x1d8   : > { %v3086_v61 = vpop.eup %3085  ;;  %2163 = vst [vmem:[%s3415_s7 + $0x398] sm:$0xff] %v3084_v17  ;;  %3105 = vpow2.f32 %v1652_v2  ;;  %v1532_v2 = vsub.f32 0.0, %v1394_v53 }
 0x1d9   : > { %v3088_v22 = vpop.eup %3087  ;;  %2097 = vst [vmem:[%s3415_s7 + $0x188] sm:$0xff] %v3086_v61  ;;  %3107 = vpow2.f32 %v1780_v40  ;;  %v1535_v61 = vsub.f32 0.0, %v1405_v21 }
 0x1da   : > { %v3090_v36 = vpop.eup %3089  ;;  %2161 = vst [vmem:[%s3415_s7 + $0x388] sm:$0xff] %v3088_v22  ;;  %3109 = vpow2.f32 %v1648_v50  ;;  %v1471_v50 = vsub.f32 0.0, %v1149_v58  ;;  %v1656_v22 = vmul.f32 1.442695, %v1468_v7  ;;  %v1784_v52 = vmul.f32 1.442695, %v1532_v2 }
 0x1db   : > { %v3092_v48 = vpop.eup %3091  ;;  %v1846_v34 = vadd.f32 1.0, %v3090_v36  ;;  %3111 = vpow2.f32 %v1776_v55  ;;  %v1788_v55 = vmul.f32 1.442695, %v1534_v4  ;;  %v1469_v36 = vsub.f32 0.0, %v1141_v47 }
 0x1dc   : > { %v3094_v27 = vpop.eup %3093  ;;  %v1910_v42 = vadd.f32 1.0, %v3092_v48  ;;  %3113 = vpow2.f32 %v1654_v31  ;;  %v1533_v48 = vsub.f32 0.0, %v1397_v37  ;;  %v1790_v26 = vmul.f32 1.442695, %v1535_v61 }
 0x1dd   : > { %v3096_v19 = vpop.eup %3095  ;;  %3115 = vrcp.f32 %v1846_v34  ;;  %v1844_v41 = vadd.f32 1.0, %v3094_v27  ;;  %v1662_v27 = vmul.f32 1.442695, %v1471_v50 }
 0x1de   : > { %v3098_v11 = vpop.eup %3097  ;;  %3117 = vrcp.f32 %v1910_v42  ;;  %v1908_v51 = vadd.f32 1.0, %v3096_v19 }
 0x1df   : > { %v3100_v33 = vpop.eup %3099  ;;  %3119 = vrcp.f32 %v1844_v41  ;;  %v1847_v8 = vadd.f32 1.0, %v3098_v11  ;;  %v1658_v41 = vmul.f32 1.442695, %v1469_v36 }
 0x1e0   : > { %v3102_v59 = vpop.eup %3101  ;;  %3121 = vrcp.f32 %v1908_v51  ;;  %v1911_v49 = vadd.f32 1.0, %v3100_v33  ;;  %v1786_v51 = vmul.f32 1.442695, %v1533_v48 }
 0x1e1   : > { %v3104_v9 = vpop.eup %3103  ;;  %3123 = vrcp.f32 %v1847_v8  ;;  %v1845_v1 = vadd.f32 1.0, %v3102_v59 }
 0x1e2   : > { %v3106_v29 = vpop.eup %3105  ;;  %3125 = vrcp.f32 %v1911_v49  ;;  %v1909_v24 = vadd.f32 1.0, %v3104_v9 }
 0x1e3   : > { %v3108_v46 = vpop.eup %3107  ;;  %3127 = vrcp.f32 %v1845_v1  ;;  %v1850_v54 = vadd.f32 1.0, %v3106_v29 }
 0x1e4   : > { %v3110_v12 = vpop.eup %3109  ;;  %3129 = vrcp.f32 %v1909_v24  ;;  %v1914_v0 = vadd.f32 1.0, %v3108_v46 }
 0x1e5   : > { %v3112_v39 = vpop.eup %3111  ;;  %3131 = vrcp.f32 %v1850_v54  ;;  %v1848_v60 = vadd.f32 1.0, %v3110_v12 }
 0x1e6   : > { %v3114_v28 = vpop.eup %3113  ;;  %3133 = vrcp.f32 %v1914_v0  ;;  %v1912_v32 = vadd.f32 1.0, %v3112_v39 }
 0x1e7   : > { %v3116_v13 = vpop.eup %3115  ;;  %3135 = vrcp.f32 %v1848_v60  ;;  %v1851_v16 = vadd.f32 1.0, %v3114_v28 }
 0x1e8   : > { %v3118_v25 = vpop.eup %3117  ;;  %2102 = vst [vmem:[%s3415_s7 + $0x1b0] sm:$0xff] %v3116_v13  ;;  %3137 = vrcp.f32 %v1912_v32 }
 0x1e9   : > { %v3120_v40 = vpop.eup %3119  ;;  %2166 = vst [vmem:[%s3415_s7 + $0x3b0] sm:$0xff] %v3118_v25  ;;  %3139 = vrcp.f32 %v1851_v16 }
 0x1ea   : > { %v3122_v17 = vpop.eup %3121  ;;  %2100 = vst [vmem:[%s3415_s7 + $0x1a0] sm:$0xff] %v3120_v40  ;;  %3141 = vpow2.f32 %v1782_v35 }
 0x1eb   : > { %v3124_v31 = vpop.eup %3123  ;;  %2164 = vst [vmem:[%s3415_s7 + $0x3a0] sm:$0xff] %v3122_v17  ;;  %3143 = vpow2.f32 %v1650_v3 }
 0x1ec   : > { %v3126_v63 = vpop.eup %3125  ;;  %2103 = vst [vmem:[%s3415_s7 + $0x1b8] sm:$0xff] %v3124_v31  ;;  %3145 = vpow2.f32 %v1778_v62 }
 0x1ed   : > { %v3128_v34 = vpop.eup %3127  ;;  %2167 = vst [vmem:[%s3415_s7 + $0x3b8] sm:$0xff] %v3126_v63  ;;  %3147 = vpow2.f32 %v1660_v23 }
 0x1ee   : > { %v3130_v42 = vpop.eup %3129  ;;  %2101 = vst [vmem:[%s3415_s7 + $0x1a8] sm:$0xff] %v3128_v34  ;;  %3149 = vpow2.f32 %v1788_v55 }
 0x1ef   : > { %v3132_v19 = vpop.eup %3131  ;;  %2165 = vst [vmem:[%s3415_s7 + $0x3a8] sm:$0xff] %v3130_v42  ;;  %3151 = vpow2.f32 %v1656_v22 }
 0x1f0   : > { %v3134_v11 = vpop.eup %3133  ;;  %2106 = vst [vmem:[%s3415_s7 + $0x1d0] sm:$0xff] %v3132_v19  ;;  %3153 = vpow2.f32 %v1784_v52 }
 0x1f1   : > { %v3136_v56 = vpop.eup %3135  ;;  %2170 = vst [vmem:[%s3415_s7 + $0x3d0] sm:$0xff] %v3134_v11  ;;  %3155 = vpow2.f32 %v1662_v27 }
 0x1f2   : > { %v3138_v33 = vpop.eup %3137  ;;  %2104 = vst [vmem:[%s3415_s7 + $0x1c0] sm:$0xff] %v3136_v56  ;;  %3157 = vpow2.f32 %v1790_v26 }
 0x1f3   : > { %v3140_v8 = vpop.eup %3139  ;;  %2168 = vst [vmem:[%s3415_s7 + $0x3c0] sm:$0xff] %v3138_v33  ;;  %3159 = vpow2.f32 %v1658_v41 }
 0x1f4   : > { %v3142_v18 = vpop.eup %3141  ;;  %2107 = vst [vmem:[%s3415_s7 + $0x1d8] sm:$0xff] %v3140_v8  ;;  %3161 = vpow2.f32 %v1786_v51 }
 0x1f5   : > { %v3144_v59 = vpop.eup %3143  ;;  %v1915_v49 = vadd.f32 1.0, %v3142_v18 }
 0x1f6   : > { %v3146_v38 = vpop.eup %3145  ;;  %v1849_v9 = vadd.f32 1.0, %v3144_v59 }
 0x1f7   : > { %v3148_v1 = vpop.eup %3147  ;;  %3163 = vrcp.f32 %v1915_v49  ;;  %v1913_v44 = vadd.f32 1.0, %v3146_v38 }
 0x1f8   : > { %v3150_v29 = vpop.eup %3149  ;;  %3165 = vrcp.f32 %v1849_v9  ;;  %v1854_v24 = vadd.f32 1.0, %v3148_v1 }
 0x1f9   : > { %v3152_v35 = vpop.eup %3151  ;;  %3167 = vrcp.f32 %v1913_v44  ;;  %v1918_v30 = vadd.f32 1.0, %v3150_v29 }
 0x1fa   : > { %v3154_v46 = vpop.eup %3153  ;;  %3169 = vrcp.f32 %v1854_v24  ;;  %v1852_v54 = vadd.f32 1.0, %v3152_v35 }
 0x1fb   : > { %v3156_v10 = vpop.eup %3155  ;;  %3171 = vrcp.f32 %v1918_v30  ;;  %v1916_v5 = vadd.f32 1.0, %v3154_v46 }
 0x1fc   : > { %v3158_v43 = vpop.eup %3157  ;;  %3173 = vrcp.f32 %v1852_v54  ;;  %v1855_v12 = vadd.f32 1.0, %v3156_v10 }
 0x1fd   : > { %v3160_v0 = vpop.eup %3159  ;;  %3175 = vrcp.f32 %v1916_v5  ;;  %v1919_v3 = vadd.f32 1.0, %v3158_v43 }
 0x1fe   : > { %v3162_v15 = vpop.eup %3161  ;;  %3177 = vrcp.f32 %v1855_v12  ;;  %v1853_v53 = vadd.f32 1.0, %v3160_v0 }
 0x1ff   : > { %3179 = vrcp.f32 %v1919_v3  ;;  %v1917_v39 = vadd.f32 1.0, %v3162_v15 }
 0x200   : > { %3181 = vrcp.f32 %v1853_v53 }
 0x201   : > { %v3164_v60 = vpop.eup %3163  ;;  %3183 = vrcp.f32 %v1917_v39 }
 0x202   : > { %v3166_v45 = vpop.eup %3165  ;;  %2171 = vst [vmem:[%s3415_s7 + $0x3d8] sm:$0xff] %v3164_v60 }
 0x203   : > { %v3168_v14 = vpop.eup %3167  ;;  %2105 = vst [vmem:[%s3415_s7 + $0x1c8] sm:$0xff] %v3166_v45 }
 0x204   : > { %v3170_v58 = vpop.eup %3169  ;;  %2169 = vst [vmem:[%s3415_s7 + $0x3c8] sm:$0xff] %v3168_v14 }
 0x205   : > { %v3172_v28 = vpop.eup %3171  ;;  %2110 = vst [vmem:[%s3415_s7 + $0x1f0] sm:$0xff] %v3170_v58 }
 0x206   : > { %v3174_v32 = vpop.eup %3173  ;;  %2174 = vst [vmem:[%s3415_s7 + $0x3f0] sm:$0xff] %v3172_v28 }
 0x207   : > { %v3176_v4 = vpop.eup %3175  ;;  %2108 = vst [vmem:[%s3415_s7 + $0x1e0] sm:$0xff] %v3174_v32 }
 0x208   : > { %v3178_v57 = vpop.eup %3177  ;;  %2172 = vst [vmem:[%s3415_s7 + $0x3e0] sm:$0xff] %v3176_v4 }
 0x209   : > { %v3180_v21 = vpop.eup %3179  ;;  %2111 = vst [vmem:[%s3415_s7 + $0x1f8] sm:$0xff] %v3178_v57 }
 0x20a   : > { %v3182_v13 = vpop.eup %3181  ;;  %2175 = vst [vmem:[%s3415_s7 + $0x3f8] sm:$0xff] %v3180_v21 }
 0x20b   : > { %v3184_v16 = vpop.eup %3183  ;;  %2109 = vst [vmem:[%s3415_s7 + $0x1e8] sm:$0xff] %v3182_v13 }
 0x20c   : > { %2173 = vst [vmem:[%s3415_s7 + $0x3e8] sm:$0xff] %v3184_v16 }
 0x20d PF: > { %s13_s12 = sadd.s32 1, %s3193_s12  }
 0x20e   : > { %p10_p4 = scmp.ge.s32.totalorder %s13_s12, 4  }
 0x210   :  { %12 = sbr.rel (!%p10_p4) target bundleno = 1 (0x1), region = 62 }

</bundles_post_ra>
